<compile_context>
chip_gen: v6e
topology: v6e:2x2x1
jax: 0.10.0
libtpu: 0.0.40
codegen_flags: <defaults>
</compile_context>

<pallas_src>
import functools

import jax
import jax.numpy as jnp
from jax.experimental import pallas as pl
from jax.experimental.pallas import tpu as pltpu


def _round_up(v, m):
    return ((v + m - 1) // m) * m


# ----------------------------- Pallas kernel ---------------------------------

def _fc_block_kernel(x2_ref, w_ref, g_ref, bt_ref, o_ref, patch_ref,
                     *, bsz, ho, wo, wo_p, kp, m_real):
    """Fused Conv2d(4x4, stride 2, pad 1) + BatchNorm2d + LeakyReLU(0.2).

    x2_ref   : [B, Ho+1, Wp_in, kp]  pad(1)+space-to-depth(2) input, bf16
                                     (kp = 4 * cin_pad, Wp_in = rnd8(Wo+1)).
    w_ref    : [4*kp, 128]           weights for this 128-wide Cout tile, bf16.
    g_ref,bt_ref : [1, 128]          BN gamma / beta (f32).
    o_ref    : [B*Ho*Wo_p, 128]      lane-dense, sublane-aligned output tile.
    patch_ref: [B, Ho, Wo_p, 4*kp]   VMEM scratch patch matrix (bf16).
    """
    # ---- patch assembly: 4 coalesced tap copies (2x2/stride-1 in s2d space) --
    if wo_p != wo:
        # Padded output columns stay exactly zero -> zero matmul rows, so they
        # contribute nothing to the BN sums below.
        patch_ref[:, :, wo:wo_p, :] = jnp.zeros(
            (bsz, ho, wo_p - wo, 4 * kp), patch_ref.dtype)
    for t, (qi, qj) in enumerate(((0, 0), (0, 1), (1, 0), (1, 1))):
        patch_ref[:, :, 0:wo, t * kp:(t + 1) * kp] = (
            x2_ref[:, qi:qi + ho, qj:qj + wo, :])

    # ---- one MXU matmul per (block, Cout tile): bf16 x bf16 -> f32 ----------
    # Wo_p is a multiple of 8 and 4*kp a multiple of 128, so this reshape is a
    # pure re-interpretation of the VMEM layout (no relayout copies).
    patch = patch_ref[...].reshape(bsz * ho * wo_p, 4 * kp)
    acc = jnp.dot(patch, w_ref[...], preferred_element_type=jnp.float32)
    # NOTE: no conv-bias add -- train-mode BN's mean subtraction cancels it.

    # ---- BatchNorm2d (training-mode batch stats), single pass ---------------
    inv_m = 1.0 / float(m_real)                    # real rows only
    s1 = jnp.sum(acc, axis=0, keepdims=True)
    s2 = jnp.sum(acc * acc, axis=0, keepdims=True)
    mean = s1 * inv_m
    var = jnp.maximum(s2 * inv_m - mean * mean, 0.0)   # biased variance
    y = (acc - mean) * jax.lax.rsqrt(var + 1e-5)
    y = y * g_ref[...] + bt_ref[...]

    # ---- LeakyReLU(0.2) ------------------------------------------------------
    y = jnp.where(y > 0, y, 0.2 * y)
    o_ref[...] = y.astype(o_ref.dtype)


# --------------------------- wrapper glue (XLA) -------------------------------

def _pad_s2d(x_nhwc, cin_pad, wp_out):
    """Zero-pad (spatial=1, channels->cin_pad) and space-to-depth by 2.

    [B, H, W, C] -> [B, (H+2)//2, wp_out, 4*cin_pad], where wp_out >= (W+2)//2
    pads the sublane dim to a multiple of 8.  Same byte count as the padded
    input (modulo alignment padding) -- no 16x im2col blow-up in HBM.
    """
    B, H, W, C = x_nhwc.shape
    xp = jnp.pad(x_nhwc, ((0, 0), (1, 1), (1, 1), (0, cin_pad - C)))
    Hh, Wh = (H + 2) // 2, (W + 2) // 2
    xp = xp.reshape(B, Hh, 2, Wh, 2, cin_pad)
    xp = jnp.transpose(xp, (0, 1, 3, 2, 4, 5))        # [B, h2, w2, ri, rj, c]
    xp = xp.reshape(B, Hh, Wh, 4 * cin_pad)
    return jnp.pad(xp, ((0, 0), (0, 0), (0, wp_out - Wh), (0, 0)))


def _weight_matrix(w_oihw, cin_pad, cout_pad):
    """PyTorch [Cout, Cin, 4, 4] -> [16*cin_pad, cout_pad].

    Row order is (tap t = 2*qi + qj, ri, rj, cin) to match the patch layout
    built inside the kernel; cin/cout are zero-padded so padded input channels
    / output lanes contribute exactly zero.
    """
    Co, Ci, _, _ = w_oihw.shape
    wt = jnp.transpose(w_oihw, (2, 3, 1, 0))          # [di, dj, ci, co]
    wt = wt.reshape(2, 2, 2, 2, Ci, Co)               # [qi, ri, qj, rj, ci, co]
    wt = jnp.transpose(wt, (0, 2, 1, 3, 4, 5))        # [qi, qj, ri, rj, ci, co]
    wt = jnp.pad(wt, ((0, 0), (0, 0), (0, 0), (0, 0),
                      (0, cin_pad - Ci), (0, cout_pad - Co)))
    return wt.reshape(16 * cin_pad, cout_pad)


def _pad_vec(v, cout_pad):
    c = v.shape[0]
    return jnp.pad(v, (0, cout_pad - c)).reshape(1, cout_pad).astype(jnp.float32)


def conv_block(x_nhwc, w_oihw, gamma, beta, *, out_dtype):
    """One fc_conv_block: fused conv + BN + LeakyReLU in a single pallas_call.

    Takes and returns REAL channels only (no stale lane padding carried into
    the next block's K dimension).
    """
    B, H, W, Cin = x_nhwc.shape
    assert H % 2 == 0 and W % 2 == 0, "stride-2 blocks expect even spatial dims"
    Cout, wCin = w_oihw.shape[0], w_oihw.shape[1]
    assert wCin == Cin, "input must be sliced back to its real channel count"

    cin_pad = _round_up(Cin, 32)                 # => kp is a multiple of 128
    cout_pad = _round_up(Cout, 128)              # lane-dense output stores
    kp = 4 * cin_pad
    Ho, Wo = H // 2, W // 2
    wo_p = _round_up(Wo, 8)                      # sublane-aligned patch/output
    wp_in = _round_up(Wo + 1, 8)                 # sublane-aligned s2d input
    m_pad = B * Ho * wo_p
    m_real = B * Ho * Wo

    x2 = _pad_s2d(x_nhwc, cin_pad, wp_in).astype(jnp.bfloat16)   # bf16 operands
    wm = _weight_matrix(w_oihw, cin_pad, cout_pad).astype(jnp.bfloat16)
    g2 = _pad_vec(gamma, cout_pad)
    bt2 = _pad_vec(beta, cout_pad)

    n_ct = cout_pad // 128
    # The activation block never changes across Cout tiles; single-buffer it
    # when there is more than one grid step so no VMEM is wasted re-buffering.
    act_kwargs = {"pipeline_mode": pl.Buffered(1)} if n_ct > 1 else {}

    kernel = functools.partial(_fc_block_kernel, bsz=B, ho=Ho, wo=Wo,
                               wo_p=wo_p, kp=kp, m_real=m_real)
    y = pl.pallas_call(
        kernel,
        out_shape=jax.ShapeDtypeStruct((m_pad, cout_pad), out_dtype),
        grid_spec=pltpu.PrefetchScalarGridSpec(
            num_scalar_prefetch=0,
            grid=(n_ct,),                              # 128-wide Cout tiles
            in_specs=[
                # activations stay resident across channel tiles
                pl.BlockSpec((B, Ho + 1, wp_in, kp),
                             lambda j: (0, 0, 0, 0), **act_kwargs),
                pl.BlockSpec((4 * kp, 128), lambda j: (0, j)),
                pl.BlockSpec((1, 128), lambda j: (0, j)),
                pl.BlockSpec((1, 128), lambda j: (0, j)),
            ],
            out_specs=pl.BlockSpec((m_pad, 128), lambda j: (0, j)),
            scratch_shapes=[pltpu.VMEM((B, Ho, wo_p, 4 * kp), jnp.bfloat16)],
        ),
        compiler_params=pltpu.CompilerParams(
            # BN needs whole-batch stats, so M stays resident; Cout tiles are
            # independent ("parallel").  At scaled sizes, tile M with a
            # two-pass BN to feed v7x's second TensorCore.
            dimension_semantics=("parallel",),
            # Fits v5e/v6e/v7x scoped-VMEM budgets; raise on v5e/v6e (and keep
            # <= ~48 MiB on v7x's 64 MiB) once M grows.
            vmem_limit_bytes=32 * 1024 * 1024,
        ),
    )(x2, wm, g2, bt2)

    # Drop sublane + lane padding -> real [B, Ho, Wo, Cout] activations only,
    # so the next block's K dimension is not inflated by zero channels.
    return y.reshape(B, Ho, wo_p, cout_pad)[:, :, :Wo, :Cout]


# ------------------------------- model ---------------------------------------

def init_params(filters, key):
    """Deterministic synthetic params (same shapes/inits as the torch module)."""
    params = []
    n_blocks = len(filters) - 1
    for i, (cin, cout) in enumerate(zip(filters[:-1], filters[1:])):
        if i == n_blocks - 1:              # last block doubles output channels
            cout = 2 * cout
        key, k1, k2 = jax.random.split(key, 3)
        bound = (cin * 4 * 4) ** -0.5      # PyTorch Conv2d default init
        w = jax.random.uniform(k1, (cout, cin, 4, 4), jnp.float32, -bound, bound)
        b = jax.random.uniform(k2, (cout,), jnp.float32, -bound, bound)
        # NOTE: the reference never forwards its local use_bn flag, so every
        # block keeps fc_conv_block's default use_bn=True -> BN on all blocks.
        # The conv bias `b` is kept for parameter fidelity but is NOT fed to
        # the kernel: train-mode BN's mean subtraction cancels it exactly.
        params.append({"w": w, "b": b,
                       "gamma": jnp.ones((cout,), jnp.float32),   # BN init
                       "beta": jnp.zeros((cout,), jnp.float32)})
    return params


def full_conv_encoder(x_nchw, params, filters):
    """Forward pass; returns (loc, scale) of the Normal the module builds."""
    x = jnp.transpose(x_nchw, (0, 2, 3, 1))          # NCHW -> NHWC
    for i, p in enumerate(params):
        out_dtype = jnp.float32 if i == len(params) - 1 else jnp.bfloat16
        x = conv_block(x, p["w"], p["gamma"], p["beta"], out_dtype=out_dtype)
    # Reshape(-1, 2*filters[-1]) applied to the NCHW tensor (PyTorch .view).
    z = jnp.transpose(x, (0, 3, 1, 2)).reshape(-1, 2 * filters[-1])
    split = z.shape[-1] // 2
    # TODO(synk): torch.distributions.Normal has no Pallas equivalent; we return
    # its (loc, scale) parameters exactly as the reference passes them (raw).
    return z[:, :split], z[:, split:]


# --------------------------------- driver -------------------------------------

if __name__ == "__main__":
    filters = [4, 8, 16, 32, 32]      # 4 stride-2 blocks: 16 -> 8 -> 4 -> 2 -> 1
    B, C, H, W = 2, filters[0], 16, 16

    key = jax.random.PRNGKey(0)
    key, kx = jax.random.split(key)
    x = jax.random.normal(kx, (B, C, H, W), jnp.float32)
    params = init_params(filters, key)

    fwd = jax.jit(functools.partial(full_conv_encoder, filters=filters))
    loc, scale = fwd(x, params)
    jax.block_until_ready(loc)
    jax.block_until_ready(scale)

    assert loc.shape == (B, filters[-1]), loc.shape
    assert scale.shape == (B, filters[-1]), scale.shape
    print("KERNEL_OK")
</pallas_src>

<mosaic_0001>
module attributes {stable_mosaic.version = 11 : i64} {
  func.func @_fc_block_kernel(%arg0: i32, %arg1: memref<2x9x16x128xbf16, #tpu.memory_space<vmem>>, %arg2: memref<512x128xbf16, #tpu.memory_space<vmem>>, %arg3: memref<1x128xf32, #tpu.memory_space<vmem>>, %arg4: memref<1x128xf32, #tpu.memory_space<vmem>>, %arg5: memref<128x128xbf16, #tpu.memory_space<vmem>>, %arg6: memref<2x8x8x512xbf16, #tpu.memory_space<vmem>>) attributes {dimension_semantics = [#tpu.dimension_semantics<parallel>], iteration_bounds = array<i64: 1>, scalar_prefetch = 0 : i64, scratch_operands = 1 : i64, tpu.core_type = #tpu.core_type<tc>, window_params = [{pipeline_mode = #tpu.pipeline_mode<synchronous>, transform_indices = @transform_0, window_bounds = array<i64: 2, 9, 16, 128>}, {transform_indices = @transform_1, window_bounds = array<i64: 512, 128>}, {transform_indices = @transform_2, window_bounds = array<i64: 1, 128>}, {transform_indices = @transform_3, window_bounds = array<i64: 1, 128>}, {transform_indices = @transform_4, window_bounds = array<i64: 128, 128>}]} {
    %c0 = arith.constant 0 : index
    %c0_0 = arith.constant 0 : index
    %c0_1 = arith.constant 0 : index
    %c0_2 = arith.constant 0 : index
    %0 = vector.load %arg1[%c0, %c0_0, %c0_1, %c0_2] : memref<2x9x16x128xbf16, #tpu.memory_space<vmem>>, vector<2x8x8x128xbf16>
    %c0_3 = arith.constant 0 : index
    %c0_4 = arith.constant 0 : index
    %c0_5 = arith.constant 0 : index
    %c0_6 = arith.constant 0 : index
    %1 = vector.load %arg6[%c0_3, %c0_4, %c0_5, %c0_6] : memref<2x8x8x512xbf16, #tpu.memory_space<vmem>>, vector<2x8x8x128xbf16>
    tpu.vector_store %arg6[%c0_3, %c0_4, %c0_5, %c0_6], %0 {strides = array<i32>} : memref<2x8x8x512xbf16, #tpu.memory_space<vmem>>, vector<2x8x8x128xbf16>,
    %c0_7 = arith.constant 0 : index
    %c0_8 = arith.constant 0 : index
    %c1 = arith.constant 1 : index
    %c0_9 = arith.constant 0 : index
    %2 = vector.load %arg1[%c0_7, %c0_8, %c1, %c0_9] : memref<2x9x16x128xbf16, #tpu.memory_space<vmem>>, vector<2x8x8x128xbf16>
    %c0_10 = arith.constant 0 : index
    %c0_11 = arith.constant 0 : index
    %c0_12 = arith.constant 0 : index
    %c128 = arith.constant 128 : index
    %3 = vector.load %arg6[%c0_10, %c0_11, %c0_12, %c128] : memref<2x8x8x512xbf16, #tpu.memory_space<vmem>>, vector<2x8x8x128xbf16>
    tpu.vector_store %arg6[%c0_10, %c0_11, %c0_12, %c128], %2 {strides = array<i32>} : memref<2x8x8x512xbf16, #tpu.memory_space<vmem>>, vector<2x8x8x128xbf16>,
    %c0_13 = arith.constant 0 : index
    %c1_14 = arith.constant 1 : index
    %c0_15 = arith.constant 0 : index
    %c0_16 = arith.constant 0 : index
    %4 = vector.load %arg1[%c0_13, %c1_14, %c0_15, %c0_16] : memref<2x9x16x128xbf16, #tpu.memory_space<vmem>>, vector<2x8x8x128xbf16>
    %c0_17 = arith.constant 0 : index
    %c0_18 = arith.constant 0 : index
    %c0_19 = arith.constant 0 : index
    %c256 = arith.constant 256 : index
    %5 = vector.load %arg6[%c0_17, %c0_18, %c0_19, %c256] : memref<2x8x8x512xbf16, #tpu.memory_space<vmem>>, vector<2x8x8x128xbf16>
    tpu.vector_store %arg6[%c0_17, %c0_18, %c0_19, %c256], %4 {strides = array<i32>} : memref<2x8x8x512xbf16, #tpu.memory_space<vmem>>, vector<2x8x8x128xbf16>,
    %c0_20 = arith.constant 0 : index
    %c1_21 = arith.constant 1 : index
    %c1_22 = arith.constant 1 : index
    %c0_23 = arith.constant 0 : index
    %6 = vector.load %arg1[%c0_20, %c1_21, %c1_22, %c0_23] : memref<2x9x16x128xbf16, #tpu.memory_space<vmem>>, vector<2x8x8x128xbf16>
    %c0_24 = arith.constant 0 : index
    %c0_25 = arith.constant 0 : index
    %c0_26 = arith.constant 0 : index
    %c384 = arith.constant 384 : index
    %7 = vector.load %arg6[%c0_24, %c0_25, %c0_26, %c384] : memref<2x8x8x512xbf16, #tpu.memory_space<vmem>>, vector<2x8x8x128xbf16>
    tpu.vector_store %arg6[%c0_24, %c0_25, %c0_26, %c384], %6 {strides = array<i32>} : memref<2x8x8x512xbf16, #tpu.memory_space<vmem>>, vector<2x8x8x128xbf16>,
    %c0_27 = arith.constant 0 : index
    %c0_28 = arith.constant 0 : index
    %c0_29 = arith.constant 0 : index
    %c0_30 = arith.constant 0 : index
    %8 = vector.load %arg6[%c0_27, %c0_28, %c0_29, %c0_30] : memref<2x8x8x512xbf16, #tpu.memory_space<vmem>>, vector<2x8x8x512xbf16>
    %9 = vector.shape_cast %8 : vector<2x8x8x512xbf16> to vector<128x512xbf16>
    %c0_31 = arith.constant 0 : index
    %c0_32 = arith.constant 0 : index
    %10 = vector.load %arg2[%c0_31, %c0_32] : memref<512x128xbf16, #tpu.memory_space<vmem>>, vector<512x128xbf16>
    %cst = arith.constant dense<0.000000e+00> : vector<128x128xf32>
    %11 = tpu.matmul %9, %10, %cst {dimension_numbers = #tpu.dot_dimension_numbers<[1], [0], [0], [1], [0, 0, 1, 1], [], []>} : vector<128x512xbf16>, vector<512x128xbf16>, vector<128x128xf32> -> vector<128x128xf32>
    %cst_33 = arith.constant dense<0.000000e+00> : vector<128xf32>
    %12 = vector.multi_reduction <add>, %11, %cst_33 [0] : vector<128x128xf32> to vector<128xf32>
    %13 = vector.shape_cast %12 : vector<128xf32> to vector<1x128xf32>
    %14 = arith.mulf %11, %11 : vector<128x128xf32>
    %cst_34 = arith.constant dense<0.000000e+00> : vector<128xf32>
    %15 = vector.multi_reduction <add>, %14, %cst_34 [0] : vector<128x128xf32> to vector<128xf32>
    %16 = vector.shape_cast %15 : vector<128xf32> to vector<1x128xf32>
    %cst_35 = arith.constant 7.812500e-03 : f32
    %17 = vector.broadcast %cst_35 : f32 to vector<1x128xf32>
    %18 = arith.mulf %13, %17 : vector<1x128xf32>
    %cst_36 = arith.constant 7.812500e-03 : f32
    %19 = vector.broadcast %cst_36 : f32 to vector<1x128xf32>
    %20 = arith.mulf %16, %19 : vector<1x128xf32>
    %21 = arith.mulf %18, %18 : vector<1x128xf32>
    %22 = arith.subf %20, %21 : vector<1x128xf32>
    %cst_37 = arith.constant 0.000000e+00 : f32
    %23 = vector.broadcast %cst_37 : f32 to vector<1x128xf32>
    %24 = arith.maximumf %22, %23 : vector<1x128xf32>
    %25 = vector.broadcast %18 : vector<1x128xf32> to vector<128x128xf32>
    %26 = arith.subf %11, %25 : vector<128x128xf32>
    %cst_38 = arith.constant 9.99999974E-6 : f32
    %27 = vector.broadcast %cst_38 : f32 to vector<1x128xf32>
    %28 = arith.addf %24, %27 : vector<1x128xf32>
    %29 = math.rsqrt %28 : vector<1x128xf32>
    %30 = vector.broadcast %29 : vector<1x128xf32> to vector<128x128xf32>
    %31 = arith.mulf %26, %30 : vector<128x128xf32>
    %c0_39 = arith.constant 0 : index
    %c0_40 = arith.constant 0 : index
    %32 = vector.load %arg3[%c0_39, %c0_40] : memref<1x128xf32, #tpu.memory_space<vmem>>, vector<1x128xf32>
    %33 = vector.broadcast %32 : vector<1x128xf32> to vector<128x128xf32>
    %34 = arith.mulf %31, %33 : vector<128x128xf32>
    %c0_41 = arith.constant 0 : index
    %c0_42 = arith.constant 0 : index
    %35 = vector.load %arg4[%c0_41, %c0_42] : memref<1x128xf32, #tpu.memory_space<vmem>>, vector<1x128xf32>
    %36 = vector.broadcast %35 : vector<1x128xf32> to vector<128x128xf32>
    %37 = arith.addf %34, %36 : vector<128x128xf32>
    %cst_43 = arith.constant 0.000000e+00 : f32
    %38 = vector.broadcast %cst_43 : f32 to vector<128x128xf32>
    %39 = arith.cmpf ogt, %37, %38 : vector<128x128xf32>
    %cst_44 = arith.constant 2.000000e-01 : f32
    %40 = vector.broadcast %cst_44 : f32 to vector<128x128xf32>
    %41 = arith.mulf %40, %37 : vector<128x128xf32>
    %42 = arith.select %39, %37, %41 : vector<128x128xi1>, vector<128x128xf32>
    %43 = arith.truncf %42 : vector<128x128xf32> to vector<128x128xbf16>
    %c0_45 = arith.constant 0 : index
    %c0_46 = arith.constant 0 : index
    %44 = vector.load %arg5[%c0_45, %c0_46] : memref<128x128xbf16, #tpu.memory_space<vmem>>, vector<128x128xbf16>
    tpu.vector_store %arg5[%c0_45, %c0_46], %43 {strides = array<i32>} : memref<128x128xbf16, #tpu.memory_space<vmem>>, vector<128x128xbf16>,
    return
  }
  func.func @transform_0(%arg0: i32) -> (i32, i32, i32, i32) {
    %c0_i32 = arith.constant 0 : i32
    %c0_i32_0 = arith.constant 0 : i32
    %c0_i32_1 = arith.constant 0 : i32
    %c0_i32_2 = arith.constant 0 : i32
    %c0_i32_3 = arith.constant 0 : i32
    return %c0_i32, %c0_i32_0, %c0_i32_1, %c0_i32_2 : i32, i32, i32, i32
  }
  func.func @transform_1(%arg0: i32) -> (i32, i32) {
    %c0_i32 = arith.constant 0 : i32
    %c0_i32_0 = arith.constant 0 : i32
    return %c0_i32, %arg0 : i32, i32
  }
  func.func @transform_2(%arg0: i32) -> (i32, i32) {
    %c0_i32 = arith.constant 0 : i32
    %c0_i32_0 = arith.constant 0 : i32
    return %c0_i32, %arg0 : i32, i32
  }
  func.func @transform_3(%arg0: i32) -> (i32, i32) {
    %c0_i32 = arith.constant 0 : i32
    %c0_i32_0 = arith.constant 0 : i32
    return %c0_i32, %arg0 : i32, i32
  }
  func.func @transform_4(%arg0: i32) -> (i32, i32) {
    %c0_i32 = arith.constant 0 : i32
    %c0_i32_0 = arith.constant 0 : i32
    return %c0_i32, %arg0 : i32, i32
  }
}

module attributes {stable_mosaic.version = 11 : i64} {
  func.func @_fc_block_kernel(%arg0: i32, %arg1: memref<2x5x8x128xbf16, #tpu.memory_space<vmem>>, %arg2: memref<512x128xbf16, #tpu.memory_space<vmem>>, %arg3: memref<1x128xf32, #tpu.memory_space<vmem>>, %arg4: memref<1x128xf32, #tpu.memory_space<vmem>>, %arg5: memref<64x128xbf16, #tpu.memory_space<vmem>>, %arg6: memref<2x4x8x512xbf16, #tpu.memory_space<vmem>>) attributes {dimension_semantics = [#tpu.dimension_semantics<parallel>], iteration_bounds = array<i64: 1>, scalar_prefetch = 0 : i64, scratch_operands = 1 : i64, tpu.core_type = #tpu.core_type<tc>, window_params = [{pipeline_mode = #tpu.pipeline_mode<synchronous>, transform_indices = @transform_0, window_bounds = array<i64: 2, 5, 8, 128>}, {transform_indices = @transform_1, window_bounds = array<i64: 512, 128>}, {transform_indices = @transform_2, window_bounds = array<i64: 1, 128>}, {transform_indices = @transform_3, window_bounds = array<i64: 1, 128>}, {transform_indices = @transform_4, window_bounds = array<i64: 64, 128>}]} {
    %cst = arith.constant 0.000000e+00 : bf16
    %0 = vector.broadcast %cst : bf16 to vector<2x4x4x512xbf16>
    %c0 = arith.constant 0 : index
    %c0_0 = arith.constant 0 : index
    %c4 = arith.constant 4 : index
    %c0_1 = arith.constant 0 : index
    %1 = vector.load %arg6[%c0, %c0_0, %c4, %c0_1] : memref<2x4x8x512xbf16, #tpu.memory_space<vmem>>, vector<2x4x4x512xbf16>
    tpu.vector_store %arg6[%c0, %c0_0, %c4, %c0_1], %0 {strides = array<i32>} : memref<2x4x8x512xbf16, #tpu.memory_space<vmem>>, vector<2x4x4x512xbf16>,
    %c0_2 = arith.constant 0 : index
    %c0_3 = arith.constant 0 : index
    %c0_4 = arith.constant 0 : index
    %c0_5 = arith.constant 0 : index
    %2 = vector.load %arg1[%c0_2, %c0_3, %c0_4, %c0_5] : memref<2x5x8x128xbf16, #tpu.memory_space<vmem>>, vector<2x4x4x128xbf16>
    %c0_6 = arith.constant 0 : index
    %c0_7 = arith.constant 0 : index
    %c0_8 = arith.constant 0 : index
    %c0_9 = arith.constant 0 : index
    %3 = vector.load %arg6[%c0_6, %c0_7, %c0_8, %c0_9] : memref<2x4x8x512xbf16, #tpu.memory_space<vmem>>, vector<2x4x4x128xbf16>
    tpu.vector_store %arg6[%c0_6, %c0_7, %c0_8, %c0_9], %2 {strides = array<i32>} : memref<2x4x8x512xbf16, #tpu.memory_space<vmem>>, vector<2x4x4x128xbf16>,
    %c0_10 = arith.constant 0 : index
    %c0_11 = arith.constant 0 : index
    %c1 = arith.constant 1 : index
    %c0_12 = arith.constant 0 : index
    %4 = vector.load %arg1[%c0_10, %c0_11, %c1, %c0_12] : memref<2x5x8x128xbf16, #tpu.memory_space<vmem>>, vector<2x4x4x128xbf16>
    %c0_13 = arith.constant 0 : index
    %c0_14 = arith.constant 0 : index
    %c0_15 = arith.constant 0 : index
    %c128 = arith.constant 128 : index
    %5 = vector.load %arg6[%c0_13, %c0_14, %c0_15, %c128] : memref<2x4x8x512xbf16, #tpu.memory_space<vmem>>, vector<2x4x4x128xbf16>
    tpu.vector_store %arg6[%c0_13, %c0_14, %c0_15, %c128], %4 {strides = array<i32>} : memref<2x4x8x512xbf16, #tpu.memory_space<vmem>>, vector<2x4x4x128xbf16>,
    %c0_16 = arith.constant 0 : index
    %c1_17 = arith.constant 1 : index
    %c0_18 = arith.constant 0 : index
    %c0_19 = arith.constant 0 : index
    %6 = vector.load %arg1[%c0_16, %c1_17, %c0_18, %c0_19] : memref<2x5x8x128xbf16, #tpu.memory_space<vmem>>, vector<2x4x4x128xbf16>
    %c0_20 = arith.constant 0 : index
    %c0_21 = arith.constant 0 : index
    %c0_22 = arith.constant 0 : index
    %c256 = arith.constant 256 : index
    %7 = vector.load %arg6[%c0_20, %c0_21, %c0_22, %c256] : memref<2x4x8x512xbf16, #tpu.memory_space<vmem>>, vector<2x4x4x128xbf16>
    tpu.vector_store %arg6[%c0_20, %c0_21, %c0_22, %c256], %6 {strides = array<i32>} : memref<2x4x8x512xbf16, #tpu.memory_space<vmem>>, vector<2x4x4x128xbf16>,
    %c0_23 = arith.constant 0 : index
    %c1_24 = arith.constant 1 : index
    %c1_25 = arith.constant 1 : index
    %c0_26 = arith.constant 0 : index
    %8 = vector.load %arg1[%c0_23, %c1_24, %c1_25, %c0_26] : memref<2x5x8x128xbf16, #tpu.memory_space<vmem>>, vector<2x4x4x128xbf16>
    %c0_27 = arith.constant 0 : index
    %c0_28 = arith.constant 0 : index
    %c0_29 = arith.constant 0 : index
    %c384 = arith.constant 384 : index
    %9 = vector.load %arg6[%c0_27, %c0_28, %c0_29, %c384] : memref<2x4x8x512xbf16, #tpu.memory_space<vmem>>, vector<2x4x4x128xbf16>
    tpu.vector_store %arg6[%c0_27, %c0_28, %c0_29, %c384], %8 {strides = array<i32>} : memref<2x4x8x512xbf16, #tpu.memory_space<vmem>>, vector<2x4x4x128xbf16>,
    %c0_30 = arith.constant 0 : index
    %c0_31 = arith.constant 0 : index
    %c0_32 = arith.constant 0 : index
    %c0_33 = arith.constant 0 : index
    %10 = vector.load %arg6[%c0_30, %c0_31, %c0_32, %c0_33] : memref<2x4x8x512xbf16, #tpu.memory_space<vmem>>, vector<2x4x8x512xbf16>
    %11 = vector.shape_cast %10 : vector<2x4x8x512xbf16> to vector<64x512xbf16>
    %c0_34 = arith.constant 0 : index
    %c0_35 = arith.constant 0 : index
    %12 = vector.load %arg2[%c0_34, %c0_35] : memref<512x128xbf16, #tpu.memory_space<vmem>>, vector<512x128xbf16>
    %cst_36 = arith.constant dense<0.000000e+00> : vector<64x128xf32>
    %13 = tpu.matmul %11, %12, %cst_36 {dimension_numbers = #tpu.dot_dimension_numbers<[1], [0], [0], [1], [0, 0, 1, 1], [], []>} : vector<64x512xbf16>, vector<512x128xbf16>, vector<64x128xf32> -> vector<64x128xf32>
    %cst_37 = arith.constant dense<0.000000e+00> : vector<128xf32>
    %14 = vector.multi_reduction <add>, %13, %cst_37 [0] : vector<64x128xf32> to vector<128xf32>
    %15 = vector.shape_cast %14 : vector<128xf32> to vector<1x128xf32>
    %16 = arith.mulf %13, %13 : vector<64x128xf32>
    %cst_38 = arith.constant dense<0.000000e+00> : vector<128xf32>
    %17 = vector.multi_reduction <add>, %16, %cst_38 [0] : vector<64x128xf32> to vector<128xf32>
    %18 = vector.shape_cast %17 : vector<128xf32> to vector<1x128xf32>
    %cst_39 = arith.constant 3.125000e-02 : f32
    %19 = vector.broadcast %cst_39 : f32 to vector<1x128xf32>
    %20 = arith.mulf %15, %19 : vector<1x128xf32>
    %cst_40 = arith.constant 3.125000e-02 : f32
    %21 = vector.broadcast %cst_40 : f32 to vector<1x128xf32>
    %22 = arith.mulf %18, %21 : vector<1x128xf32>
    %23 = arith.mulf %20, %20 : vector<1x128xf32>
    %24 = arith.subf %22, %23 : vector<1x128xf32>
    %cst_41 = arith.constant 0.000000e+00 : f32
    %25 = vector.broadcast %cst_41 : f32 to vector<1x128xf32>
    %26 = arith.maximumf %24, %25 : vector<1x128xf32>
    %27 = vector.broadcast %20 : vector<1x128xf32> to vector<64x128xf32>
    %28 = arith.subf %13, %27 : vector<64x128xf32>
    %cst_42 = arith.constant 9.99999974E-6 : f32
    %29 = vector.broadcast %cst_42 : f32 to vector<1x128xf32>
    %30 = arith.addf %26, %29 : vector<1x128xf32>
    %31 = math.rsqrt %30 : vector<1x128xf32>
    %32 = vector.broadcast %31 : vector<1x128xf32> to vector<64x128xf32>
    %33 = arith.mulf %28, %32 : vector<64x128xf32>
    %c0_43 = arith.constant 0 : index
    %c0_44 = arith.constant 0 : index
    %34 = vector.load %arg3[%c0_43, %c0_44] : memref<1x128xf32, #tpu.memory_space<vmem>>, vector<1x128xf32>
    %35 = vector.broadcast %34 : vector<1x128xf32> to vector<64x128xf32>
    %36 = arith.mulf %33, %35 : vector<64x128xf32>
    %c0_45 = arith.constant 0 : index
    %c0_46 = arith.constant 0 : index
    %37 = vector.load %arg4[%c0_45, %c0_46] : memref<1x128xf32, #tpu.memory_space<vmem>>, vector<1x128xf32>
    %38 = vector.broadcast %37 : vector<1x128xf32> to vector<64x128xf32>
    %39 = arith.addf %36, %38 : vector<64x128xf32>
    %cst_47 = arith.constant 0.000000e+00 : f32
    %40 = vector.broadcast %cst_47 : f32 to vector<64x128xf32>
    %41 = arith.cmpf ogt, %39, %40 : vector<64x128xf32>
    %cst_48 = arith.constant 2.000000e-01 : f32
    %42 = vector.broadcast %cst_48 : f32 to vector<64x128xf32>
    %43 = arith.mulf %42, %39 : vector<64x128xf32>
    %44 = arith.select %41, %39, %43 : vector<64x128xi1>, vector<64x128xf32>
    %45 = arith.truncf %44 : vector<64x128xf32> to vector<64x128xbf16>
    %c0_49 = arith.constant 0 : index
    %c0_50 = arith.constant 0 : index
    %46 = vector.load %arg5[%c0_49, %c0_50] : memref<64x128xbf16, #tpu.memory_space<vmem>>, vector<64x128xbf16>
    tpu.vector_store %arg5[%c0_49, %c0_50], %45 {strides = array<i32>} : memref<64x128xbf16, #tpu.memory_space<vmem>>, vector<64x128xbf16>,
    return
  }
  func.func @transform_0(%arg0: i32) -> (i32, i32, i32, i32) {
    %c0_i32 = arith.constant 0 : i32
    %c0_i32_0 = arith.constant 0 : i32
    %c0_i32_1 = arith.constant 0 : i32
    %c0_i32_2 = arith.constant 0 : i32
    %c0_i32_3 = arith.constant 0 : i32
    return %c0_i32, %c0_i32_0, %c0_i32_1, %c0_i32_2 : i32, i32, i32, i32
  }
  func.func @transform_1(%arg0: i32) -> (i32, i32) {
    %c0_i32 = arith.constant 0 : i32
    %c0_i32_0 = arith.constant 0 : i32
    return %c0_i32, %arg0 : i32, i32
  }
  func.func @transform_2(%arg0: i32) -> (i32, i32) {
    %c0_i32 = arith.constant 0 : i32
    %c0_i32_0 = arith.constant 0 : i32
    return %c0_i32, %arg0 : i32, i32
  }
  func.func @transform_3(%arg0: i32) -> (i32, i32) {
    %c0_i32 = arith.constant 0 : i32
    %c0_i32_0 = arith.constant 0 : i32
    return %c0_i32, %arg0 : i32, i32
  }
  func.func @transform_4(%arg0: i32) -> (i32, i32) {
    %c0_i32 = arith.constant 0 : i32
    %c0_i32_0 = arith.constant 0 : i32
    return %c0_i32, %arg0 : i32, i32
  }
}

module attributes {stable_mosaic.version = 11 : i64} {
  func.func @_fc_block_kernel(%arg0: i32, %arg1: memref<2x3x8x128xbf16, #tpu.memory_space<vmem>>, %arg2: memref<512x128xbf16, #tpu.memory_space<vmem>>, %arg3: memref<1x128xf32, #tpu.memory_space<vmem>>, %arg4: memref<1x128xf32, #tpu.memory_space<vmem>>, %arg5: memref<32x128xbf16, #tpu.memory_space<vmem>>, %arg6: memref<2x2x8x512xbf16, #tpu.memory_space<vmem>>) attributes {dimension_semantics = [#tpu.dimension_semantics<parallel>], iteration_bounds = array<i64: 1>, scalar_prefetch = 0 : i64, scratch_operands = 1 : i64, tpu.core_type = #tpu.core_type<tc>, window_params = [{pipeline_mode = #tpu.pipeline_mode<synchronous>, transform_indices = @transform_0, window_bounds = array<i64: 2, 3, 8, 128>}, {transform_indices = @transform_1, window_bounds = array<i64: 512, 128>}, {transform_indices = @transform_2, window_bounds = array<i64: 1, 128>}, {transform_indices = @transform_3, window_bounds = array<i64: 1, 128>}, {transform_indices = @transform_4, window_bounds = array<i64: 32, 128>}]} {
    %cst = arith.constant 0.000000e+00 : bf16
    %0 = vector.broadcast %cst : bf16 to vector<2x2x6x512xbf16>
    %c0 = arith.constant 0 : index
    %c0_0 = arith.constant 0 : index
    %c2 = arith.constant 2 : index
    %c0_1 = arith.constant 0 : index
    %1 = vector.load %arg6[%c0, %c0_0, %c2, %c0_1] : memref<2x2x8x512xbf16, #tpu.memory_space<vmem>>, vector<2x2x6x512xbf16>
    tpu.vector_store %arg6[%c0, %c0_0, %c2, %c0_1], %0 {strides = array<i32>} : memref<2x2x8x512xbf16, #tpu.memory_space<vmem>>, vector<2x2x6x512xbf16>,
    %c0_2 = arith.constant 0 : index
    %c0_3 = arith.constant 0 : index
    %c0_4 = arith.constant 0 : index
    %c0_5 = arith.constant 0 : index
    %2 = vector.load %arg1[%c0_2, %c0_3, %c0_4, %c0_5] : memref<2x3x8x128xbf16, #tpu.memory_space<vmem>>, vector<2x2x2x128xbf16>
    %c0_6 = arith.constant 0 : index
    %c0_7 = arith.constant 0 : index
    %c0_8 = arith.constant 0 : index
    %c0_9 = arith.constant 0 : index
    %3 = vector.load %arg6[%c0_6, %c0_7, %c0_8, %c0_9] : memref<2x2x8x512xbf16, #tpu.memory_space<vmem>>, vector<2x2x2x128xbf16>
    tpu.vector_store %arg6[%c0_6, %c0_7, %c0_8, %c0_9], %2 {strides = array<i32>} : memref<2x2x8x512xbf16, #tpu.memory_space<vmem>>, vector<2x2x2x128xbf16>,
    %c0_10 = arith.constant 0 : index
    %c0_11 = arith.constant 0 : index
    %c1 = arith.constant 1 : index
    %c0_12 = arith.constant 0 : index
    %4 = vector.load %arg1[%c0_10, %c0_11, %c1, %c0_12] : memref<2x3x8x128xbf16, #tpu.memory_space<vmem>>, vector<2x2x2x128xbf16>
    %c0_13 = arith.constant 0 : index
    %c0_14 = arith.constant 0 : index
    %c0_15 = arith.constant 0 : index
    %c128 = arith.constant 128 : index
    %5 = vector.load %arg6[%c0_13, %c0_14, %c0_15, %c128] : memref<2x2x8x512xbf16, #tpu.memory_space<vmem>>, vector<2x2x2x128xbf16>
    tpu.vector_store %arg6[%c0_13, %c0_14, %c0_15, %c128], %4 {strides = array<i32>} : memref<2x2x8x512xbf16, #tpu.memory_space<vmem>>, vector<2x2x2x128xbf16>,
    %c0_16 = arith.constant 0 : index
    %c1_17 = arith.constant 1 : index
    %c0_18 = arith.constant 0 : index
    %c0_19 = arith.constant 0 : index
    %6 = vector.load %arg1[%c0_16, %c1_17, %c0_18, %c0_19] : memref<2x3x8x128xbf16, #tpu.memory_space<vmem>>, vector<2x2x2x128xbf16>
    %c0_20 = arith.constant 0 : index
    %c0_21 = arith.constant 0 : index
    %c0_22 = arith.constant 0 : index
    %c256 = arith.constant 256 : index
    %7 = vector.load %arg6[%c0_20, %c0_21, %c0_22, %c256] : memref<2x2x8x512xbf16, #tpu.memory_space<vmem>>, vector<2x2x2x128xbf16>
    tpu.vector_store %arg6[%c0_20, %c0_21, %c0_22, %c256], %6 {strides = array<i32>} : memref<2x2x8x512xbf16, #tpu.memory_space<vmem>>, vector<2x2x2x128xbf16>,
    %c0_23 = arith.constant 0 : index
    %c1_24 = arith.constant 1 : index
    %c1_25 = arith.constant 1 : index
    %c0_26 = arith.constant 0 : index
    %8 = vector.load %arg1[%c0_23, %c1_24, %c1_25, %c0_26] : memref<2x3x8x128xbf16, #tpu.memory_space<vmem>>, vector<2x2x2x128xbf16>
    %c0_27 = arith.constant 0 : index
    %c0_28 = arith.constant 0 : index
    %c0_29 = arith.constant 0 : index
    %c384 = arith.constant 384 : index
    %9 = vector.load %arg6[%c0_27, %c0_28, %c0_29, %c384] : memref<2x2x8x512xbf16, #tpu.memory_space<vmem>>, vector<2x2x2x128xbf16>
    tpu.vector_store %arg6[%c0_27, %c0_28, %c0_29, %c384], %8 {strides = array<i32>} : memref<2x2x8x512xbf16, #tpu.memory_space<vmem>>, vector<2x2x2x128xbf16>,
    %c0_30 = arith.constant 0 : index
    %c0_31 = arith.constant 0 : index
    %c0_32 = arith.constant 0 : index
    %c0_33 = arith.constant 0 : index
    %10 = vector.load %arg6[%c0_30, %c0_31, %c0_32, %c0_33] : memref<2x2x8x512xbf16, #tpu.memory_space<vmem>>, vector<2x2x8x512xbf16>
    %11 = vector.shape_cast %10 : vector<2x2x8x512xbf16> to vector<32x512xbf16>
    %c0_34 = arith.constant 0 : index
    %c0_35 = arith.constant 0 : index
    %12 = vector.load %arg2[%c0_34, %c0_35] : memref<512x128xbf16, #tpu.memory_space<vmem>>, vector<512x128xbf16>
    %cst_36 = arith.constant dense<0.000000e+00> : vector<32x128xf32>
    %13 = tpu.matmul %11, %12, %cst_36 {dimension_numbers = #tpu.dot_dimension_numbers<[1], [0], [0], [1], [0, 0, 1, 1], [], []>} : vector<32x512xbf16>, vector<512x128xbf16>, vector<32x128xf32> -> vector<32x128xf32>
    %cst_37 = arith.constant dense<0.000000e+00> : vector<128xf32>
    %14 = vector.multi_reduction <add>, %13, %cst_37 [0] : vector<32x128xf32> to vector<128xf32>
    %15 = vector.shape_cast %14 : vector<128xf32> to vector<1x128xf32>
    %16 = arith.mulf %13, %13 : vector<32x128xf32>
    %cst_38 = arith.constant dense<0.000000e+00> : vector<128xf32>
    %17 = vector.multi_reduction <add>, %16, %cst_38 [0] : vector<32x128xf32> to vector<128xf32>
    %18 = vector.shape_cast %17 : vector<128xf32> to vector<1x128xf32>
    %cst_39 = arith.constant 1.250000e-01 : f32
    %19 = vector.broadcast %cst_39 : f32 to vector<1x128xf32>
    %20 = arith.mulf %15, %19 : vector<1x128xf32>
    %cst_40 = arith.constant 1.250000e-01 : f32
    %21 = vector.broadcast %cst_40 : f32 to vector<1x128xf32>
    %22 = arith.mulf %18, %21 : vector<1x128xf32>
    %23 = arith.mulf %20, %20 : vector<1x128xf32>
    %24 = arith.subf %22, %23 : vector<1x128xf32>
    %cst_41 = arith.constant 0.000000e+00 : f32
    %25 = vector.broadcast %cst_41 : f32 to vector<1x128xf32>
    %26 = arith.maximumf %24, %25 : vector<1x128xf32>
    %27 = vector.broadcast %20 : vector<1x128xf32> to vector<32x128xf32>
    %28 = arith.subf %13, %27 : vector<32x128xf32>
    %cst_42 = arith.constant 9.99999974E-6 : f32
    %29 = vector.broadcast %cst_42 : f32 to vector<1x128xf32>
    %30 = arith.addf %26, %29 : vector<1x128xf32>
    %31 = math.rsqrt %30 : vector<1x128xf32>
    %32 = vector.broadcast %31 : vector<1x128xf32> to vector<32x128xf32>
    %33 = arith.mulf %28, %32 : vector<32x128xf32>
    %c0_43 = arith.constant 0 : index
    %c0_44 = arith.constant 0 : index
    %34 = vector.load %arg3[%c0_43, %c0_44] : memref<1x128xf32, #tpu.memory_space<vmem>>, vector<1x128xf32>
    %35 = vector.broadcast %34 : vector<1x128xf32> to vector<32x128xf32>
    %36 = arith.mulf %33, %35 : vector<32x128xf32>
    %c0_45 = arith.constant 0 : index
    %c0_46 = arith.constant 0 : index
    %37 = vector.load %arg4[%c0_45, %c0_46] : memref<1x128xf32, #tpu.memory_space<vmem>>, vector<1x128xf32>
    %38 = vector.broadcast %37 : vector<1x128xf32> to vector<32x128xf32>
    %39 = arith.addf %36, %38 : vector<32x128xf32>
    %cst_47 = arith.constant 0.000000e+00 : f32
    %40 = vector.broadcast %cst_47 : f32 to vector<32x128xf32>
    %41 = arith.cmpf ogt, %39, %40 : vector<32x128xf32>
    %cst_48 = arith.constant 2.000000e-01 : f32
    %42 = vector.broadcast %cst_48 : f32 to vector<32x128xf32>
    %43 = arith.mulf %42, %39 : vector<32x128xf32>
    %44 = arith.select %41, %39, %43 : vector<32x128xi1>, vector<32x128xf32>
    %45 = arith.truncf %44 : vector<32x128xf32> to vector<32x128xbf16>
    %c0_49 = arith.constant 0 : index
    %c0_50 = arith.constant 0 : index
    %46 = vector.load %arg5[%c0_49, %c0_50] : memref<32x128xbf16, #tpu.memory_space<vmem>>, vector<32x128xbf16>
    tpu.vector_store %arg5[%c0_49, %c0_50], %45 {strides = array<i32>} : memref<32x128xbf16, #tpu.memory_space<vmem>>, vector<32x128xbf16>,
    return
  }
  func.func @transform_0(%arg0: i32) -> (i32, i32, i32, i32) {
    %c0_i32 = arith.constant 0 : i32
    %c0_i32_0 = arith.constant 0 : i32
    %c0_i32_1 = arith.constant 0 : i32
    %c0_i32_2 = arith.constant 0 : i32
    %c0_i32_3 = arith.constant 0 : i32
    return %c0_i32, %c0_i32_0, %c0_i32_1, %c0_i32_2 : i32, i32, i32, i32
  }
  func.func @transform_1(%arg0: i32) -> (i32, i32) {
    %c0_i32 = arith.constant 0 : i32
    %c0_i32_0 = arith.constant 0 : i32
    return %c0_i32, %arg0 : i32, i32
  }
  func.func @transform_2(%arg0: i32) -> (i32, i32) {
    %c0_i32 = arith.constant 0 : i32
    %c0_i32_0 = arith.constant 0 : i32
    return %c0_i32, %arg0 : i32, i32
  }
  func.func @transform_3(%arg0: i32) -> (i32, i32) {
    %c0_i32 = arith.constant 0 : i32
    %c0_i32_0 = arith.constant 0 : i32
    return %c0_i32, %arg0 : i32, i32
  }
  func.func @transform_4(%arg0: i32) -> (i32, i32) {
    %c0_i32 = arith.constant 0 : i32
    %c0_i32_0 = arith.constant 0 : i32
    return %c0_i32, %arg0 : i32, i32
  }
}

module attributes {stable_mosaic.version = 11 : i64} {
  func.func @_fc_block_kernel(%arg0: i32, %arg1: memref<2x2x8x128xbf16, #tpu.memory_space<vmem>>, %arg2: memref<512x128xbf16, #tpu.memory_space<vmem>>, %arg3: memref<1x128xf32, #tpu.memory_space<vmem>>, %arg4: memref<1x128xf32, #tpu.memory_space<vmem>>, %arg5: memref<16x128xf32, #tpu.memory_space<vmem>>, %arg6: memref<2x1x8x512xbf16, #tpu.memory_space<vmem>>) attributes {dimension_semantics = [#tpu.dimension_semantics<parallel>], iteration_bounds = array<i64: 1>, scalar_prefetch = 0 : i64, scratch_operands = 1 : i64, tpu.core_type = #tpu.core_type<tc>, window_params = [{pipeline_mode = #tpu.pipeline_mode<synchronous>, transform_indices = @transform_0, window_bounds = array<i64: 2, 2, 8, 128>}, {transform_indices = @transform_1, window_bounds = array<i64: 512, 128>}, {transform_indices = @transform_2, window_bounds = array<i64: 1, 128>}, {transform_indices = @transform_3, window_bounds = array<i64: 1, 128>}, {transform_indices = @transform_4, window_bounds = array<i64: 16, 128>}]} {
    %cst = arith.constant 0.000000e+00 : bf16
    %0 = vector.broadcast %cst : bf16 to vector<2x1x7x512xbf16>
    %c0 = arith.constant 0 : index
    %c0_0 = arith.constant 0 : index
    %c1 = arith.constant 1 : index
    %c0_1 = arith.constant 0 : index
    %1 = vector.load %arg6[%c0, %c0_0, %c1, %c0_1] : memref<2x1x8x512xbf16, #tpu.memory_space<vmem>>, vector<2x1x7x512xbf16>
    tpu.vector_store %arg6[%c0, %c0_0, %c1, %c0_1], %0 {strides = array<i32>} : memref<2x1x8x512xbf16, #tpu.memory_space<vmem>>, vector<2x1x7x512xbf16>,
    %c0_2 = arith.constant 0 : index
    %c0_3 = arith.constant 0 : index
    %c0_4 = arith.constant 0 : index
    %c0_5 = arith.constant 0 : index
    %2 = vector.load %arg1[%c0_2, %c0_3, %c0_4, %c0_5] : memref<2x2x8x128xbf16, #tpu.memory_space<vmem>>, vector<2x1x1x128xbf16>
    %c0_6 = arith.constant 0 : index
    %c0_7 = arith.constant 0 : index
    %c0_8 = arith.constant 0 : index
    %c0_9 = arith.constant 0 : index
    %3 = vector.load %arg6[%c0_6, %c0_7, %c0_8, %c0_9] : memref<2x1x8x512xbf16, #tpu.memory_space<vmem>>, vector<2x1x1x128xbf16>
    tpu.vector_store %arg6[%c0_6, %c0_7, %c0_8, %c0_9], %2 {strides = array<i32>} : memref<2x1x8x512xbf16, #tpu.memory_space<vmem>>, vector<2x1x1x128xbf16>,
    %c0_10 = arith.constant 0 : index
    %c0_11 = arith.constant 0 : index
    %c1_12 = arith.constant 1 : index
    %c0_13 = arith.constant 0 : index
    %4 = vector.load %arg1[%c0_10, %c0_11, %c1_12, %c0_13] : memref<2x2x8x128xbf16, #tpu.memory_space<vmem>>, vector<2x1x1x128xbf16>
    %c0_14 = arith.constant 0 : index
    %c0_15 = arith.constant 0 : index
    %c0_16 = arith.constant 0 : index
    %c128 = arith.constant 128 : index
    %5 = vector.load %arg6[%c0_14, %c0_15, %c0_16, %c128] : memref<2x1x8x512xbf16, #tpu.memory_space<vmem>>, vector<2x1x1x128xbf16>
    tpu.vector_store %arg6[%c0_14, %c0_15, %c0_16, %c128], %4 {strides = array<i32>} : memref<2x1x8x512xbf16, #tpu.memory_space<vmem>>, vector<2x1x1x128xbf16>,
    %c0_17 = arith.constant 0 : index
    %c1_18 = arith.constant 1 : index
    %c0_19 = arith.constant 0 : index
    %c0_20 = arith.constant 0 : index
    %6 = vector.load %arg1[%c0_17, %c1_18, %c0_19, %c0_20] : memref<2x2x8x128xbf16, #tpu.memory_space<vmem>>, vector<2x1x1x128xbf16>
    %c0_21 = arith.constant 0 : index
    %c0_22 = arith.constant 0 : index
    %c0_23 = arith.constant 0 : index
    %c256 = arith.constant 256 : index
    %7 = vector.load %arg6[%c0_21, %c0_22, %c0_23, %c256] : memref<2x1x8x512xbf16, #tpu.memory_space<vmem>>, vector<2x1x1x128xbf16>
    tpu.vector_store %arg6[%c0_21, %c0_22, %c0_23, %c256], %6 {strides = array<i32>} : memref<2x1x8x512xbf16, #tpu.memory_space<vmem>>, vector<2x1x1x128xbf16>,
    %c0_24 = arith.constant 0 : index
    %c1_25 = arith.constant 1 : index
    %c1_26 = arith.constant 1 : index
    %c0_27 = arith.constant 0 : index
    %8 = vector.load %arg1[%c0_24, %c1_25, %c1_26, %c0_27] : memref<2x2x8x128xbf16, #tpu.memory_space<vmem>>, vector<2x1x1x128xbf16>
    %c0_28 = arith.constant 0 : index
    %c0_29 = arith.constant 0 : index
    %c0_30 = arith.constant 0 : index
    %c384 = arith.constant 384 : index
    %9 = vector.load %arg6[%c0_28, %c0_29, %c0_30, %c384] : memref<2x1x8x512xbf16, #tpu.memory_space<vmem>>, vector<2x1x1x128xbf16>
    tpu.vector_store %arg6[%c0_28, %c0_29, %c0_30, %c384], %8 {strides = array<i32>} : memref<2x1x8x512xbf16, #tpu.memory_space<vmem>>, vector<2x1x1x128xbf16>,
    %c0_31 = arith.constant 0 : index
    %c0_32 = arith.constant 0 : index
    %c0_33 = arith.constant 0 : index
    %c0_34 = arith.constant 0 : index
    %10 = vector.load %arg6[%c0_31, %c0_32, %c0_33, %c0_34] : memref<2x1x8x512xbf16, #tpu.memory_space<vmem>>, vector<2x1x8x512xbf16>
    %11 = vector.shape_cast %10 : vector<2x1x8x512xbf16> to vector<16x512xbf16>
    %c0_35 = arith.constant 0 : index
    %c0_36 = arith.constant 0 : index
    %12 = vector.load %arg2[%c0_35, %c0_36] : memref<512x128xbf16, #tpu.memory_space<vmem>>, vector<512x128xbf16>
    %cst_37 = arith.constant dense<0.000000e+00> : vector<16x128xf32>
    %13 = tpu.matmul %11, %12, %cst_37 {dimension_numbers = #tpu.dot_dimension_numbers<[1], [0], [0], [1], [0, 0, 1, 1], [], []>} : vector<16x512xbf16>, vector<512x128xbf16>, vector<16x128xf32> -> vector<16x128xf32>
    %cst_38 = arith.constant dense<0.000000e+00> : vector<128xf32>
    %14 = vector.multi_reduction <add>, %13, %cst_38 [0] : vector<16x128xf32> to vector<128xf32>
    %15 = vector.shape_cast %14 : vector<128xf32> to vector<1x128xf32>
    %16 = arith.mulf %13, %13 : vector<16x128xf32>
    %cst_39 = arith.constant dense<0.000000e+00> : vector<128xf32>
    %17 = vector.multi_reduction <add>, %16, %cst_39 [0] : vector<16x128xf32> to vector<128xf32>
    %18 = vector.shape_cast %17 : vector<128xf32> to vector<1x128xf32>
    %cst_40 = arith.constant 5.000000e-01 : f32
    %19 = vector.broadcast %cst_40 : f32 to vector<1x128xf32>
    %20 = arith.mulf %15, %19 : vector<1x128xf32>
    %cst_41 = arith.constant 5.000000e-01 : f32
    %21 = vector.broadcast %cst_41 : f32 to vector<1x128xf32>
    %22 = arith.mulf %18, %21 : vector<1x128xf32>
    %23 = arith.mulf %20, %20 : vector<1x128xf32>
    %24 = arith.subf %22, %23 : vector<1x128xf32>
    %cst_42 = arith.constant 0.000000e+00 : f32
    %25 = vector.broadcast %cst_42 : f32 to vector<1x128xf32>
    %26 = arith.maximumf %24, %25 : vector<1x128xf32>
    %27 = vector.broadcast %20 : vector<1x128xf32> to vector<16x128xf32>
    %28 = arith.subf %13, %27 : vector<16x128xf32>
    %cst_43 = arith.constant 9.99999974E-6 : f32
    %29 = vector.broadcast %cst_43 : f32 to vector<1x128xf32>
    %30 = arith.addf %26, %29 : vector<1x128xf32>
    %31 = math.rsqrt %30 : vector<1x128xf32>
    %32 = vector.broadcast %31 : vector<1x128xf32> to vector<16x128xf32>
    %33 = arith.mulf %28, %32 : vector<16x128xf32>
    %c0_44 = arith.constant 0 : index
    %c0_45 = arith.constant 0 : index
    %34 = vector.load %arg3[%c0_44, %c0_45] : memref<1x128xf32, #tpu.memory_space<vmem>>, vector<1x128xf32>
    %35 = vector.broadcast %34 : vector<1x128xf32> to vector<16x128xf32>
    %36 = arith.mulf %33, %35 : vector<16x128xf32>
    %c0_46 = arith.constant 0 : index
    %c0_47 = arith.constant 0 : index
    %37 = vector.load %arg4[%c0_46, %c0_47] : memref<1x128xf32, #tpu.memory_space<vmem>>, vector<1x128xf32>
    %38 = vector.broadcast %37 : vector<1x128xf32> to vector<16x128xf32>
    %39 = arith.addf %36, %38 : vector<16x128xf32>
    %cst_48 = arith.constant 0.000000e+00 : f32
    %40 = vector.broadcast %cst_48 : f32 to vector<16x128xf32>
    %41 = arith.cmpf ogt, %39, %40 : vector<16x128xf32>
    %cst_49 = arith.constant 2.000000e-01 : f32
    %42 = vector.broadcast %cst_49 : f32 to vector<16x128xf32>
    %43 = arith.mulf %42, %39 : vector<16x128xf32>
    %44 = arith.select %41, %39, %43 : vector<16x128xi1>, vector<16x128xf32>
    %c0_50 = arith.constant 0 : index
    %c0_51 = arith.constant 0 : index
    %45 = vector.load %arg5[%c0_50, %c0_51] : memref<16x128xf32, #tpu.memory_space<vmem>>, vector<16x128xf32>
    tpu.vector_store %arg5[%c0_50, %c0_51], %44 {strides = array<i32>} : memref<16x128xf32, #tpu.memory_space<vmem>>, vector<16x128xf32>,
    return
  }
  func.func @transform_0(%arg0: i32) -> (i32, i32, i32, i32) {
    %c0_i32 = arith.constant 0 : i32
    %c0_i32_0 = arith.constant 0 : i32
    %c0_i32_1 = arith.constant 0 : i32
    %c0_i32_2 = arith.constant 0 : i32
    %c0_i32_3 = arith.constant 0 : i32
    return %c0_i32, %c0_i32_0, %c0_i32_1, %c0_i32_2 : i32, i32, i32, i32
  }
  func.func @transform_1(%arg0: i32) -> (i32, i32) {
    %c0_i32 = arith.constant 0 : i32
    %c0_i32_0 = arith.constant 0 : i32
    return %c0_i32, %arg0 : i32, i32
  }
  func.func @transform_2(%arg0: i32) -> (i32, i32) {
    %c0_i32 = arith.constant 0 : i32
    %c0_i32_0 = arith.constant 0 : i32
    return %c0_i32, %arg0 : i32, i32
  }
  func.func @transform_3(%arg0: i32) -> (i32, i32) {
    %c0_i32 = arith.constant 0 : i32
    %c0_i32_0 = arith.constant 0 : i32
    return %c0_i32, %arg0 : i32, i32
  }
  func.func @transform_4(%arg0: i32) -> (i32, i32) {
    %c0_i32 = arith.constant 0 : i32
    %c0_i32_0 = arith.constant 0 : i32
    return %c0_i32, %arg0 : i32, i32
  }
}

</mosaic_0001>

<bundles_post_ra>
// kernel: full_conv_encoder.4
= control target key start
LH: loop header
LB: loop body
LE: loop exit
PB: predicated region body
PF: predicated region fallthrough
CT: control target
= control target key end

     0   :  { %vm82_vm0 = vsmask.f32 3328  ;;  %vm83_vm1 = vsmask.f32 7440  ;;  %s2597_s1 = inlined_call_operand.vmem [shape: bf16[512,128], index: 1, kind: input, shape index: {}]   ;;  %s2598_s0 = inlined_call_operand.vmem [shape: bf16[2,9,16,128], index: 0, kind: input, shape index: {}]   ;;  %s2599_s2 = inlined_call_operand.vmem [shape: f32[1,128], index: 2, kind: input, shape index: {}]   ;;  %s2600_s3 = inlined_call_operand.vmem [shape: f32[1,128], index: 3, kind: input, shape index: {}]   ;;  %s2601_s4 = inlined_call_operand.vmem [shape: bf16[128,128], index: 4, kind: output, shape index: {}]  }
   0x1   :  { %v1900_v0 = vld [vmem:[%s2597_s1 + $0x78] sm:$0xff]   ;;  %v1904_v4 = vld [vmem:[%s2597_s1 + $0x70] sm:$0xff]   ;;  %v1908_v8 = vld [vmem:[%s2597_s1 + $0x68] sm:$0xff]  }
   0x2   :  { %v1901_v1 = vld [vmem:[%s2597_s1 + $0xf8] sm:$0xff]   ;;  %1772 = vmatprep.subr.bf16.mxu0 %v1900_v0  ;;  %v1905_v5 = vld [vmem:[%s2597_s1 + $0xf0] sm:$0xff]   ;;  %v1909_v9 = vld [vmem:[%s2597_s1 + $0xe8] sm:$0xff]  }
   0x3   :  { %v1902_v2 = vld [vmem:[%s2597_s1 + $0x38] sm:$0xff]   ;;  %1836 = vmatprep.subr.bf16.mxu1 %v1901_v1  ;;  %v1906_v6 = vld [vmem:[%s2597_s1 + $0x30] sm:$0xff]   ;;  %v1910_v10 = vld [vmem:[%s2597_s1 + $0x28] sm:$0xff]  }
   0x4   :  { %v1903_v3 = vld [vmem:[%s2597_s1 + $0xb8] sm:$0xff]   ;;  %1773 = vmatpush3.bf16.msra.mxu0 %v1902_v2  ;;  %v1907_v7 = vld [vmem:[%s2597_s1 + $0xb0] sm:$0xff]   ;;  %v1911_v11 = vld [vmem:[%s2597_s1 + $0xa8] sm:$0xff]  }
   0x5   :  { %1837 = vmatpush3.bf16.msra.mxu1 %v1903_v3  ;;  %1774 = vmatprep.subr.bf16.mxu0 %v1904_v4  ;;  %v1912_v12 = vld [vmem:[%s2597_s1 + $0x60] sm:$0xff]   ;;  %v1916_v16 = vld [vmem:[%s2597_s1 + $0x58] sm:$0xff]   ;;  %v1920_v20 = vld [vmem:[%s2597_s1 + $0x50] sm:$0xff]  }
   0x6   :  { %1838 = vmatprep.subr.bf16.mxu1 %v1905_v5  ;;  %v1913_v13 = vld [vmem:[%s2597_s1 + $0xe0] sm:$0xff]   ;;  %v1917_v17 = vld [vmem:[%s2597_s1 + $0xd8] sm:$0xff]   ;;  %v1921_v21 = vld [vmem:[%s2597_s1 + $0xd0] sm:$0xff]  }
   0x7   :  { %v1914_v14 = vld [vmem:[%s2597_s1 + $0x20] sm:$0xff]   ;;  %v1918_v18 = vld [vmem:[%s2597_s1 + $0x18] sm:$0xff]   ;;  %v1922_v22 = vld [vmem:[%s2597_s1 + $0x10] sm:$0xff]  }
   0x8   :  { %1775 = vmatpush3.bf16.msra.mxu0 %v1906_v6  ;;  %v1915_v15 = vld [vmem:[%s2597_s1 + $0xa0] sm:$0xff]   ;;  %v1919_v19 = vld [vmem:[%s2597_s1 + $0x98] sm:$0xff]   ;;  %v1923_v23 = vld [vmem:[%s2597_s1 + $0x90] sm:$0xff]  }
   0x9   :  { %1839 = vmatpush3.bf16.msra.mxu1 %v1907_v7  ;;  %1776 = vmatprep.subr.bf16.mxu0 %v1908_v8  ;;  %v1924_v24 = vld [vmem:[%s2597_s1 + $0x48] sm:$0xff]   ;;  %v1928_v28 = vld [vmem:[%s2597_s1 + $0x40] sm:$0xff]   ;;  %v1580_v45 = vld [vmem:[%s2598_s0 + $0x10] sm:$0xf] }
   0xa   :  { %1840 = vmatprep.subr.bf16.mxu1 %v1909_v9  ;;  %v1925_v25 = vld [vmem:[%s2597_s1 + $0xc8] sm:$0xff]   ;;  %v1929_v29 = vld [vmem:[%s2597_s1 + $0xc0] sm:$0xff]   ;;  %359 = vst [vmem:[#allocation2 + $0x18] sm:$0xf] %v1580_v45  ;;  %v1597_v54 = vld [vmem:[%s2598_s0 + $0x10] sm:$0xf] }
   0xb   :  { %v1926_v26 = vld [vmem:[%s2597_s1 + $0x8] sm:$0xff]   ;;  %v1930_v30 = vld [vmem:[%s2597_s1] sm:$0xff]   ;;  %v1598_v55 = vld [vmem:[%s2598_s0 + $0x14] sm:$0x1]  ;;  %v421_v63 = vshrl.u32 %v1597_v54, 16  ;;  %v424_v0 = vshll.u32 %v1597_v54, 16 }
   0xc   :  { %1777 = vmatpush3.bf16.msra.mxu0 %v1910_v10  ;;  %v1927_v27 = vld [vmem:[%s2597_s1 + $0x88] sm:$0xff]   ;;  %v1931_v31 = vld [vmem:[%s2597_s1 + $0x80] sm:$0xff]   ;;  %v20_v60 = vld [vmem:[%s2598_s0 + $0x10] sm:$0xf]  ;;  %v430_v1 = vshll.u32 %v1598_v55, 16 }
   0xd   :  { %1841 = vmatpush3.bf16.msra.mxu1 %v1911_v11  ;;  %1778 = vmatprep.subr.bf16.mxu0 %v1912_v12  ;;  %v18_v32 = vld [vmem:[%s2598_s0] sm:$0xf]  ;;  %v19_v33 = vld [vmem:[%s2598_s0 + $0x8] sm:$0xf]  ;;  %v51_v35 = vld [vmem:[%s2598_s0 + $0x4] sm:$0x1] }
   0xe   :  { %1842 = vmatprep.subr.bf16.mxu1 %v1913_v13  ;;  %v50_v34 = vld [vmem:[%s2598_s0] sm:$0xf]  ;;  %34 = vst [vmem:[#allocation2] sm:$0xf] %v18_v32  ;;  %35 = vst [vmem:[#allocation2 + $0x10] sm:$0xf] %v19_v33 }
   0xf   :  { %v52_v36 = vld [vmem:[%s2598_s0 + $0x8] sm:$0xf]  ;;  %v53_v37 = vld [vmem:[%s2598_s0 + $0xc] sm:$0x1]  ;;  %v86_v38 = vshrl.u32 %v50_v34, 16  ;;  %v89_v39 = vshll.u32 %v50_v34, 16  ;;  %vm2144_vm2 = vmor %vm82_vm0, %vm83_vm1 }
  0x10   :  { %1779 = vmatpush3.bf16.msra.mxu0 %v1914_v14  ;;  %v95_v40 = vshll.u32 %v51_v35, 16  ;;  %v100_v41 = vshrl.u32 %v52_v36, 16  ;;  %v1579_v42 = vld [vmem:[%s2598_s0 + $0x8] sm:$0xf]  ;;  %v103_v43 = vshll.u32 %v52_v36, 16  ;;  %v109_v44 = vshll.u32 %v53_v37, 16 }
  0x11   :  { %1843 = vmatpush3.bf16.msra.mxu1 %v1915_v15  ;;  %1780 = vmatprep.subr.bf16.mxu0 %v1916_v16  ;;  %358 = vst [vmem:[#allocation2 + $0x8] sm:$0xf] %v1579_v42  ;;  %v1595_v46 = vld [vmem:[%s2598_s0 + $0x8] sm:$0xf]  ;;  %v88_v47 = vrot.slane %v86_v38, 4  ;;  %v91_v48 = vrot.slane %v89_v39, 5 }
  0x12   :  { %1844 = vmatprep.subr.bf16.mxu1 %v1917_v17  ;;  %v97_v49 = vrot.slane %v95_v40, 5  ;;  %v102_v50 = vrot.slane %v100_v41, 4  ;;  %v1596_v51 = vld [vmem:[%s2598_s0 + $0xc] sm:$0x1]  ;;  %v105_v52 = vrot.slane %v103_v43, 5  ;;  %v111_v53 = vrot.slane %v109_v44, 5 }
  0x13   :  { %v92_v56 = vor.u32 %v91_v48, %v88_v47  ;;  %v407_v57 = vshrl.u32 %v1595_v46, 16  ;;  %v410_v58 = vshll.u32 %v1595_v46, 16  ;;  %v416_v59 = vshll.u32 %v1596_v51, 16  ;;  %v21_v2 = vld [vmem:[%s2598_s0 + $0x18] sm:$0xf] }
  0x14   :  { %1781 = vmatpush3.bf16.msra.mxu0 %v1918_v18  ;;  %v106_v62 = vor.u32 %v105_v52, %v102_v50  ;;  %36 = vst [vmem:[#allocation2 + $0x20] sm:$0xf] %v20_v60  ;;  %37 = vst [vmem:[#allocation2 + $0x30] sm:$0xf] %v21_v2  ;;  %v54_v7 = vld [vmem:[%s2598_s0 + $0x10] sm:$0xf] }
  0x15   :  { %1845 = vmatpush3.bf16.msra.mxu1 %v1919_v19  ;;  %1782 = vmatprep.subr.bf16.mxu0 %v1920_v20  ;;  %v93_v3 = vrot.slane %v92_v56, 4  ;;  %v409_v4 = vrot.slane %v407_v57, 4  ;;  %v412_v5 = vrot.slane %v410_v58, 5  ;;  %v418_v6 = vrot.slane %v416_v59, 5  ;;  %v55_v12 = vld [vmem:[%s2598_s0 + $0x14] sm:$0x1] }
  0x16   :  { %1846 = vmatprep.subr.bf16.mxu1 %v1921_v21  ;;  %v107_v8 = vrot.slane %v106_v62, 4  ;;  %v423_v9 = vrot.slane %v421_v63, 4  ;;  %v426_v10 = vrot.slane %v424_v0, 5  ;;  %v432_v11 = vrot.slane %v430_v1, 5  ;;  %v56_v15 = vld [vmem:[%s2598_s0 + $0x18] sm:$0xf] }
  0x17   :  { %v98_v13 = vsel %vm2144_vm2, %v93_v3, %v97_v49  ;;  %v413_v14 = vor.u32 %v412_v5, %v409_v4  ;;  %v57_v16 = vld [vmem:[%s2598_s0 + $0x1c] sm:$0x1]  ;;  %v114_v17 = vshrl.u32 %v54_v7, 16  ;;  %v117_v18 = vshll.u32 %v54_v7, 16  ;;  %v1601_v38 = vld [vmem:[%s2598_s0 + $0x20] sm:$0xf] }
  0x18   :  { %1783 = vmatpush3.bf16.msra.mxu0 %v1922_v22  ;;  %v112_v19 = vsel %vm2144_vm2, %v107_v8, %v111_v53  ;;  %325 = vst [vmem:[#allocation2 + $0x4] sm:$0xf] %v98_v13  ;;  %v427_v20 = vor.u32 %v426_v10, %v423_v9  ;;  %v123_v21 = vshll.u32 %v55_v12, 16  ;;  %v128_v22 = vshrl.u32 %v56_v15, 16  ;;  %v1600_v34 = vld [vmem:[%s2598_s0 + $0x1c] sm:$0x1] }
  0x19   :  { %1847 = vmatpush3.bf16.msra.mxu1 %v1923_v23  ;;  %1784 = vmatprep.subr.bf16.mxu0 %v1924_v24  ;;  %v1581_v23 = vld [vmem:[%s2598_s0 + $0x18] sm:$0xf]  ;;  %v1582_v24 = vld [vmem:[%s2598_s0 + $0x20] sm:$0xf]  ;;  %326 = vst [vmem:[#allocation2 + $0x14] sm:$0xf] %v112_v19 }
  0x1a   :  { %1848 = vmatprep.subr.bf16.mxu1 %v1925_v25  ;;  %v414_v25 = vrot.slane %v413_v14, 4  ;;  %360 = vst [vmem:[#allocation2 + $0x28] sm:$0xf] %v1581_v23  ;;  %361 = vst [vmem:[#allocation2 + $0x38] sm:$0xf] %v1582_v24  ;;  %v130_v32 = vrot.slane %v128_v22, 4 }
  0x1b   :  { %v137_v33 = vshll.u32 %v57_v16, 16  ;;  %v1602_v39 = vld [vmem:[%s2598_s0 + $0x24] sm:$0x1]  ;;  %v444_v44 = vshll.u32 %v1600_v34, 16  ;;  %v22_v45 = vld [vmem:[%s2598_s0 + $0x20] sm:$0xf] }
  0x1c   :  { %1785 = vmatpush3.bf16.msra.mxu0 %v1926_v26  ;;  %v116_v26 = vrot.slane %v114_v17, 4  ;;  %v419_v35 = vsel %vm2144_vm2, %v414_v25, %v418_v6  ;;  %v449_v49 = vshrl.u32 %v1601_v38, 16  ;;  %v23_v50 = vld [vmem:[%s2598_s0 + $0x28] sm:$0xf]  ;;  %38 = vst [vmem:[#allocation2 + $0x40] sm:$0xf] %v22_v45 }
  0x1d   :  { %1849 = vmatpush3.bf16.msra.mxu1 %v1927_v27  ;;  %1786 = vmatprep.subr.bf16.mxu0 %v1928_v28  ;;  %v119_v27 = vrot.slane %v117_v18, 5  ;;  %v131_v28 = vshll.u32 %v56_v15, 16  ;;  %646 = vst [vmem:[#allocation2 + $0xc] sm:$0xf] %v419_v35  ;;  %v139_v42 = vrot.slane %v137_v33, 5  ;;  %v446_v52 = vrot.slane %v444_v44, 5 }
  0x1e   :  { %1850 = vmatprep.subr.bf16.mxu1 %v1929_v29  ;;  %v1599_v29 = vld [vmem:[%s2598_s0 + $0x18] sm:$0xf]  ;;  %v452_v53 = vshll.u32 %v1601_v38, 16  ;;  %v458_v54 = vshll.u32 %v1602_v39, 16  ;;  %39 = vst [vmem:[#allocation2 + $0x50] sm:$0xf] %v23_v50 }
  0x1f   :  { %v120_v36 = vor.u32 %v119_v27, %v116_v26  ;;  %v133_v37 = vrot.slane %v131_v28, 5  ;;  %v435_v40 = vshrl.u32 %v1599_v29, 16  ;;  %v438_v43 = vshll.u32 %v1599_v29, 16  ;;  %v58_v55 = vld [vmem:[%s2598_s0 + $0x20] sm:$0xf] }
  0x20   :  { %1787 = vmatpush3.bf16.msra.mxu0 %v1930_v30  ;;  %v428_v30 = vrot.slane %v427_v20, 4  ;;  %v451_v58 = vrot.slane %v449_v49, 4  ;;  %v59_v59 = vld [vmem:[%s2598_s0 + $0x24] sm:$0x1]  ;;  %v142_v60 = vshrl.u32 %v58_v55, 16  ;;  %v454_v1 = vrot.slane %v452_v53, 5 }
  0x21   :  { %1851 = vmatpush3.bf16.msra.mxu1 %v1931_v31  ;;  %v125_v31 = vrot.slane %v123_v21, 5  ;;  %v121_v46 = vrot.slane %v120_v36, 4  ;;  %v134_v47 = vor.u32 %v133_v37, %v130_v32  ;;  %v437_v48 = vrot.slane %v435_v40, 4  ;;  %v1932_v62 = vld [vmem:[#allocation2] ss:$16 sps:$4 sm:$0xff]  }
  0x22   :  { %v433_v41 = vsel %vm2144_vm2, %v428_v30, %v432_v11  ;;  %v440_v51 = vrot.slane %v438_v43, 5  ;;  %v1934_v63 = vld [vmem:[#allocation2 + $0x4] ss:$16 sps:$4 sm:$0xff]   ;;  %v460_v3 = vrot.slane %v458_v54, 5  ;;  %v60_v4 = vld [vmem:[%s2598_s0 + $0x28] sm:$0xf]  ;;  %v455_v8 = vor.u32 %v454_v1, %v451_v58 }
  0x23   :  { %647 = vst [vmem:[#allocation2 + $0x1c] sm:$0xf] %v433_v41  ;;  %v126_v56 = vsel %vm2144_vm2, %v121_v46, %v125_v31  ;;  %v135_v57 = vrot.slane %v134_v47, 4  ;;  %v61_v5 = vld [vmem:[%s2598_s0 + $0x2c] sm:$0x1]  ;;  %v144_v6 = vrot.slane %v142_v60, 4  ;;  %1142 = vmatprep.mubr.bf16.mxu0 %v1934_v63 }
  0x24   :  { %327 = vst [vmem:[#allocation2 + $0x24] sm:$0xf] %v126_v56  ;;  %v441_v0 = vor.u32 %v440_v51, %v437_v48  ;;  %v145_v9 = vshll.u32 %v58_v55, 16  ;;  %v151_v10 = vshll.u32 %v59_v59, 16  ;;  %v1583_v11 = vld [vmem:[%s2598_s0 + $0x28] sm:$0xf]  ;;  %1143 = vmatmul.mubr.bf16.vlgmr.msra.gmra.mxu0 %v1932_v62 }
  0x25   :  { %v140_v2 = vsel %vm2144_vm2, %v135_v57, %v139_v42  ;;  %v156_v12 = vshrl.u32 %v60_v4, 16  ;;  %v159_v13 = vshll.u32 %v60_v4, 16  ;;  %v165_v14 = vshll.u32 %v61_v5, 16  ;;  %v1584_v15 = vld [vmem:[%s2598_s0 + $0x30] sm:$0xf] }
  0x26   :  { %328 = vst [vmem:[#allocation2 + $0x34] sm:$0xf] %v140_v2  ;;  %v442_v7 = vrot.slane %v441_v0, 4  ;;  %362 = vst [vmem:[#allocation2 + $0x48] sm:$0xf] %v1583_v11  ;;  %v456_v19 = vrot.slane %v455_v8, 4 }
  0x27   :  { %v1935_v16 = vld [vmem:[#allocation2 + $0x8] ss:$16 sps:$4 sm:$0xff]   ;;  %363 = vst [vmem:[#allocation2 + $0x58] sm:$0xf] %v1584_v15  ;;  %v147_v20 = vrot.slane %v145_v9, 5  ;;  %v153_v21 = vrot.slane %v151_v10, 5 }
  0x28   :  { %v447_v18 = vsel %vm2144_vm2, %v442_v7, %v446_v52  ;;  %v158_v22 = vrot.slane %v156_v12, 4  ;;  %v161_v23 = vrot.slane %v159_v13, 5  ;;  %v1603_v24 = vld [vmem:[%s2598_s0 + $0x28] sm:$0xf]  ;;  %v461_v25 = vsel %vm2144_vm2, %v456_v19, %v460_v3  ;;  %v1604_v27 = vld [vmem:[%s2598_s0 + $0x2c] sm:$0x1] }
  0x29   :  { %648 = vst [vmem:[#allocation2 + $0x2c] sm:$0xf] %v447_v18  ;;  %v167_v26 = vrot.slane %v165_v14, 5  ;;  %v1605_v28 = vld [vmem:[%s2598_s0 + $0x30] sm:$0xf]  ;;  %v463_v29 = vshrl.u32 %v1603_v24, 16  ;;  %v148_v30 = vor.u32 %v147_v20, %v144_v6 }
  0x2a   :  { %v1937_v17 = vld [vmem:[#allocation2 + $0xc] ss:$16 sps:$4 sm:$0xff]   ;;  %649 = vst [vmem:[#allocation2 + $0x3c] sm:$0xf] %v461_v25  ;;  %v162_v31 = vor.u32 %v161_v23, %v158_v22  ;;  %v1606_v32 = vld [vmem:[%s2598_s0 + $0x34] sm:$0x1] }
  0x2b   :  { %1239 = vmatprep.mubr.bf16.mxu1 %v1937_v17  ;;  %v466_v33 = vshll.u32 %v1603_v24, 16  ;;  %v472_v34 = vshll.u32 %v1604_v27, 16  ;;  %v465_v35 = vrot.slane %v463_v29, 4  ;;  %v477_v36 = vshrl.u32 %v1605_v28, 16  ;;  %v24_v39 = vld [vmem:[%s2598_s0 + $0x30] sm:$0xf] }
  0x2c   :  { %1240 = vmatmul.mubr.bf16.vlgmr.msra.gmra.mxu1 %v1935_v16  ;;  %v480_v37 = vshll.u32 %v1605_v28, 16  ;;  %v486_v38 = vshll.u32 %v1606_v32, 16  ;;  %v1942_v41 = vld [vmem:[#allocation2 + $0x20] ss:$16 sps:$4 sm:$0xff]   ;;  %v149_v42 = vrot.slane %v148_v30, 4  ;;  %v163_v43 = vrot.slane %v162_v31, 4 }
  0x2d   :  { %v1938_v40 = vld [vmem:[#allocation2 + $0x24] ss:$16 sps:$4 sm:$0xff]   ;;  %40 = vst [vmem:[#allocation2 + $0x60] sm:$0xf] %v24_v39  ;;  %v468_v44 = vrot.slane %v466_v33, 5  ;;  %v474_v45 = vrot.slane %v472_v34, 5 }
  0x2e   :  { %v479_v46 = vrot.slane %v477_v36, 4  ;;  %v25_v47 = vld [vmem:[%s2598_s0 + $0x38] sm:$0xf]  ;;  %1150 = vmatprep.mubr.bf16.mxu0 %v1938_v40  ;;  %v154_v48 = vsel %vm2144_vm2, %v149_v42, %v153_v21  ;;  %v482_v49 = vrot.slane %v480_v37, 5  ;;  %v488_v50 = vrot.slane %v486_v38, 5 }
  0x2f   :  { %41 = vst [vmem:[#allocation2 + $0x70] sm:$0xf] %v25_v47  ;;  %v62_v51 = vld [vmem:[%s2598_s0 + $0x30] sm:$0xf]  ;;  %v63_v52 = vld [vmem:[%s2598_s0 + $0x34] sm:$0x1]  ;;  %1151 = vmatmul.mubr.bf16.gmra.mxu0 %v1942_v41  ;;  %v168_v53 = vsel %vm2144_vm2, %v163_v43, %v167_v26  ;;  %v469_v54 = vor.u32 %v468_v44, %v465_v35 }
  0x30   :  { %329 = vst [vmem:[#allocation2 + $0x44] sm:$0xf] %v154_v48  ;;  %v64_v55 = vld [vmem:[%s2598_s0 + $0x38] sm:$0xf]  ;;  %v65_v56 = vld [vmem:[%s2598_s0 + $0x3c] sm:$0x1]  ;;  %v483_v58 = vor.u32 %v482_v49, %v479_v46 }
  0x31   :  { %v170_v57 = vshrl.u32 %v62_v51, 16  ;;  %330 = vst [vmem:[#allocation2 + $0x54] sm:$0xf] %v168_v53  ;;  %v173_v59 = vshll.u32 %v62_v51, 16  ;;  %v179_v60 = vshll.u32 %v63_v52, 16  ;;  %v184_v62 = vshrl.u32 %v64_v55, 16 }
  0x32   :  { %v1585_v63 = vld [vmem:[%s2598_s0 + $0x38] sm:$0xf]  ;;  %v1940_v0 = vld [vmem:[#allocation2 + $0x2c] ss:$16 sps:$4 sm:$0xff]   ;;  %v470_v2 = vrot.slane %v469_v54, 4  ;;  %v484_v3 = vrot.slane %v483_v58, 4 }
  0x33   :  { %v1943_v1 = vld [vmem:[#allocation2 + $0x28] ss:$16 sps:$4 sm:$0xff]   ;;  %364 = vst [vmem:[#allocation2 + $0x68] sm:$0xf] %v1585_v63  ;;  %v172_v4 = vrot.slane %v170_v57, 4  ;;  %v175_v5 = vrot.slane %v173_v59, 5  ;;  %1247 = vmatprep.mubr.bf16.mxu1 %v1940_v0 }
  0x34   :  { %v181_v6 = vrot.slane %v179_v60, 5  ;;  %v1586_v7 = vld [vmem:[%s2598_s0 + $0x40] sm:$0xf]  ;;  %v475_v8 = vsel %vm2144_vm2, %v470_v2, %v474_v45  ;;  %v186_v9 = vrot.slane %v184_v62, 4  ;;  %v187_v10 = vshll.u32 %v64_v55, 16  ;;  %1248 = vmatmul.mubr.bf16.gmra.mxu1 %v1943_v1 }
  0x35   :  { %v193_v11 = vshll.u32 %v65_v56, 16  ;;  %365 = vst [vmem:[#allocation2 + $0x78] sm:$0xf] %v1586_v7  ;;  %v1607_v12 = vld [vmem:[%s2598_s0 + $0x38] sm:$0xf]  ;;  %v489_v13 = vsel %vm2144_vm2, %v484_v3, %v488_v50  ;;  %v176_v14 = vor.u32 %v175_v5, %v172_v4 }
  0x36   :  { %650 = vst [vmem:[#allocation2 + $0x4c] sm:$0xf] %v475_v8  ;;  %v1608_v15 = vld [vmem:[%s2598_s0 + $0x3c] sm:$0x1]  ;;  %v1609_v16 = vld [vmem:[%s2598_s0 + $0x40] sm:$0xf] }
  0x37   :  { %v1610_v17 = vld [vmem:[%s2598_s0 + $0x44] sm:$0x1]  ;;  %651 = vst [vmem:[#allocation2 + $0x5c] sm:$0xf] %v489_v13  ;;  %v189_v18 = vrot.slane %v187_v10, 5  ;;  %v195_v19 = vrot.slane %v193_v11, 5 }
  0x38   :  { %v491_v20 = vshrl.u32 %v1607_v12, 16  ;;  %v494_v21 = vshll.u32 %v1607_v12, 16  ;;  %v26_v22 = vld [vmem:[%s2598_s0 + $0x48] sm:$0xf]  ;;  %v177_v23 = vrot.slane %v176_v14, 4  ;;  %v500_v24 = vshll.u32 %v1608_v15, 16 }
  0x39   :  { %v505_v25 = vshrl.u32 %v1609_v16, 16  ;;  %v508_v26 = vshll.u32 %v1609_v16, 16  ;;  %42 = vst [vmem:[#allocation2 + $0x80] sm:$0xf] %v26_v22  ;;  %v1944_v27 = vld [vmem:[#allocation2 + $0x44] ss:$16 sps:$4 sm:$0xff]   ;;  %v190_v29 = vor.u32 %v189_v18, %v186_v9 }
  0x3a   :  { %v1948_v28 = vld [vmem:[#allocation2 + $0x40] ss:$16 sps:$4 sm:$0xff]   ;;  %v493_v30 = vrot.slane %v491_v20, 4  ;;  %v182_v31 = vsel %vm2144_vm2, %v177_v23, %v181_v6  ;;  %v496_v32 = vrot.slane %v494_v21, 5  ;;  %1158 = vmatprep.mubr.bf16.mxu0 %v1944_v27  ;;  %v502_v36 = vrot.slane %v500_v24, 5 }
  0x3b   :  { %v507_v33 = vrot.slane %v505_v25, 4  ;;  %v27_v34 = vld [vmem:[%s2598_s0 + $0x50] sm:$0xf]  ;;  %v191_v35 = vrot.slane %v190_v29, 4  ;;  %331 = vst [vmem:[#allocation2 + $0x64] sm:$0xf] %v182_v31  ;;  %1159 = vmatmul.mubr.bf16.gmra.mxu0 %v1948_v28 }
  0x3c   :  { %v510_v37 = vrot.slane %v508_v26, 5  ;;  %v514_v38 = vshll.u32 %v1610_v17, 16  ;;  %43 = vst [vmem:[#allocation2 + $0x90] sm:$0xf] %v27_v34  ;;  %v66_v39 = vld [vmem:[%s2598_s0 + $0x48] sm:$0xf]  ;;  %v497_v40 = vor.u32 %v496_v32, %v493_v30 }
  0x3d   :  { %v67_v41 = vld [vmem:[%s2598_s0 + $0x4c] sm:$0x1]  ;;  %v68_v42 = vld [vmem:[%s2598_s0 + $0x50] sm:$0xf]  ;;  %v69_v43 = vld [vmem:[%s2598_s0 + $0x54] sm:$0x1]  ;;  %v196_v44 = vsel %vm2144_vm2, %v191_v35, %v195_v19 }
  0x3e   :  { %v511_v45 = vor.u32 %v510_v37, %v507_v33  ;;  %v516_v46 = vrot.slane %v514_v38, 5  ;;  %v198_v47 = vshrl.u32 %v66_v39, 16  ;;  %v1587_v48 = vld [vmem:[%s2598_s0 + $0x50] sm:$0xf]  ;;  %v1946_v49 = vld [vmem:[#allocation2 + $0x4c] ss:$16 sps:$4 sm:$0xff]  }
  0x3f   :  { %v1949_v50 = vld [vmem:[#allocation2 + $0x48] ss:$16 sps:$4 sm:$0xff]   ;;  %332 = vst [vmem:[#allocation2 + $0x74] sm:$0xf] %v196_v44  ;;  %v498_v51 = vrot.slane %v497_v40, 4  ;;  %v201_v54 = vshll.u32 %v66_v39, 16  ;;  %1255 = vmatprep.mubr.bf16.mxu1 %v1946_v49 }
  0x40   :  { %366 = vst [vmem:[#allocation2 + $0x88] sm:$0xf] %v1587_v48  ;;  %v512_v52 = vrot.slane %v511_v45, 4  ;;  %v200_v53 = vrot.slane %v198_v47, 4  ;;  %v207_v55 = vshll.u32 %v67_v41, 16  ;;  %v212_v58 = vshrl.u32 %v68_v42, 16  ;;  %1256 = vmatmul.mubr.bf16.gmra.mxu1 %v1949_v50 }
  0x41   :  { %v1588_v56 = vld [vmem:[%s2598_s0 + $0x58] sm:$0xf]  ;;  %v503_v57 = vsel %vm2144_vm2, %v498_v51, %v502_v36  ;;  %v215_v59 = vshll.u32 %v68_v42, 16  ;;  %v221_v60 = vshll.u32 %v69_v43, 16  ;;  %v1611_v62 = vld [vmem:[%s2598_s0 + $0x50] sm:$0xf] }
  0x42   :  { %367 = vst [vmem:[#allocation2 + $0x98] sm:$0xf] %v1588_v56  ;;  %v517_v63 = vsel %vm2144_vm2, %v512_v52, %v516_v46  ;;  %652 = vst [vmem:[#allocation2 + $0x6c] sm:$0xf] %v503_v57  ;;  %v203_v0 = vrot.slane %v201_v54, 5  ;;  %v209_v1 = vrot.slane %v207_v55, 5 }
  0x43   :  { %v1612_v2 = vld [vmem:[%s2598_s0 + $0x54] sm:$0x1]  ;;  %v1613_v3 = vld [vmem:[%s2598_s0 + $0x58] sm:$0xf]  ;;  %653 = vst [vmem:[#allocation2 + $0x7c] sm:$0xf] %v517_v63 }
  0x44   :  { %v214_v4 = vrot.slane %v212_v58, 4  ;;  %v217_v5 = vrot.slane %v215_v59, 5  ;;  %v223_v6 = vrot.slane %v221_v60, 5  ;;  %v1614_v7 = vld [vmem:[%s2598_s0 + $0x5c] sm:$0x1]  ;;  %v204_v8 = vor.u32 %v203_v0, %v200_v53 }
  0x45   :  { %v519_v9 = vshrl.u32 %v1611_v62, 16  ;;  %v522_v10 = vshll.u32 %v1611_v62, 16  ;;  %v528_v11 = vshll.u32 %v1612_v2, 16  ;;  %v28_v12 = vld [vmem:[%s2598_s0 + $0x58] sm:$0xf]  ;;  %v533_v14 = vshrl.u32 %v1613_v3, 16 }
  0x46   :  { %v218_v13 = vor.u32 %v217_v5, %v214_v4  ;;  %v536_v15 = vshll.u32 %v1613_v3, 16  ;;  %v542_v16 = vshll.u32 %v1614_v7, 16  ;;  %v29_v17 = vld [vmem:[%s2598_s0 + $0x60] sm:$0xf]  ;;  %44 = vst [vmem:[#allocation2 + $0xa0] sm:$0xf] %v28_v12 }
  0x47   :  { %v1950_v18 = vld [vmem:[#allocation2 + $0x64] ss:$16 sps:$4 sm:$0xff]   ;;  %v1954_v19 = vld [vmem:[#allocation2 + $0x60] ss:$16 sps:$4 sm:$0xff]   ;;  %v205_v20 = vrot.slane %v204_v8, 4  ;;  %v521_v22 = vrot.slane %v519_v9, 4 }
  0x48   :  { %45 = vst [vmem:[#allocation2 + $0xb0] sm:$0xf] %v29_v17  ;;  %v219_v21 = vrot.slane %v218_v13, 4  ;;  %v524_v23 = vrot.slane %v522_v10, 5  ;;  %v530_v24 = vrot.slane %v528_v11, 5  ;;  %1166 = vmatprep.mubr.bf16.mxu0 %v1950_v18  ;;  %v535_v27 = vrot.slane %v533_v14, 4 }
  0x49   :  { %v70_v25 = vld [vmem:[%s2598_s0 + $0x58] sm:$0xf]  ;;  %v210_v26 = vsel %vm2144_vm2, %v205_v20, %v209_v1  ;;  %v538_v28 = vrot.slane %v536_v15, 5  ;;  %v544_v29 = vrot.slane %v542_v16, 5  ;;  %v71_v30 = vld [vmem:[%s2598_s0 + $0x5c] sm:$0x1]  ;;  %1167 = vmatmul.mubr.bf16.gmra.mxu0 %v1954_v19 }
  0x4a   :  { %v224_v31 = vsel %vm2144_vm2, %v219_v21, %v223_v6  ;;  %333 = vst [vmem:[#allocation2 + $0x84] sm:$0xf] %v210_v26  ;;  %v525_v32 = vor.u32 %v524_v23, %v521_v22  ;;  %v72_v33 = vld [vmem:[%s2598_s0 + $0x60] sm:$0xf]  ;;  %v73_v34 = vld [vmem:[%s2598_s0 + $0x64] sm:$0x1] }
  0x4b   :  { %v226_v35 = vshrl.u32 %v70_v25, 16  ;;  %v1952_v36 = vld [vmem:[#allocation2 + $0x6c] ss:$16 sps:$4 sm:$0xff]   ;;  %v1955_v37 = vld [vmem:[#allocation2 + $0x68] ss:$16 sps:$4 sm:$0xff]   ;;  %v539_v38 = vor.u32 %v538_v28, %v535_v27  ;;  %v229_v39 = vshll.u32 %v70_v25, 16 }
  0x4c   :  { %334 = vst [vmem:[#allocation2 + $0x94] sm:$0xf] %v224_v31  ;;  %v526_v40 = vrot.slane %v525_v32, 4  ;;  %v235_v42 = vshll.u32 %v71_v30, 16  ;;  %v240_v43 = vshrl.u32 %v72_v33, 16  ;;  %1263 = vmatprep.mubr.bf16.mxu1 %v1952_v36  ;;  %v243_v47 = vshll.u32 %v72_v33, 16 }
  0x4d   :  { %v228_v41 = vrot.slane %v226_v35, 4  ;;  %v1589_v44 = vld [vmem:[%s2598_s0 + $0x60] sm:$0xf]  ;;  %v540_v45 = vrot.slane %v539_v38, 4  ;;  %v231_v46 = vrot.slane %v229_v39, 5  ;;  %v249_v48 = vshll.u32 %v73_v34, 16  ;;  %1264 = vmatmul.mubr.bf16.gmra.mxu1 %v1955_v37 }
  0x4e   :  { %v1590_v49 = vld [vmem:[%s2598_s0 + $0x68] sm:$0xf]  ;;  %368 = vst [vmem:[#allocation2 + $0xa8] sm:$0xf] %v1589_v44  ;;  %v531_v50 = vsel %vm2144_vm2, %v526_v40, %v530_v24  ;;  %v237_v51 = vrot.slane %v235_v42, 5  ;;  %v242_v52 = vrot.slane %v240_v43, 4 }
  0x4f   :  { %369 = vst [vmem:[#allocation2 + $0xb8] sm:$0xf] %v1590_v49  ;;  %v1615_v53 = vld [vmem:[%s2598_s0 + $0x60] sm:$0xf]  ;;  %v1616_v54 = vld [vmem:[%s2598_s0 + $0x64] sm:$0x1]  ;;  %v545_v55 = vsel %vm2144_vm2, %v540_v45, %v544_v29  ;;  %v232_v56 = vor.u32 %v231_v46, %v228_v41 }
  0x50   :  { %654 = vst [vmem:[#allocation2 + $0x8c] sm:$0xf] %v531_v50  ;;  %v245_v57 = vrot.slane %v243_v47, 5  ;;  %v251_v58 = vrot.slane %v249_v48, 5  ;;  %v1617_v59 = vld [vmem:[%s2598_s0 + $0x68] sm:$0xf] }
  0x51   :  { %v1618_v60 = vld [vmem:[%s2598_s0 + $0x6c] sm:$0x1]  ;;  %655 = vst [vmem:[#allocation2 + $0x9c] sm:$0xf] %v545_v55  ;;  %v547_v62 = vshrl.u32 %v1615_v53, 16  ;;  %v550_v63 = vshll.u32 %v1615_v53, 16 }
  0x52   :  { %v556_v0 = vshll.u32 %v1616_v54, 16  ;;  %v561_v1 = vshrl.u32 %v1617_v59, 16  ;;  %v30_v2 = vld [vmem:[%s2598_s0 + $0x68] sm:$0xf]  ;;  %v233_v3 = vrot.slane %v232_v56, 4  ;;  %v246_v4 = vor.u32 %v245_v57, %v242_v52 }
  0x53   :  { %v564_v5 = vshll.u32 %v1617_v59, 16  ;;  %v570_v6 = vshll.u32 %v1618_v60, 16  ;;  %v31_v7 = vld [vmem:[%s2598_s0 + $0x70] sm:$0xf]  ;;  %46 = vst [vmem:[#allocation2 + $0xc0] sm:$0xf] %v30_v2 }
  0x54   :  { %v1956_v8 = vld [vmem:[#allocation2 + $0x84] ss:$16 sps:$4 sm:$0xff]   ;;  %v1960_v9 = vld [vmem:[#allocation2 + $0x80] ss:$16 sps:$4 sm:$0xff]   ;;  %v549_v10 = vrot.slane %v547_v62, 4  ;;  %v238_v11 = vsel %vm2144_vm2, %v233_v3, %v237_v51  ;;  %v247_v12 = vrot.slane %v246_v4, 4 }
  0x55   :  { %47 = vst [vmem:[#allocation2 + $0xd0] sm:$0xf] %v31_v7  ;;  %v552_v13 = vrot.slane %v550_v63, 5  ;;  %v558_v14 = vrot.slane %v556_v0, 5  ;;  %v74_v15 = vld [vmem:[%s2598_s0 + $0x68] sm:$0xf]  ;;  %1174 = vmatprep.mubr.bf16.mxu0 %v1956_v8 }
  0x56   :  { %335 = vst [vmem:[#allocation2 + $0xa4] sm:$0xf] %v238_v11  ;;  %v563_v16 = vrot.slane %v561_v1, 4  ;;  %v566_v17 = vrot.slane %v564_v5, 5  ;;  %v572_v18 = vrot.slane %v570_v6, 5  ;;  %v254_v20 = vshrl.u32 %v74_v15, 16  ;;  %1175 = vmatmul.mubr.bf16.gmra.mxu0 %v1960_v9 }
  0x57   :  { %v75_v19 = vld [vmem:[%s2598_s0 + $0x6c] sm:$0x1]  ;;  %v252_v21 = vsel %vm2144_vm2, %v247_v12, %v251_v58  ;;  %v553_v22 = vor.u32 %v552_v13, %v549_v10  ;;  %v76_v23 = vld [vmem:[%s2598_s0 + $0x70] sm:$0xf]  ;;  %v77_v24 = vld [vmem:[%s2598_s0 + $0x74] sm:$0x1] }
  0x58   :  { %v257_v25 = vshll.u32 %v74_v15, 16  ;;  %v263_v26 = vshll.u32 %v75_v19, 16  ;;  %336 = vst [vmem:[#allocation2 + $0xb4] sm:$0xf] %v252_v21  ;;  %v567_v27 = vor.u32 %v566_v17, %v563_v16  ;;  %v256_v28 = vrot.slane %v254_v20, 4 }
  0x59   :  { %v268_v29 = vshrl.u32 %v76_v23, 16  ;;  %v271_v30 = vshll.u32 %v76_v23, 16  ;;  %v1591_v31 = vld [vmem:[%s2598_s0 + $0x70] sm:$0xf]  ;;  %v1958_v32 = vld [vmem:[#allocation2 + $0x8c] ss:$16 sps:$4 sm:$0xff]  }
  0x5a   :  { %v1961_v33 = vld [vmem:[#allocation2 + $0x88] ss:$16 sps:$4 sm:$0xff]   ;;  %v554_v34 = vrot.slane %v553_v22, 4  ;;  %370 = vst [vmem:[#allocation2 + $0xc8] sm:$0xf] %v1591_v31  ;;  %v568_v35 = vrot.slane %v567_v27, 4  ;;  %1271 = vmatprep.mubr.bf16.mxu1 %v1958_v32 }
  0x5b   :  { %v259_v36 = vrot.slane %v257_v25, 5  ;;  %v265_v37 = vrot.slane %v263_v26, 5  ;;  %v270_v38 = vrot.slane %v268_v29, 4  ;;  %v1592_v39 = vld [vmem:[%s2598_s0 + $0x78] sm:$0xf]  ;;  %v273_v41 = vrot.slane %v271_v30, 5  ;;  %1272 = vmatmul.mubr.bf16.gmra.mxu1 %v1961_v33 }
  0x5c   :  { %v559_v40 = vsel %vm2144_vm2, %v554_v34, %v558_v14  ;;  %v277_v42 = vshll.u32 %v77_v24, 16  ;;  %371 = vst [vmem:[#allocation2 + $0xd8] sm:$0xf] %v1592_v39  ;;  %v1619_v43 = vld [vmem:[%s2598_s0 + $0x70] sm:$0xf]  ;;  %v573_v45 = vsel %vm2144_vm2, %v568_v35, %v572_v18 }
  0x5d   :  { %v1620_v44 = vld [vmem:[%s2598_s0 + $0x74] sm:$0x1]  ;;  %656 = vst [vmem:[#allocation2 + $0xac] sm:$0xf] %v559_v40  ;;  %v260_v46 = vor.u32 %v259_v36, %v256_v28  ;;  %v1621_v47 = vld [vmem:[%s2598_s0 + $0x78] sm:$0xf]  ;;  %v274_v51 = vor.u32 %v273_v41, %v270_v38 }
  0x5e   :  { %v1622_v48 = vld [vmem:[%s2598_s0 + $0x7c] sm:$0x1]  ;;  %v575_v49 = vshrl.u32 %v1619_v43, 16  ;;  %v578_v50 = vshll.u32 %v1619_v43, 16  ;;  %657 = vst [vmem:[#allocation2 + $0xbc] sm:$0xf] %v573_v45 }
  0x5f   :  { %v279_v52 = vrot.slane %v277_v42, 5  ;;  %v584_v53 = vshll.u32 %v1620_v44, 16  ;;  %v589_v54 = vshrl.u32 %v1621_v47, 16  ;;  %v32_v55 = vld [vmem:[%s2598_s0 + $0x78] sm:$0xf]  ;;  %v261_v56 = vrot.slane %v260_v46, 4 }
  0x60   :  { %v577_v57 = vrot.slane %v575_v49, 4  ;;  %v580_v58 = vrot.slane %v578_v50, 5  ;;  %v592_v59 = vshll.u32 %v1621_v47, 16  ;;  %v33_v60 = vld [vmem:[%s2598_s0 + $0x80] sm:$0xf]  ;;  %v275_v0 = vrot.slane %v274_v51, 4 }
  0x61   :  { %48 = vst [vmem:[#allocation2 + $0xe0] sm:$0xf] %v32_v55  ;;  %v1962_v62 = vld [vmem:[#allocation2 + $0xa4] ss:$16 sps:$4 sm:$0xff]   ;;  %v1966_v63 = vld [vmem:[#allocation2 + $0xa0] ss:$16 sps:$4 sm:$0xff]   ;;  %v266_v1 = vsel %vm2144_vm2, %v261_v56, %v265_v37 }
  0x62   :  { %49 = vst [vmem:[#allocation2 + $0xf0] sm:$0xf] %v33_v60  ;;  %v581_v2 = vor.u32 %v580_v58, %v577_v57  ;;  %v586_v3 = vrot.slane %v584_v53, 5  ;;  %v591_v4 = vrot.slane %v589_v54, 4  ;;  %v78_v5 = vld [vmem:[%s2598_s0 + $0x78] sm:$0xf]  ;;  %1182 = vmatprep.mubr.bf16.mxu0 %v1962_v62  ;;  %v280_v7 = vsel %vm2144_vm2, %v275_v0, %v279_v52 }
  0x63   :  { %v79_v6 = vld [vmem:[%s2598_s0 + $0x7c] sm:$0x1]  ;;  %337 = vst [vmem:[#allocation2 + $0xc4] sm:$0xf] %v266_v1  ;;  %v594_v8 = vrot.slane %v592_v59, 5  ;;  %v598_v9 = vshll.u32 %v1622_v48, 16  ;;  %1183 = vmatmul.mubr.bf16.gmra.mxu0 %v1966_v63 }
  0x64   :  { %v80_v10 = vld [vmem:[%s2598_s0 + $0x80] sm:$0xf]  ;;  %v81_v11 = vld [vmem:[%s2598_s0 + $0x84] sm:$0x1]  ;;  %338 = vst [vmem:[#allocation2 + $0xd4] sm:$0xf] %v280_v7 }
  0x65   :  { %v582_v12 = vrot.slane %v581_v2, 4  ;;  %v282_v13 = vshrl.u32 %v78_v5, 16  ;;  %v285_v14 = vshll.u32 %v78_v5, 16  ;;  %v291_v15 = vshll.u32 %v79_v6, 16  ;;  %v1593_v16 = vld [vmem:[%s2598_s0 + $0x80] sm:$0xf] }
  0x66   :  { %v595_v17 = vor.u32 %v594_v8, %v591_v4  ;;  %v600_v18 = vrot.slane %v598_v9, 5  ;;  %v296_v19 = vshrl.u32 %v80_v10, 16  ;;  %v299_v20 = vshll.u32 %v80_v10, 16  ;;  %v1594_v21 = vld [vmem:[%s2598_s0 + $0x88] sm:$0xf] }
  0x67   :  { %372 = vst [vmem:[#allocation2 + $0xe8] sm:$0xf] %v1593_v16  ;;  %v1964_v22 = vld [vmem:[#allocation2 + $0xac] ss:$16 sps:$4 sm:$0xff]   ;;  %v1967_v23 = vld [vmem:[#allocation2 + $0xa8] ss:$16 sps:$4 sm:$0xff]   ;;  %v587_v24 = vsel %vm2144_vm2, %v582_v12, %v586_v3 }
  0x68   :  { %v284_v25 = vrot.slane %v282_v13, 4  ;;  %373 = vst [vmem:[#allocation2 + $0xf8] sm:$0xf] %v1594_v21  ;;  %v596_v26 = vrot.slane %v595_v17, 4  ;;  %658 = vst [vmem:[#allocation2 + $0xcc] sm:$0xf] %v587_v24  ;;  %1279 = vmatprep.mubr.bf16.mxu1 %v1964_v22 }
  0x69   :  { %v287_v27 = vrot.slane %v285_v14, 5  ;;  %v293_v28 = vrot.slane %v291_v15, 5  ;;  %v298_v29 = vrot.slane %v296_v19, 4  ;;  %v1623_v30 = vld [vmem:[%s2598_s0 + $0x80] sm:$0xf]  ;;  %v301_v31 = vrot.slane %v299_v20, 5  ;;  %1280 = vmatmul.mubr.bf16.gmra.mxu1 %v1967_v23 }
  0x6a   :  { %v305_v32 = vshll.u32 %v81_v11, 16  ;;  %v1624_v33 = vld [vmem:[%s2598_s0 + $0x84] sm:$0x1]  ;;  %v1625_v34 = vld [vmem:[%s2598_s0 + $0x88] sm:$0xf]  ;;  %v601_v35 = vsel %vm2144_vm2, %v596_v26, %v600_v18  ;;  %v603_v37 = vshrl.u32 %v1623_v30, 16 }
  0x6b   :  { %v288_v36 = vor.u32 %v287_v27, %v284_v25  ;;  %v606_v38 = vshll.u32 %v1623_v30, 16  ;;  %659 = vst [vmem:[#allocation2 + $0xdc] sm:$0xf] %v601_v35  ;;  %v302_v39 = vor.u32 %v301_v31, %v298_v29  ;;  %v1626_v41 = vld [vmem:[%s2598_s0 + $0x8c] sm:$0x1]  ;;  %v612_v42 = vshll.u32 %v1624_v33, 16 }
  0x6c   :  { %v307_v40 = vrot.slane %v305_v32, 5  ;;  %v617_v43 = vshrl.u32 %v1625_v34, 16  ;;  %v1968_v44 = vld [vmem:[#allocation2 + $0xc4] ss:$16 sps:$4 sm:$0xff]   ;;  %v1972_v45 = vld [vmem:[#allocation2 + $0xc0] ss:$16 sps:$4 sm:$0xff]  }
  0x6d   :  { %v289_v46 = vrot.slane %v288_v36, 4  ;;  %v303_v47 = vrot.slane %v302_v39, 4  ;;  %v605_v48 = vrot.slane %v603_v37, 4  ;;  %v608_v49 = vrot.slane %v606_v38, 5  ;;  %1190 = vmatprep.mubr.bf16.mxu0 %v1968_v44  ;;  %v1973_v60 = vld [vmem:[#allocation2 + $0xc8] ss:$16 sps:$4 sm:$0xff]  }
  0x6e   :  { %v619_v51 = vrot.slane %v617_v43, 4  ;;  %v620_v52 = vshll.u32 %v1625_v34, 16  ;;  %v626_v53 = vshll.u32 %v1626_v41, 16  ;;  %1191 = vmatmul.mubr.bf16.gmra.mxu0 %v1972_v45  ;;  %v614_v56 = vrot.slane %v612_v42, 5  ;;  %v1978_v4 = vld [vmem:[#allocation2 + $0xe0] ss:$16 sps:$4 sm:$0xff]  }
  0x6f   :  { %v294_v50 = vsel %vm2144_vm2, %v289_v46, %v293_v28  ;;  %v308_v54 = vsel %vm2144_vm2, %v303_v47, %v307_v40  ;;  %v609_v55 = vor.u32 %v608_v49, %v605_v48  ;;  %v1979_v6 = vld [vmem:[#allocation2 + $0xe8] ss:$16 sps:$4 sm:$0xff]  }
  0x70   :  { %339 = vst [vmem:[#allocation2 + $0xe4] sm:$0xf] %v294_v50  ;;  %340 = vst [vmem:[#allocation2 + $0xf4] sm:$0xf] %v308_v54  ;;  %v622_v57 = vrot.slane %v620_v52, 5  ;;  %v628_v63 = vrot.slane %v626_v53, 5 }
  0x71   :  { %v610_v58 = vrot.slane %v609_v55, 4 }
  0x72   :  { %v1970_v59 = vld [vmem:[#allocation2 + $0xcc] ss:$16 sps:$4 sm:$0xff]   ;;  %v623_v62 = vor.u32 %v622_v57, %v619_v51 }
  0x73   :  { %v615_v0 = vsel %vm2144_vm2, %v610_v58, %v614_v56  ;;  %1287 = vmatprep.mubr.bf16.mxu1 %v1970_v59 }
  0x74   :  { %v624_v1 = vrot.slane %v623_v62, 4  ;;  %660 = vst [vmem:[#allocation2 + $0xec] sm:$0xf] %v615_v0  ;;  %1288 = vmatmul.mubr.bf16.gmra.mxu1 %v1973_v60 }
  0x76   :  { %v629_v2 = vsel %vm2144_vm2, %v624_v1, %v628_v63 }
  0x77   :  { %v1974_v3 = vld [vmem:[#allocation2 + $0xe4] ss:$16 sps:$4 sm:$0xff]   ;;  %661 = vst [vmem:[#allocation2 + $0xfc] sm:$0xf] %v629_v2 }
  0x78   :  { %1198 = vmatprep.mubr.bf16.mxu0 %v1974_v3 }
  0x79   :  { %1199 = vmatmul.mubr.bf16.gmra.mxu0 %v1978_v4 }
  0x7e   :  { %v1976_v5 = vld [vmem:[#allocation2 + $0xec] ss:$16 sps:$4 sm:$0xff]  }
  0x7f   :  { %1295 = vmatprep.mubr.bf16.mxu1 %v1976_v5 }
  0x80   :  { %1296 = vmatmul.mubr.bf16.gmra.mxu1 %v1979_v6 }
  0xe4   :  { %v1788_v7 = vpop.f32.mrf.mxu0 }
  0xe6   :  { %v1789_v8 = vpop.f32.mrf.mxu0 }
  0xe7   :  { %v1790_v48 = vadd.f32 %v1789_v8, %v1788_v7 }
  0xe8   :  { %v1791_v10 = vpop.f32.mrf.mxu0 }
  0xea   :  { %v1792_v12 = vpop.f32.mrf.mxu0 }
  0xeb   :  { %v1793_v45 = vadd.f32 %v1792_v12, %v1791_v10 }
  0xec   :  { %v1852_v9 = vpop.f32.mrf.mxu1 }
  0xee   :  { %v1853_v11 = vpop.f32.mrf.mxu1 }
  0xef   :  { %v1794_v14 = vpop.f32.mrf.mxu0  ;;  %v1854_v49 = vadd.f32 %v1853_v11, %v1852_v9 }
  0xf0   :  { %v1855_v13 = vpop.f32.mrf.mxu1 }
  0xf1   :  { %v1795_v61 = vpop.f32.mrf.mxu0  ;;  %v2463_v58 = vadd.f32 %v1854_v49, %v1790_v48 }
  0xf2   :  { %v1856_v15 = vpop.f32.mrf.mxu1  ;;  %v1796_v50 = vadd.f32 %v1795_v61, %v1794_v14 }
  0xf3   :  { %v1797_v16 = vpop.f32.mrf.mxu0  ;;  %v1857_v46 = vadd.f32 %v1856_v15, %v1855_v13  ;;  %v1325_v6 = vmul.f32 %v2463_v58, %v2463_v58 }
  0xf4   :  { %v1858_v17 = vpop.f32.mrf.mxu1 }
  0xf5   :  { %v1798_v19 = vpop.f32.mrf.mxu0  ;;  %v2461_v54 = vadd.f32 %v1857_v46, %v1793_v45 }
  0xf6   :  { %v1859_v18 = vpop.f32.mrf.mxu1  ;;  %v1799_v55 = vadd.f32 %v1798_v19, %v1797_v16 }
  0xf7   :  { %v1860_v51 = vadd.f32 %v1859_v18, %v1858_v17  ;;  %v1326_v1 = vmul.f32 %v2461_v54, %v2461_v54  ;;  %v1304_v13 = vadd.f32 %v2461_v54, %v2463_v58 }
  0xf8   :  { %v1861_v20 = vpop.f32.mrf.mxu1 }
  0xf9   :  { %v2465_v59 = vadd.f32 %v1860_v51, %v1796_v50  ;;  %v1341_v14 = vadd.f32 %v1326_v1, %v1325_v6 }
  0xfa   :  { %v1862_v22 = vpop.f32.mrf.mxu1 }
  0xfb   :  { %v1800_v21 = vpop.f32.mrf.mxu0  ;;  %v1863_v56 = vadd.f32 %v1862_v22, %v1861_v20  ;;  %v1327_v7 = vmul.f32 %v2465_v59, %v2465_v59  ;;  %v1305_v20 = vadd.f32 %v1304_v13, %v2465_v59 }
  0xfd   :  { %v1801_v23 = vpop.f32.mrf.mxu0  ;;  %v2469_v2 = vadd.f32 %v1863_v56, %v1799_v55 }
  0xfe   :  { %v1802_v60 = vadd.f32 %v1801_v23, %v1800_v21  ;;  %v1342_v21 = vadd.f32 %v1341_v14, %v1327_v7 }
  0xff   :  { %v1803_v24 = vpop.f32.mrf.mxu0  ;;  %v1328_v15 = vmul.f32 %v2469_v2, %v2469_v2 }
 0x100   :  { %v1864_v25 = vpop.f32.mrf.mxu1 }
 0x101   :  { %v1804_v27 = vpop.f32.mrf.mxu0 }
 0x102   :  { %v1865_v26 = vpop.f32.mrf.mxu1  ;;  %v1805_v3 = vadd.f32 %v1804_v27, %v1803_v24  ;;  %v1306_v27 = vadd.f32 %v1305_v20, %v2469_v2 }
 0x103   :  { %v1866_v62 = vadd.f32 %v1865_v26, %v1864_v25 }
 0x104   :  { %v1867_v28 = vpop.f32.mrf.mxu1 }
 0x105   :  { %v2475_v8 = vadd.f32 %v1866_v62, %v1802_v60 }
 0x106   :  { %v1868_v29 = vpop.f32.mrf.mxu1 }
 0x107   :  { %v1869_v4 = vadd.f32 %v1868_v29, %v1867_v28  ;;  %v1329_v22 = vmul.f32 %v2475_v8, %v2475_v8  ;;  %v1343_v28 = vadd.f32 %v1342_v21, %v1328_v15 }
 0x109   :  { %v1806_v30 = vpop.f32.mrf.mxu0  ;;  %v2481_v61 = vadd.f32 %v1869_v4, %v1805_v3 }
 0x10b   :  { %v1807_v31 = vpop.f32.mrf.mxu0  ;;  %v1330_v29 = vmul.f32 %v2481_v61, %v2481_v61 }
 0x10c   :  { %v1808_v10 = vadd.f32 %v1807_v31, %v1806_v30 }
 0x10d   :  { %v1870_v32 = vpop.f32.mrf.mxu1  ;;  %v1809_v33 = vpop.f32.mrf.mxu0 }
 0x10f   :  { %v1871_v34 = vpop.f32.mrf.mxu1  ;;  %v1810_v35 = vpop.f32.mrf.mxu0 }
 0x110   :  { %v1872_v11 = vadd.f32 %v1871_v34, %v1870_v32  ;;  %v1811_v16 = vadd.f32 %v1810_v35, %v1809_v33  ;;  %v1307_v34 = vadd.f32 %v1306_v27, %v2475_v8  ;;  %v1344_v35 = vadd.f32 %v1343_v28, %v1329_v22 }
 0x111   :  { %v1873_v36 = vpop.f32.mrf.mxu1 }
 0x112   :  { %v2486_v23 = vadd.f32 %v1872_v11, %v1808_v10  ;;  %v1308_v45 = vadd.f32 %v1307_v34, %v2481_v61  ;;  %v1345_v46 = vadd.f32 %v1344_v35, %v1330_v29 }
 0x113   :  { %v1874_v38 = vpop.f32.mrf.mxu1 }
 0x114   :  { %v1875_v17 = vadd.f32 %v1874_v38, %v1873_v36  ;;  %v1309_v50 = vadd.f32 %v1308_v45, %v2486_v23 }
 0x116   :  { %v1812_v37 = vpop.f32.mrf.mxu0  ;;  %v2491_v30 = vadd.f32 %v1875_v17, %v1811_v16 }
 0x118   :  { %v1813_v39 = vpop.f32.mrf.mxu0  ;;  %v1310_v56 = vadd.f32 %v1309_v50, %v2491_v30 }
 0x119   :  { %v1814_v24 = vadd.f32 %v1813_v39, %v1812_v37  ;;  %v1331_v37 = vmul.f32 %v2486_v23, %v2486_v23 }
 0x11a   :  { %v1815_v40 = vpop.f32.mrf.mxu0 }
 0x11b   :  { %v1876_v41 = vpop.f32.mrf.mxu1 }
 0x11c   :  { %v1816_v43 = vpop.f32.mrf.mxu0 }
 0x11d   :  { %v1877_v42 = vpop.f32.mrf.mxu1  ;;  %v1817_v31 = vadd.f32 %v1816_v43, %v1815_v40  ;;  %v1332_v40 = vmul.f32 %v2491_v30, %v2491_v30 }
 0x11e   :  { %v1878_v25 = vadd.f32 %v1877_v42, %v1876_v41 }
 0x11f   :  { %v1879_v44 = vpop.f32.mrf.mxu1 }
 0x120   :  { %v2496_v38 = vadd.f32 %v1878_v25, %v1814_v24 }
 0x121   :  { %v1880_v52 = vpop.f32.mrf.mxu1 }
 0x122   :  { %v1881_v32 = vadd.f32 %v1880_v52, %v1879_v44  ;;  %v1346_v52 = vadd.f32 %v1345_v46, %v1331_v37  ;;  %v1311_v3 = vadd.f32 %v1310_v56, %v2496_v38 }
 0x123   :  { %v1818_v47 = vpop.f32.mrf.mxu0 }
 0x124   :  { %v2501_v43 = vadd.f32 %v1881_v32, %v1817_v31  ;;  %v1347_v1 = vadd.f32 %v1346_v52, %v1332_v40 }
 0x125   :  { %v1819_v53 = vpop.f32.mrf.mxu0 }
 0x126   :  { %v1820_v39 = vadd.f32 %v1819_v53, %v1818_v47  ;;  %v1333_v47 = vmul.f32 %v2496_v38, %v2496_v38  ;;  %v1312_v10 = vadd.f32 %v1311_v3, %v2501_v43 }
 0x127   :  { %v1821_v57 = vpop.f32.mrf.mxu0 }
 0x128   :  { %v1348_v6 = vadd.f32 %v1347_v1, %v1333_v47 }
 0x129   :  { %v1882_v63 = vpop.f32.mrf.mxu1  ;;  %v1822_v0 = vpop.f32.mrf.mxu0 }
 0x12a   :  { %v1823_v44 = vadd.f32 %v1822_v0, %v1821_v57  ;;  %v1334_v57 = vmul.f32 %v2501_v43, %v2501_v43 }
 0x12b   :  { %v1883_v5 = vpop.f32.mrf.mxu1 }
 0x12c   :  { %v1884_v41 = vadd.f32 %v1883_v5, %v1882_v63 }
 0x12d   :  { %v1885_v9 = vpop.f32.mrf.mxu1 }
 0x12e   :  { %v1824_v12 = vpop.f32.mrf.mxu0  ;;  %v2506_v53 = vadd.f32 %v1884_v41, %v1820_v39 }
 0x12f   :  { %v1886_v18 = vpop.f32.mrf.mxu1 }
 0x130   :  { %v1825_v19 = vpop.f32.mrf.mxu0  ;;  %v1887_v48 = vadd.f32 %v1886_v18, %v1885_v9  ;;  %v1335_v7 = vmul.f32 %v2506_v53, %v2506_v53  ;;  %v1313_v15 = vadd.f32 %v1312_v10, %v2506_v53 }
 0x131   :  { %v1826_v60 = vadd.f32 %v1825_v19, %v1824_v12  ;;  %v1349_v12 = vadd.f32 %v1348_v6, %v1334_v57 }
 0x132   :  { %v1827_v26 = vpop.f32.mrf.mxu0  ;;  %v2511_v0 = vadd.f32 %v1887_v48, %v1823_v44 }
 0x133   :  { %v1350_v18 = vadd.f32 %v1349_v12, %v1335_v7 }
 0x134   :  { %v1888_v33 = vpop.f32.mrf.mxu1  ;;  %v1828_v36 = vpop.f32.mrf.mxu0  ;;  %v1336_v13 = vmul.f32 %v2511_v0, %v2511_v0  ;;  %v1314_v21 = vadd.f32 %v1313_v15, %v2511_v0 }
 0x135   :  { %v1829_v4 = vadd.f32 %v1828_v36, %v1827_v26 }
 0x136   :  { %v1889_v42 = vpop.f32.mrf.mxu1  ;;  %v1351_v25 = vadd.f32 %v1350_v18, %v1336_v13 }
 0x137   :  { %v1890_v62 = vadd.f32 %v1889_v42, %v1888_v33 }
 0x138   :  { %v1891_v49 = vpop.f32.mrf.mxu1 }
 0x139   :  { %v1830_v51 = vpop.f32.mrf.mxu0  ;;  %v2517_v11 = vadd.f32 %v1890_v62, %v1826_v60 }
 0x13a   :  { %v1892_v55 = vpop.f32.mrf.mxu1 }
 0x13b   :  { %v1831_v63 = vpop.f32.mrf.mxu0  ;;  %v1893_v5 = vadd.f32 %v1892_v55, %v1891_v49  ;;  %v1337_v22 = vmul.f32 %v2517_v11, %v2517_v11  ;;  %v1315_v27 = vadd.f32 %v1314_v21, %v2517_v11 }
 0x13c   :  { %v1832_v17 = vadd.f32 %v1831_v63, %v1830_v51 }
 0x13d   :  { %v1833_v9 = vpop.f32.mrf.mxu0  ;;  %v2522_v16 = vadd.f32 %v1893_v5, %v1829_v4  ;;  %v1352_v33 = vadd.f32 %v1351_v25, %v1337_v22 }
 0x13f   :  { %v1834_v20 = vpop.f32.mrf.mxu0  ;;  %v1338_v28 = vmul.f32 %v2522_v16, %v2522_v16  ;;  %v1316_v34 = vadd.f32 %v1315_v27, %v2522_v16 }
 0x140   :  { %v1894_v14 = vpop.f32.mrf.mxu1  ;;  %v1835_v31 = vadd.f32 %v1834_v20, %v1833_v9 }
 0x141   :  { %v1353_v37 = vadd.f32 %v1352_v33, %v1338_v28 }
 0x142   :  { %v1895_v19 = vpop.f32.mrf.mxu1 }
 0x143   :  { %v1896_v24 = vadd.f32 %v1895_v19, %v1894_v14 }
 0x144   :  { %v1897_v26 = vpop.f32.mrf.mxu1 }
 0x145   :  { %v2530_v29 = vadd.f32 %v1896_v24, %v1832_v17 }
 0x146   :  { %v1898_v32 = vpop.f32.mrf.mxu1 }
 0x147   :  { %v1339_v35 = vmul.f32 %v2530_v29, %v2530_v29  ;;  %v1899_v36 = vadd.f32 %v1898_v32, %v1897_v26  ;;  %v1317_v39 = vadd.f32 %v1316_v34, %v2530_v29 }
 0x149   :  { %v1301_v41 = vadd.f32 %v1899_v36, %v1835_v31  ;;  %v1354_v42 = vadd.f32 %v1353_v37, %v1339_v35 }
 0x14b   :  { %v1318_v45 = vadd.f32 %v1317_v39, %v1301_v41  ;;  %v1340_v46 = vmul.f32 %v1301_v41, %v1301_v41 }
 0x14d   :  { %v1319_v40 = vrot.slane %v1318_v45, 4  ;;  %v1355_v44 = vadd.f32 %v1354_v42, %v1340_v46  ;;  %v1692_v42 = vld [vmem:[%s2600_s3] ss:$0 sm:$0xff] }
 0x14f   :  { %v1320_v48 = vadd.f32 %v1319_v40, %v1318_v45  ;;  %v1356_v49 = vrot.slane %v1355_v44, 4 }
 0x151   :  { %v1321_v50 = vrot.slane %v1320_v48, 2  ;;  %v1357_v51 = vadd.f32 %v1356_v49, %v1355_v44 }
 0x153   :  { %v1322_v52 = vadd.f32 %v1321_v50, %v1320_v48  ;;  %v1358_v47 = vrot.slane %v1357_v51, 2 }
 0x155   :  { %v1323_v55 = vrot.slane %v1322_v52, 1  ;;  %v1359_v56 = vadd.f32 %v1358_v47, %v1357_v51 }
 0x157   :  { %v1324_v60 = vadd.f32 %v1323_v55, %v1322_v52  ;;  %v1360_v62 = vrot.slane %v1359_v56, 1 }
 0x159   :  { %v1361_v63 = vadd.f32 %v1360_v62, %v1359_v56  ;;  %v1362_v1 = vmul.f32 0.0078125, %v1324_v60 }
 0x15b   :  { %v1363_v57 = vmul.f32 0.0078125, %v1361_v63  ;;  %v1364_v3 = vmul.f32 %v1362_v1, %v1362_v1  ;;  %v1367_v7 = vsub.f32 %v2463_v58, %v1362_v1  ;;  %v1368_v9 = vsub.f32 %v2461_v54, %v1362_v1 }
 0x15c   :  { %v1369_v10 = vsub.f32 %v2465_v59, %v1362_v1  ;;  %v1370_v12 = vsub.f32 %v2469_v2, %v1362_v1  ;;  %v1371_v13 = vsub.f32 %v2475_v8, %v1362_v1  ;;  %v1372_v14 = vsub.f32 %v2481_v61, %v1362_v1 }
 0x15d   :  { %v1365_v4 = vsub.f32 %v1363_v57, %v1364_v3  ;;  %v1373_v15 = vsub.f32 %v2486_v23, %v1362_v1  ;;  %v1374_v17 = vsub.f32 %v2491_v30, %v1362_v1  ;;  %v1375_v18 = vsub.f32 %v2496_v38, %v1362_v1 }
 0x15e   :  { %v1376_v19 = vsub.f32 %v2501_v43, %v1362_v1  ;;  %v1377_v58 = vsub.f32 %v2506_v53, %v1362_v1  ;;  %v1378_v54 = vsub.f32 %v2511_v0, %v1362_v1  ;;  %v1379_v59 = vsub.f32 %v2517_v11, %v1362_v1  ;;  %v1691_v53 = vld [vmem:[%s2599_s2] ss:$0 sm:$0xff] }
 0x15f   :  { %v1366_v5 = vmax.f32 %v1365_v4, 0.0  ;;  %v1380_v2 = vsub.f32 %v2522_v16, %v1362_v1  ;;  %v1381_v8 = vsub.f32 %v2530_v29, %v1362_v1  ;;  %v1382_v61 = vsub.f32 %v1301_v41, %v1362_v1 }
 0x161   :  { %v1383_v6 = vadd.f32 1e-05, %v1366_v5 }
 0x163   :  { %1980 = vrsqrt.f32 %v1383_v6 }
 0x170   :  { %v1981_v20 = vpop.eup %1980 }
 0x171   :  { %v1385_v21 = vmul.f32 %v1981_v20, %v1367_v7  ;;  %v1386_v23 = vmul.f32 %v1981_v20, %v1368_v9  ;;  %v1387_v22 = vmul.f32 %v1981_v20, %v1369_v10  ;;  %v1388_v30 = vmul.f32 %v1981_v20, %v1370_v12 }
 0x172   :  { %v1389_v24 = vmul.f32 %v1981_v20, %v1371_v13  ;;  %v1390_v38 = vmul.f32 %v1981_v20, %v1372_v14  ;;  %v1391_v25 = vmul.f32 %v1981_v20, %v1373_v15  ;;  %v1392_v43 = vmul.f32 %v1981_v20, %v1374_v17 }
 0x173   :  { %v1393_v0 = vmul.f32 %v1981_v20, %v1375_v18  ;;  %v1394_v26 = vmul.f32 %v1981_v20, %v1376_v19  ;;  %v1395_v11 = vmul.f32 %v1981_v20, %v1377_v58  ;;  %v1396_v27 = vmul.f32 %v1981_v20, %v1378_v54 }
 0x174   :  { %v1397_v16 = vmul.f32 %v1981_v20, %v1379_v59  ;;  %v1398_v28 = vmul.f32 %v1981_v20, %v1380_v2  ;;  %v1399_v29 = vmul.f32 %v1981_v20, %v1381_v8  ;;  %v1400_v31 = vmul.f32 %v1981_v20, %v1382_v61 }
 0x175   :  { %v1408_v32 = vmul.f32 %v1691_v53, %v1385_v21  ;;  %v1409_v33 = vmul.f32 %v1691_v53, %v1386_v23  ;;  %v1410_v34 = vmul.f32 %v1691_v53, %v1387_v22  ;;  %v1411_v35 = vmul.f32 %v1691_v53, %v1388_v30 }
 0x176   :  { %v1412_v36 = vmul.f32 %v1691_v53, %v1389_v24  ;;  %v1413_v37 = vmul.f32 %v1691_v53, %v1390_v38  ;;  %v1414_v39 = vmul.f32 %v1691_v53, %v1391_v25  ;;  %v1415_v41 = vmul.f32 %v1691_v53, %v1392_v43 }
 0x177   :  { %v1416_v45 = vmul.f32 %v1691_v53, %v1393_v0  ;;  %v1417_v46 = vmul.f32 %v1691_v53, %v1394_v26  ;;  %v1418_v40 = vmul.f32 %v1691_v53, %v1395_v11  ;;  %v1419_v44 = vmul.f32 %v1691_v53, %v1396_v27 }
 0x178   :  { %v1420_v48 = vmul.f32 %v1691_v53, %v1397_v16  ;;  %v1421_v49 = vmul.f32 %v1691_v53, %v1398_v28  ;;  %v1422_v50 = vmul.f32 %v1691_v53, %v1399_v29  ;;  %v1423_v51 = vmul.f32 %v1691_v53, %v1400_v31 }
 0x179   :  { %v1431_v52 = vadd.f32 %v1692_v42, %v1408_v32  ;;  %v1432_v47 = vadd.f32 %v1692_v42, %v1409_v33  ;;  %v1433_v55 = vadd.f32 %v1692_v42, %v1410_v34  ;;  %v1434_v56 = vadd.f32 %v1692_v42, %v1411_v35 }
 0x17a   :  { %v1435_v60 = vadd.f32 %v1692_v42, %v1412_v36  ;;  %v1436_v62 = vadd.f32 %v1692_v42, %v1413_v37  ;;  %v1437_v63 = vadd.f32 %v1692_v42, %v1414_v39  ;;  %v1438_v1 = vadd.f32 %v1692_v42, %v1415_v41 }
 0x17b   :  { %v1439_v57 = vadd.f32 %v1692_v42, %v1416_v45  ;;  %v1440_v3 = vadd.f32 %v1692_v42, %v1417_v46  ;;  %v1441_v4 = vadd.f32 %v1692_v42, %v1418_v40  ;;  %v1442_v5 = vadd.f32 %v1692_v42, %v1419_v44 }
 0x17c   :  { %v1443_v6 = vadd.f32 %v1692_v42, %v1420_v48  ;;  %v1444_v7 = vadd.f32 %v1692_v42, %v1421_v49  ;;  %v1445_v9 = vadd.f32 %v1692_v42, %v1422_v50  ;;  %v1446_v10 = vadd.f32 %v1692_v42, %v1423_v51 }
 0x17d   :  { %vm1447_vm3 = vcmp.gt.f32.partialorder %v1431_v52, 0.0  ;;  %vm1448_vm4 = vcmp.gt.f32.partialorder %v1432_v47, 0.0  ;;  %vm1449_vm5 = vcmp.gt.f32.partialorder %v1433_v55, 0.0  ;;  %vm1450_vm6 = vcmp.gt.f32.partialorder %v1434_v56, 0.0 }
 0x17e   :  { %vm1451_vm7 = vcmp.gt.f32.partialorder %v1435_v60, 0.0  ;;  %vm1452_vm8 = vcmp.gt.f32.partialorder %v1436_v62, 0.0  ;;  %vm1453_vm9 = vcmp.gt.f32.partialorder %v1437_v63, 0.0  ;;  %vm1454_vm10 = vcmp.gt.f32.partialorder %v1438_v1, 0.0 }
 0x17f   :  { %vm1455_vm11 = vcmp.gt.f32.partialorder %v1439_v57, 0.0  ;;  %vm1456_vm12 = vcmp.gt.f32.partialorder %v1440_v3, 0.0  ;;  %vm1457_vm13 = vcmp.gt.f32.partialorder %v1441_v4, 0.0  ;;  %vm1458_vm14 = vcmp.gt.f32.partialorder %v1442_v5, 0.0 }
 0x180   :  { %vm1459_vm15 = vcmp.gt.f32.partialorder %v1443_v6, 0.0  ;;  %vm1460_vm0 = vcmp.gt.f32.partialorder %v1444_v7, 0.0  ;;  %vm1461_vm1 = vcmp.gt.f32.partialorder %v1445_v9, 0.0  ;;  %vm1462_vm2 = vcmp.gt.f32.partialorder %v1446_v10, 0.0 }
 0x181   :  { %v1463_v12 = vmul.f32 0.2, %v1431_v52  ;;  %v1464_v13 = vmul.f32 0.2, %v1432_v47  ;;  %v1465_v14 = vmul.f32 0.2, %v1433_v55 }
 0x182   :  { %v1466_v15 = vmul.f32 0.2, %v1434_v56  ;;  %v1467_v17 = vmul.f32 0.2, %v1435_v60  ;;  %v1468_v18 = vmul.f32 0.2, %v1436_v62 }
 0x183   :  { %v1469_v19 = vmul.f32 0.2, %v1437_v63  ;;  %v1470_v58 = vmul.f32 0.2, %v1438_v1  ;;  %v1471_v54 = vmul.f32 0.2, %v1439_v57  ;;  %v1479_v20 = vsel %vm1447_vm3, %v1431_v52, %v1463_v12 }
 0x184   :  { %v1472_v59 = vmul.f32 0.2, %v1440_v3  ;;  %v1473_v2 = vmul.f32 0.2, %v1441_v4  ;;  %v1474_v8 = vmul.f32 0.2, %v1442_v5  ;;  %v1480_v61 = vsel %vm1448_vm4, %v1432_v47, %v1464_v13 }
 0x185   :  { %v1475_v21 = vmul.f32 0.2, %v1443_v6  ;;  %v1476_v23 = vmul.f32 0.2, %v1444_v7  ;;  %v1477_v22 = vmul.f32 0.2, %v1445_v9  ;;  %v1481_v30 = vsel %vm1449_vm5, %v1433_v55, %v1465_v14 }
 0x186   :  { %v1478_v24 = vmul.f32 0.2, %v1446_v10  ;;  %v1482_v38 = vsel %vm1450_vm6, %v1434_v56, %v1466_v15  ;;  %v1483_v25 = vsel %vm1451_vm7, %v1435_v60, %v1467_v17  ;;  %v1484_v43 = vsel %vm1452_vm8, %v1436_v62, %v1468_v18 }
 0x187   :  { %v1485_v53 = vsel %vm1453_vm9, %v1437_v63, %v1469_v19  ;;  %v1486_v0 = vsel %vm1454_vm10, %v1438_v1, %v1470_v58  ;;  %v1487_v26 = vsel %vm1455_vm11, %v1439_v57, %v1471_v54  ;;  %v1488_v11 = vsel %vm1456_vm12, %v1440_v3, %v1472_v59 }
 0x188   :  { %v1489_v27 = vsel %vm1457_vm13, %v1441_v4, %v1473_v2  ;;  %v1490_v16 = vsel %vm1458_vm14, %v1442_v5, %v1474_v8  ;;  %v1491_v28 = vsel %vm1459_vm15, %v1443_v6, %v1475_v21  ;;  %v1492_v29 = vsel %vm1460_vm0, %v1444_v7, %v1476_v23 }
 0x189   :  { %v1493_v31 = vsel %vm1461_vm1, %v1445_v9, %v1477_v22  ;;  %v1494_v32 = vsel %vm1462_vm2, %v1446_v10, %v1478_v24  ;;  %v1728_v33 = vpack.c.bf16 %v1480_v61, %v1479_v20  ;;  %v1733_v34 = vpack.c.bf16 %v1482_v38, %v1481_v30 }
 0x18a   :  { %v1738_v35 = vpack.c.bf16 %v1484_v43, %v1483_v25  ;;  %v1743_v36 = vpack.c.bf16 %v1486_v0, %v1485_v53  ;;  %v1748_v37 = vpack.c.bf16 %v1488_v11, %v1487_v26  ;;  %v1753_v39 = vpack.c.bf16 %v1490_v16, %v1489_v27 }
 0x18b   :  { %1729 = vst [vmem:[%s2601_s4] sm:$0xff] %v1728_v33   ;;  %1765 = vst [vmem:[%s2601_s4 + $0x8] sm:$0xff] %v1733_v34   ;;  %v1758_v41 = vpack.c.bf16 %v1492_v29, %v1491_v28  ;;  %v1763_v42 = vpack.c.bf16 %v1494_v32, %v1493_v31 }
 0x18c   :  { %1766 = vst [vmem:[%s2601_s4 + $0x10] sm:$0xff] %v1738_v35   ;;  %1767 = vst [vmem:[%s2601_s4 + $0x18] sm:$0xff] %v1743_v36  }
 0x18d   :  { %1768 = vst [vmem:[%s2601_s4 + $0x20] sm:$0xff] %v1748_v37   ;;  %1769 = vst [vmem:[%s2601_s4 + $0x28] sm:$0xff] %v1753_v39  }
 0x18e   :  { %1770 = vst [vmem:[%s2601_s4 + $0x30] sm:$0xff] %v1758_v41   ;;  %1771 = vst [vmem:[%s2601_s4 + $0x38] sm:$0xff] %v1763_v42  }

// kernel: full_conv_encoder.5
= control target key start
LH: loop header
LB: loop body
LE: loop exit
PB: predicated region body
PF: predicated region fallthrough
CT: control target
= control target key end

     0   :  { %v1140_v1 = vmov 0   ;;  %s1420_s1 = inlined_call_operand.vmem [shape: bf16[512,128], index: 1, kind: input, shape index: {}]   ;;  %s1421_s0 = inlined_call_operand.vmem [shape: bf16[2,5,8,128], index: 0, kind: input, shape index: {}]   ;;  %s1422_s2 = inlined_call_operand.vmem [shape: f32[1,128], index: 2, kind: input, shape index: {}]   ;;  %s1423_s3 = inlined_call_operand.vmem [shape: f32[1,128], index: 3, kind: input, shape index: {}]   ;;  %s1424_s4 = inlined_call_operand.vmem [shape: bf16[64,128], index: 4, kind: output, shape index: {}]  }
   0x1   :  { %v1082_v0 = vld [vmem:[%s1420_s1 + $0x78] sm:$0xff]   ;;  %18 = vst [vmem:[#allocation2] sm:$0xcc] %v1140_v1  ;;  %20 = vst [vmem:[#allocation2 + $0x10] sm:$0xcc] %v1140_v1  ;;  %v1086_v5 = vld [vmem:[%s1420_s1 + $0x70] sm:$0xff]  }
   0x2   :  { %19 = vst [vmem:[#allocation2 + $0x8] sm:$0xcc] %v1140_v1  ;;  %21 = vst [vmem:[#allocation2 + $0x18] sm:$0xcc] %v1140_v1  ;;  %v1083_v2 = vld [vmem:[%s1420_s1 + $0xf8] sm:$0xff]   ;;  %1001 = vmatprep.subr.bf16.mxu0 %v1082_v0  ;;  %v1087_v6 = vld [vmem:[%s1420_s1 + $0xf0] sm:$0xff]  }
   0x3   :  { %22 = vst [vmem:[#allocation2 + $0x20] sm:$0xcc] %v1140_v1  ;;  %23 = vst [vmem:[#allocation2 + $0x28] sm:$0xcc] %v1140_v1  ;;  %v1084_v3 = vld [vmem:[%s1420_s1 + $0x38] sm:$0xff]   ;;  %1041 = vmatprep.subr.bf16.mxu1 %v1083_v2  ;;  %v1088_v7 = vld [vmem:[%s1420_s1 + $0x30] sm:$0xff]  }
   0x4   :  { %24 = vst [vmem:[#allocation2 + $0x30] sm:$0xcc] %v1140_v1  ;;  %25 = vst [vmem:[#allocation2 + $0x38] sm:$0xcc] %v1140_v1  ;;  %v1085_v4 = vld [vmem:[%s1420_s1 + $0xb8] sm:$0xff]   ;;  %1002 = vmatpush3.bf16.msra.mxu0 %v1084_v3  ;;  %v1089_v8 = vld [vmem:[%s1420_s1 + $0xb0] sm:$0xff]  }
   0x5   :  { %26 = vst [vmem:[#allocation2 + $0x40] sm:$0xcc] %v1140_v1  ;;  %27 = vst [vmem:[#allocation2 + $0x48] sm:$0xcc] %v1140_v1  ;;  %1042 = vmatpush3.bf16.msra.mxu1 %v1085_v4  ;;  %1003 = vmatprep.subr.bf16.mxu0 %v1086_v5  ;;  %v1090_v9 = vld [vmem:[%s1420_s1 + $0x68] sm:$0xff]   ;;  %v1094_v13 = vld [vmem:[%s1420_s1 + $0x60] sm:$0xff]  }
   0x6   :  { %28 = vst [vmem:[#allocation2 + $0x50] sm:$0xcc] %v1140_v1  ;;  %29 = vst [vmem:[#allocation2 + $0x58] sm:$0xcc] %v1140_v1  ;;  %1043 = vmatprep.subr.bf16.mxu1 %v1087_v6  ;;  %v1091_v10 = vld [vmem:[%s1420_s1 + $0xe8] sm:$0xff]   ;;  %v1095_v14 = vld [vmem:[%s1420_s1 + $0xe0] sm:$0xff]  }
   0x7   :  { %30 = vst [vmem:[#allocation2 + $0x60] sm:$0xcc] %v1140_v1  ;;  %31 = vst [vmem:[#allocation2 + $0x68] sm:$0xcc] %v1140_v1  ;;  %v1092_v11 = vld [vmem:[%s1420_s1 + $0x28] sm:$0xff]   ;;  %v1096_v15 = vld [vmem:[%s1420_s1 + $0x20] sm:$0xff]  }
   0x8   :  { %32 = vst [vmem:[#allocation2 + $0x70] sm:$0xcc] %v1140_v1  ;;  %33 = vst [vmem:[#allocation2 + $0x78] sm:$0xcc] %v1140_v1  ;;  %1004 = vmatpush3.bf16.msra.mxu0 %v1088_v7  ;;  %v1093_v12 = vld [vmem:[%s1420_s1 + $0xa8] sm:$0xff]   ;;  %v1097_v16 = vld [vmem:[%s1420_s1 + $0xa0] sm:$0xff]  }
   0x9   :  { %1044 = vmatpush3.bf16.msra.mxu1 %v1089_v8  ;;  %1005 = vmatprep.subr.bf16.mxu0 %v1090_v9  ;;  %v1098_v17 = vld [vmem:[%s1420_s1 + $0x58] sm:$0xff]   ;;  %v1102_v21 = vld [vmem:[%s1420_s1 + $0x50] sm:$0xff]   ;;  %v1106_v25 = vld [vmem:[%s1420_s1 + $0x48] sm:$0xff]  }
   0xa   :  { %1045 = vmatprep.subr.bf16.mxu1 %v1091_v10  ;;  %v1099_v18 = vld [vmem:[%s1420_s1 + $0xd8] sm:$0xff]   ;;  %v1103_v22 = vld [vmem:[%s1420_s1 + $0xd0] sm:$0xff]   ;;  %v1107_v26 = vld [vmem:[%s1420_s1 + $0xc8] sm:$0xff]  }
   0xb   :  { %v1100_v19 = vld [vmem:[%s1420_s1 + $0x18] sm:$0xff]   ;;  %v1104_v23 = vld [vmem:[%s1420_s1 + $0x10] sm:$0xff]   ;;  %v1108_v27 = vld [vmem:[%s1420_s1 + $0x8] sm:$0xff]  }
   0xc   :  { %1006 = vmatpush3.bf16.msra.mxu0 %v1092_v11  ;;  %v1101_v20 = vld [vmem:[%s1420_s1 + $0x98] sm:$0xff]   ;;  %v1105_v24 = vld [vmem:[%s1420_s1 + $0x90] sm:$0xff]   ;;  %v1109_v28 = vld [vmem:[%s1420_s1 + $0x88] sm:$0xff]  }
   0xd   :  { %1046 = vmatpush3.bf16.msra.mxu1 %v1093_v12  ;;  %1007 = vmatprep.subr.bf16.mxu0 %v1094_v13  ;;  %v1110_v29 = vld [vmem:[%s1420_s1 + $0x40] sm:$0xff]   ;;  %v897_v42 = vld [vmem:[%s1421_s0 + $0x8] sm:$0x3]  ;;  %v37_v57 = vld [vmem:[%s1421_s0 + $0xc] sm:$0x3] }
   0xe   :  { %1047 = vmatprep.subr.bf16.mxu1 %v1095_v14  ;;  %v1111_v30 = vld [vmem:[%s1420_s1 + $0xc0] sm:$0xff]   ;;  %156 = vst [vmem:[#allocation2 + $0x18] sm:$0x3] %v897_v42  ;;  %v905_v46 = vld [vmem:[%s1421_s0 + $0x8] sm:$0x7] }
   0xf   :  { %v1112_v31 = vld [vmem:[%s1420_s1] sm:$0xff]   ;;  %v181_v51 = vshrl.u32 %v905_v46, 16  ;;  %v184_v52 = vshll.u32 %v905_v46, 16  ;;  %v36_v53 = vld [vmem:[%s1421_s0 + $0x8] sm:$0x3] }
  0x10   :  { %1008 = vmatpush3.bf16.msra.mxu0 %v1096_v15  ;;  %v1113_v32 = vld [vmem:[%s1420_s1 + $0x80] sm:$0xff]   ;;  %44 = vst [vmem:[#allocation2 + $0x20] sm:$0x3] %v36_v53  ;;  %v52_v58 = vld [vmem:[%s1421_s0 + $0x8] sm:$0x7] }
  0x11   :  { %1048 = vmatpush3.bf16.msra.mxu1 %v1097_v16  ;;  %1009 = vmatprep.subr.bf16.mxu0 %v1098_v17  ;;  %v34_v33 = vld [vmem:[%s1421_s0] sm:$0x3]  ;;  %v35_v34 = vld [vmem:[%s1421_s0 + $0x4] sm:$0x3]  ;;  %v183_v60 = vrot.slane %v181_v51, 4  ;;  %v186_v61 = vrot.slane %v184_v52, 5 }
  0x12   :  { %1049 = vmatprep.subr.bf16.mxu1 %v1099_v18  ;;  %v50_v35 = vld [vmem:[%s1421_s0] sm:$0x7]  ;;  %42 = vst [vmem:[#allocation2] sm:$0x3] %v34_v33  ;;  %43 = vst [vmem:[#allocation2 + $0x10] sm:$0x3] %v35_v34 }
  0x13   :  { %v51_v36 = vld [vmem:[%s1421_s0 + $0x4] sm:$0x7]  ;;  %v59_v37 = vshrl.u32 %v50_v35, 16  ;;  %v62_v38 = vshll.u32 %v50_v35, 16  ;;  %45 = vst [vmem:[#allocation2 + $0x30] sm:$0x3] %v37_v57  ;;  %v187_v6 = vor.u32 %v186_v61, %v183_v60 }
  0x14   :  { %1010 = vmatpush3.bf16.msra.mxu0 %v1100_v19  ;;  %v896_v39 = vld [vmem:[%s1421_s0 + $0x4] sm:$0x3]  ;;  %v68_v40 = vshrl.u32 %v51_v36, 16  ;;  %v71_v41 = vshll.u32 %v51_v36, 16  ;;  %v53_v62 = vld [vmem:[%s1421_s0 + $0xc] sm:$0x7] }
  0x15   :  { %1050 = vmatpush3.bf16.msra.mxu1 %v1101_v20  ;;  %1011 = vmatprep.subr.bf16.mxu0 %v1102_v21  ;;  %155 = vst [vmem:[#allocation2 + $0x8] sm:$0x3] %v896_v39  ;;  %v904_v43 = vld [vmem:[%s1421_s0 + $0x4] sm:$0x7]  ;;  %v61_v44 = vrot.slane %v59_v37, 4  ;;  %v64_v45 = vrot.slane %v62_v38, 5 }
  0x16   :  { %1051 = vmatprep.subr.bf16.mxu1 %v1103_v22  ;;  %v172_v47 = vshrl.u32 %v904_v43, 16  ;;  %v175_v48 = vshll.u32 %v904_v43, 16  ;;  %v70_v49 = vrot.slane %v68_v40, 4  ;;  %v73_v50 = vrot.slane %v71_v41, 5  ;;  %v898_v4 = vld [vmem:[%s1421_s0 + $0xc] sm:$0x3] }
  0x17   :  { %v65_v54 = vor.u32 %v64_v45, %v61_v44  ;;  %v77_v63 = vshrl.u32 %v52_v58, 16  ;;  %v80_v2 = vshll.u32 %v52_v58, 16  ;;  %v86_v3 = vshrl.u32 %v53_v62, 16  ;;  %v899_v9 = vld [vmem:[%s1421_s0 + $0x10] sm:$0x3] }
  0x18   :  { %1012 = vmatpush3.bf16.msra.mxu0 %v1104_v23  ;;  %v174_v55 = vrot.slane %v172_v47, 4  ;;  %v177_v56 = vrot.slane %v175_v48, 5  ;;  %v74_v59 = vor.u32 %v73_v50, %v70_v49  ;;  %v89_v8 = vshll.u32 %v53_v62, 16  ;;  %157 = vst [vmem:[#allocation2 + $0x28] sm:$0x3] %v898_v4 }
  0x19   :  { %1052 = vmatpush3.bf16.msra.mxu1 %v1105_v24  ;;  %1013 = vmatprep.subr.bf16.mxu0 %v1106_v25  ;;  %v66_v0 = vrot.slane %v65_v54, 4  ;;  %v79_v7 = vrot.slane %v77_v63, 4  ;;  %v82_v11 = vrot.slane %v80_v2, 5  ;;  %v88_v12 = vrot.slane %v86_v3, 4  ;;  %158 = vst [vmem:[#allocation2 + $0x38] sm:$0x3] %v899_v9 }
  0x1a   :  { %1053 = vmatprep.subr.bf16.mxu1 %v1107_v26  ;;  %v178_v1 = vor.u32 %v177_v56, %v174_v55  ;;  %v75_v5 = vrot.slane %v74_v59, 4  ;;  %v906_v13 = vld [vmem:[%s1421_s0 + $0xc] sm:$0x7]  ;;  %v188_v14 = vrot.slane %v187_v6, 4  ;;  %v91_v15 = vrot.slane %v89_v8, 5 }
  0x1b   :  { %138 = vst [vmem:[#allocation2 + $0x4] sm:$0x3] %v66_v0  ;;  %v907_v16 = vld [vmem:[%s1421_s0 + $0x10] sm:$0x7]  ;;  %v190_v17 = vshrl.u32 %v906_v13, 16  ;;  %v193_v18 = vshll.u32 %v906_v13, 16  ;;  %v83_v19 = vor.u32 %v82_v11, %v79_v7 }
  0x1c   :  { %1014 = vmatpush3.bf16.msra.mxu0 %v1108_v27  ;;  %v179_v10 = vrot.slane %v178_v1, 4  ;;  %139 = vst [vmem:[#allocation2 + $0x14] sm:$0x3] %v75_v5  ;;  %v199_v20 = vshrl.u32 %v907_v16, 16  ;;  %v202_v21 = vshll.u32 %v907_v16, 16  ;;  %v92_v24 = vor.u32 %v91_v15, %v88_v12 }
  0x1d   :  { %1054 = vmatpush3.bf16.msra.mxu1 %v1109_v28  ;;  %1015 = vmatprep.subr.bf16.mxu0 %v1110_v29  ;;  %v38_v22 = vld [vmem:[%s1421_s0 + $0x14] sm:$0x3]  ;;  %v39_v23 = vld [vmem:[%s1421_s0 + $0x18] sm:$0x3]  ;;  %252 = vst [vmem:[#allocation2 + $0x1c] sm:$0x3] %v188_v14 }
  0x1e   :  { %1055 = vmatprep.subr.bf16.mxu1 %v1111_v30  ;;  %251 = vst [vmem:[#allocation2 + $0xc] sm:$0x3] %v179_v10  ;;  %v192_v25 = vrot.slane %v190_v17, 4  ;;  %v195_v26 = vrot.slane %v193_v18, 5  ;;  %46 = vst [vmem:[#allocation2 + $0x40] sm:$0x3] %v38_v22 }
  0x1f   :  { %47 = vst [vmem:[#allocation2 + $0x50] sm:$0x3] %v39_v23  ;;  %v54_v27 = vld [vmem:[%s1421_s0 + $0x14] sm:$0x7]  ;;  %v55_v28 = vld [vmem:[%s1421_s0 + $0x18] sm:$0x7] }
  0x20   :  { %1016 = vmatpush3.bf16.msra.mxu0 %v1112_v31  ;;  %v84_v29 = vrot.slane %v83_v19, 4  ;;  %v201_v30 = vrot.slane %v199_v20, 4  ;;  %v204_v31 = vrot.slane %v202_v21, 5  ;;  %v900_v33 = vld [vmem:[%s1421_s0 + $0x18] sm:$0x3]  ;;  %v93_v34 = vrot.slane %v92_v24, 4 }
  0x21   :  { %1056 = vmatpush3.bf16.msra.mxu1 %v1113_v32  ;;  %v95_v32 = vshrl.u32 %v54_v27, 16  ;;  %v196_v35 = vor.u32 %v195_v26, %v192_v25  ;;  %v98_v36 = vshll.u32 %v54_v27, 16  ;;  %v104_v37 = vshrl.u32 %v55_v28, 16  ;;  %v901_v38 = vld [vmem:[%s1421_s0 + $0x1c] sm:$0x3] }
  0x22   :  { %159 = vst [vmem:[#allocation2 + $0x48] sm:$0x3] %v900_v33  ;;  %140 = vst [vmem:[#allocation2 + $0x24] sm:$0x3] %v84_v29  ;;  %v205_v39 = vor.u32 %v204_v31, %v201_v30  ;;  %v107_v41 = vshll.u32 %v55_v28, 16 }
  0x23   :  { %v97_v40 = vrot.slane %v95_v32, 4  ;;  %160 = vst [vmem:[#allocation2 + $0x58] sm:$0x3] %v901_v38  ;;  %v908_v42 = vld [vmem:[%s1421_s0 + $0x18] sm:$0x7]  ;;  %v197_v44 = vrot.slane %v196_v35, 4 }
  0x24   :  { %v909_v43 = vld [vmem:[%s1421_s0 + $0x1c] sm:$0x7]  ;;  %141 = vst [vmem:[#allocation2 + $0x34] sm:$0x3] %v93_v34  ;;  %v100_v45 = vrot.slane %v98_v36, 5  ;;  %v106_v46 = vrot.slane %v104_v37, 4 }
  0x25   :  { %v208_v47 = vshrl.u32 %v908_v42, 16  ;;  %v1114_v48 = vld [vmem:[#allocation2] ss:$16 sps:$4 sm:$0xff]   ;;  %v1116_v49 = vld [vmem:[#allocation2 + $0x4] ss:$16 sps:$4 sm:$0xff]   ;;  %v206_v50 = vrot.slane %v205_v39, 4 }
  0x26   :  { %253 = vst [vmem:[#allocation2 + $0x2c] sm:$0x3] %v197_v44  ;;  %v101_v51 = vor.u32 %v100_v45, %v97_v40  ;;  %v109_v52 = vrot.slane %v107_v41, 5  ;;  %v211_v54 = vshll.u32 %v908_v42, 16  ;;  %v40_v55 = vld [vmem:[%s1421_s0 + $0x1c] sm:$0x3]  ;;  %643 = vmatprep.mubr.bf16.mxu0 %v1116_v49 }
  0x27   :  { %v210_v53 = vrot.slane %v208_v47, 4  ;;  %v1117_v56 = vld [vmem:[#allocation2 + $0x8] ss:$16 sps:$4 sm:$0xff]   ;;  %v1119_v57 = vld [vmem:[#allocation2 + $0xc] ss:$16 sps:$4 sm:$0xff]   ;;  %v217_v58 = vshrl.u32 %v909_v43, 16  ;;  %644 = vmatmul.mubr.bf16.vlgmr.msra.gmra.mxu0 %v1114_v48 }
  0x28   :  { %254 = vst [vmem:[#allocation2 + $0x3c] sm:$0x3] %v206_v50  ;;  %48 = vst [vmem:[#allocation2 + $0x60] sm:$0x3] %v40_v55  ;;  %v102_v59 = vrot.slane %v101_v51, 4  ;;  %v110_v60 = vor.u32 %v109_v52, %v106_v46  ;;  %v213_v61 = vrot.slane %v211_v54, 5  ;;  %708 = vmatprep.mubr.bf16.mxu1 %v1119_v57 }
  0x29   :  { %v220_v62 = vshll.u32 %v909_v43, 16  ;;  %v41_v63 = vld [vmem:[%s1421_s0 + $0x20] sm:$0x3]  ;;  %v219_v0 = vrot.slane %v217_v58, 4  ;;  %v56_v1 = vld [vmem:[%s1421_s0 + $0x1c] sm:$0x7]  ;;  %709 = vmatmul.mubr.bf16.vlgmr.msra.gmra.mxu1 %v1117_v56 }
  0x2a   :  { %49 = vst [vmem:[#allocation2 + $0x70] sm:$0x3] %v41_v63  ;;  %v57_v2 = vld [vmem:[%s1421_s0 + $0x20] sm:$0x7]  ;;  %v111_v3 = vrot.slane %v110_v60, 4  ;;  %v214_v4 = vor.u32 %v213_v61, %v210_v53  ;;  %v113_v6 = vshrl.u32 %v56_v1, 16 }
  0x2b   :  { %142 = vst [vmem:[#allocation2 + $0x44] sm:$0x3] %v102_v59  ;;  %v222_v5 = vrot.slane %v220_v62, 5  ;;  %v902_v7 = vld [vmem:[%s1421_s0 + $0x20] sm:$0x3]  ;;  %v116_v10 = vshll.u32 %v56_v1, 16 }
  0x2c   :  { %v1120_v8 = vld [vmem:[#allocation2 + $0x24] ss:$16 sps:$4 sm:$0xff]   ;;  %v1124_v9 = vld [vmem:[#allocation2 + $0x20] ss:$16 sps:$4 sm:$0xff]   ;;  %161 = vst [vmem:[#allocation2 + $0x68] sm:$0x3] %v902_v7 }
  0x2d   :  { %143 = vst [vmem:[#allocation2 + $0x54] sm:$0x3] %v111_v3  ;;  %v215_v11 = vrot.slane %v214_v4, 4  ;;  %v223_v12 = vor.u32 %v222_v5, %v219_v0  ;;  %v115_v13 = vrot.slane %v113_v6, 4  ;;  %v122_v14 = vshrl.u32 %v57_v2, 16  ;;  %651 = vmatprep.mubr.bf16.mxu0 %v1120_v8 }
  0x2e   :  { %v903_v15 = vld [vmem:[%s1421_s0 + $0x24] sm:$0x3]  ;;  %v118_v16 = vrot.slane %v116_v10, 5  ;;  %v125_v17 = vshll.u32 %v57_v2, 16  ;;  %v910_v18 = vld [vmem:[%s1421_s0 + $0x20] sm:$0x7] }
  0x2f   :  { %162 = vst [vmem:[#allocation2 + $0x78] sm:$0x3] %v903_v15  ;;  %v1122_v19 = vld [vmem:[#allocation2 + $0x2c] ss:$16 sps:$4 sm:$0xff]   ;;  %v1125_v20 = vld [vmem:[#allocation2 + $0x28] ss:$16 sps:$4 sm:$0xff]   ;;  %652 = vmatmul.mubr.bf16.gmra.mxu0 %v1124_v9 }
  0x30   :  { %v224_v21 = vrot.slane %v223_v12, 4  ;;  %255 = vst [vmem:[#allocation2 + $0x4c] sm:$0x3] %v215_v11  ;;  %v119_v22 = vor.u32 %v118_v16, %v115_v13  ;;  %v124_v23 = vrot.slane %v122_v14, 4  ;;  %v127_v24 = vrot.slane %v125_v17, 5  ;;  %716 = vmatprep.mubr.bf16.mxu1 %v1122_v19 }
  0x31   :  { %v911_v25 = vld [vmem:[%s1421_s0 + $0x24] sm:$0x7]  ;;  %v226_v26 = vshrl.u32 %v910_v18, 16  ;;  %v229_v27 = vshll.u32 %v910_v18, 16  ;;  %717 = vmatmul.mubr.bf16.gmra.mxu1 %v1125_v20  ;;  %v1130_v38 = vld [vmem:[#allocation2 + $0x40] ss:$16 sps:$4 sm:$0xff]  }
  0x32   :  { %256 = vst [vmem:[#allocation2 + $0x5c] sm:$0x3] %v224_v21  ;;  %v235_v28 = vshrl.u32 %v911_v25, 16  ;;  %v238_v29 = vshll.u32 %v911_v25, 16  ;;  %v120_v30 = vrot.slane %v119_v22, 4  ;;  %v128_v31 = vor.u32 %v127_v24, %v124_v23 }
  0x33   :  { %v228_v32 = vrot.slane %v226_v26, 4  ;;  %v231_v33 = vrot.slane %v229_v27, 5  ;;  %v1131_v44 = vld [vmem:[#allocation2 + $0x48] ss:$16 sps:$4 sm:$0xff]   ;;  %v1136_v46 = vld [vmem:[#allocation2 + $0x60] ss:$16 sps:$4 sm:$0xff]  }
  0x34   :  { %v237_v34 = vrot.slane %v235_v28, 4  ;;  %v240_v35 = vrot.slane %v238_v29, 5  ;;  %v1126_v36 = vld [vmem:[#allocation2 + $0x44] ss:$16 sps:$4 sm:$0xff]   ;;  %v129_v37 = vrot.slane %v128_v31, 4 }
  0x35   :  { %144 = vst [vmem:[#allocation2 + $0x64] sm:$0x3] %v120_v30  ;;  %v232_v39 = vor.u32 %v231_v33, %v228_v32  ;;  %659 = vmatprep.mubr.bf16.mxu0 %v1126_v36 }
  0x36   :  { %v241_v40 = vor.u32 %v240_v35, %v237_v34  ;;  %145 = vst [vmem:[#allocation2 + $0x74] sm:$0x3] %v129_v37  ;;  %v1137_v48 = vld [vmem:[#allocation2 + $0x68] ss:$16 sps:$4 sm:$0xff]  }
  0x37   :  { %v233_v41 = vrot.slane %v232_v39, 4  ;;  %660 = vmatmul.mubr.bf16.gmra.mxu0 %v1130_v38 }
  0x38   :  { %v242_v42 = vrot.slane %v241_v40, 4 }
  0x39   :  { %v1128_v43 = vld [vmem:[#allocation2 + $0x4c] ss:$16 sps:$4 sm:$0xff]   ;;  %257 = vst [vmem:[#allocation2 + $0x6c] sm:$0x3] %v233_v41 }
  0x3a   :  { %258 = vst [vmem:[#allocation2 + $0x7c] sm:$0x3] %v242_v42  ;;  %724 = vmatprep.mubr.bf16.mxu1 %v1128_v43 }
  0x3b   :  { %725 = vmatmul.mubr.bf16.gmra.mxu1 %v1131_v44 }
  0x3d   :  { %v1132_v45 = vld [vmem:[#allocation2 + $0x64] ss:$16 sps:$4 sm:$0xff]  }
  0x3e   :  { %667 = vmatprep.mubr.bf16.mxu0 %v1132_v45 }
  0x3f   :  { %668 = vmatmul.mubr.bf16.gmra.mxu0 %v1136_v46 }
  0x41   :  { %v1134_v47 = vld [vmem:[#allocation2 + $0x6c] ss:$16 sps:$4 sm:$0xff]  }
  0x42   :  { %732 = vmatprep.mubr.bf16.mxu1 %v1134_v47 }
  0x43   :  { %733 = vmatmul.mubr.bf16.gmra.mxu1 %v1137_v48 }
  0xe7   :  { %v1017_v49 = vpop.f32.mrf.mxu0 }
  0xe9   :  { %v1057_v50 = vpop.f32.mrf.mxu1  ;;  %v1018_v51 = vpop.f32.mrf.mxu0 }
  0xea   :  { %v1019_v2 = vadd.f32 %v1018_v51, %v1017_v49 }
  0xeb   :  { %v1058_v52 = vpop.f32.mrf.mxu1  ;;  %v1020_v53 = vpop.f32.mrf.mxu0 }
  0xec   :  { %v1059_v3 = vadd.f32 %v1058_v52, %v1057_v50 }
  0xed   :  { %v1060_v54 = vpop.f32.mrf.mxu1  ;;  %v1021_v55 = vpop.f32.mrf.mxu0 }
  0xee   :  { %v1022_v62 = vadd.f32 %v1021_v55, %v1020_v53  ;;  %v1360_v13 = vadd.f32 %v1059_v3, %v1019_v2 }
  0xef   :  { %v1061_v56 = vpop.f32.mrf.mxu1  ;;  %v1023_v57 = vpop.f32.mrf.mxu0 }
  0xf0   :  { %v1062_v63 = vadd.f32 %v1061_v56, %v1060_v54  ;;  %v754_v24 = vmul.f32 %v1360_v13, %v1360_v13 }
  0xf1   :  { %v1063_v58 = vpop.f32.mrf.mxu1  ;;  %v1024_v59 = vpop.f32.mrf.mxu0 }
  0xf2   :  { %v1025_v4 = vadd.f32 %v1024_v59, %v1023_v57  ;;  %v1358_v8 = vadd.f32 %v1062_v63, %v1022_v62 }
  0xf3   :  { %v1064_v60 = vpop.f32.mrf.mxu1  ;;  %v1026_v61 = vpop.f32.mrf.mxu0 }
  0xf4   :  { %v1065_v5 = vadd.f32 %v1064_v60, %v1063_v58  ;;  %v755_v19 = vmul.f32 %v1358_v8, %v1358_v8  ;;  %v741_v28 = vadd.f32 %v1358_v8, %v1360_v13 }
  0xf5   :  { %v1066_v0 = vpop.f32.mrf.mxu1  ;;  %v1027_v1 = vpop.f32.mrf.mxu0 }
  0xf6   :  { %v1028_v9 = vadd.f32 %v1027_v1, %v1026_v61  ;;  %v1362_v14 = vadd.f32 %v1065_v5, %v1025_v4  ;;  %v762_v31 = vadd.f32 %v755_v19, %v754_v24 }
  0xf7   :  { %v1067_v6 = vpop.f32.mrf.mxu1  ;;  %v1029_v7 = vpop.f32.mrf.mxu0 }
  0xf8   :  { %v1068_v10 = vadd.f32 %v1067_v6, %v1066_v0  ;;  %v756_v25 = vmul.f32 %v1362_v14, %v1362_v14  ;;  %v742_v35 = vadd.f32 %v741_v28, %v1362_v14 }
  0xf9   :  { %v1030_v12 = vpop.f32.mrf.mxu0 }
  0xfa   :  { %v1031_v17 = vadd.f32 %v1030_v12, %v1029_v7  ;;  %v1366_v20 = vadd.f32 %v1068_v10, %v1028_v9  ;;  %v763_v38 = vadd.f32 %v762_v31, %v756_v25  ;;  %v960_v31 = vld [vmem:[%s1422_s2] ss:$0 sm:$0xff] }
  0xfb   :  { %v1069_v11 = vpop.f32.mrf.mxu1  ;;  %v1032_v16 = vpop.f32.mrf.mxu0 }
  0xfc   :  { %v757_v32 = vmul.f32 %v1366_v20, %v1366_v20  ;;  %v743_v41 = vadd.f32 %v742_v35, %v1366_v20 }
  0xfd   :  { %v1070_v15 = vpop.f32.mrf.mxu1  ;;  %v1033_v22 = vpop.f32.mrf.mxu0 }
  0xfe   :  { %v1071_v18 = vadd.f32 %v1070_v15, %v1069_v11  ;;  %v1034_v23 = vadd.f32 %v1033_v22, %v1032_v16  ;;  %v764_v44 = vadd.f32 %v763_v38, %v757_v32 }
  0xff   :  { %v1072_v21 = vpop.f32.mrf.mxu1  ;;  %v1035_v27 = vpop.f32.mrf.mxu0 }
 0x100   :  { %v1374_v29 = vadd.f32 %v1071_v18, %v1031_v17 }
 0x101   :  { %v1073_v26 = vpop.f32.mrf.mxu1  ;;  %v1036_v34 = vpop.f32.mrf.mxu0 }
 0x102   :  { %v1074_v30 = vadd.f32 %v1073_v26, %v1072_v21  ;;  %v1037_v37 = vadd.f32 %v1036_v34, %v1035_v27  ;;  %v758_v42 = vmul.f32 %v1374_v29, %v1374_v29  ;;  %v744_v47 = vadd.f32 %v743_v41, %v1374_v29 }
 0x103   :  { %v1075_v33 = vpop.f32.mrf.mxu1  ;;  %v1038_v40 = vpop.f32.mrf.mxu0 }
 0x104   :  { %v1379_v36 = vadd.f32 %v1074_v30, %v1034_v23  ;;  %v765_v52 = vadd.f32 %v764_v44, %v758_v42 }
 0x105   :  { %v1076_v39 = vpop.f32.mrf.mxu1  ;;  %v1039_v46 = vpop.f32.mrf.mxu0 }
 0x106   :  { %v1077_v43 = vadd.f32 %v1076_v39, %v1075_v33  ;;  %v759_v48 = vmul.f32 %v1379_v36, %v1379_v36  ;;  %v1040_v50 = vadd.f32 %v1039_v46, %v1038_v40  ;;  %v745_v53 = vadd.f32 %v744_v47, %v1379_v36 }
 0x107   :  { %v1078_v45 = vpop.f32.mrf.mxu1 }
 0x108   :  { %v735_v49 = vadd.f32 %v1077_v43, %v1037_v37  ;;  %v766_v56 = vadd.f32 %v765_v52, %v759_v48 }
 0x109   :  { %v1079_v51 = vpop.f32.mrf.mxu1 }
 0x10a   :  { %v760_v54 = vmul.f32 %v735_v49, %v735_v49  ;;  %v1080_v55 = vadd.f32 %v1079_v51, %v1078_v45  ;;  %v746_v57 = vadd.f32 %v745_v53, %v735_v49 }
 0x10c   :  { %v738_v58 = vadd.f32 %v1080_v55, %v1040_v50  ;;  %v767_v59 = vadd.f32 %v766_v56, %v760_v54 }
 0x10e   :  { %v747_v60 = vadd.f32 %v746_v57, %v738_v58  ;;  %v761_v61 = vmul.f32 %v738_v58, %v738_v58 }
 0x110   :  { %v748_v62 = vrot.slane %v747_v60, 4  ;;  %v768_v63 = vadd.f32 %v767_v59, %v761_v61 }
 0x112   :  { %v749_v0 = vadd.f32 %v748_v62, %v747_v60  ;;  %v769_v1 = vrot.slane %v768_v63, 4 }
 0x114   :  { %v750_v2 = vrot.slane %v749_v0, 2  ;;  %v770_v3 = vadd.f32 %v769_v1, %v768_v63 }
 0x116   :  { %v751_v4 = vadd.f32 %v750_v2, %v749_v0  ;;  %v771_v5 = vrot.slane %v770_v3, 2 }
 0x118   :  { %v752_v6 = vrot.slane %v751_v4, 1  ;;  %v772_v7 = vadd.f32 %v771_v5, %v770_v3 }
 0x11a   :  { %v753_v9 = vadd.f32 %v752_v6, %v751_v4  ;;  %v773_v10 = vrot.slane %v772_v7, 1 }
 0x11c   :  { %v774_v11 = vadd.f32 %v773_v10, %v772_v7  ;;  %v775_v12 = vmul.f32 0.03125, %v753_v9 }
 0x11e   :  { %v776_v15 = vmul.f32 0.03125, %v774_v11  ;;  %v777_v16 = vmul.f32 %v775_v12, %v775_v12  ;;  %v780_v21 = vsub.f32 %v1360_v13, %v775_v12  ;;  %v781_v22 = vsub.f32 %v1358_v8, %v775_v12 }
 0x11f   :  { %v782_v23 = vsub.f32 %v1362_v14, %v775_v12  ;;  %v783_v24 = vsub.f32 %v1366_v20, %v775_v12  ;;  %v784_v26 = vsub.f32 %v1374_v29, %v775_v12  ;;  %v785_v27 = vsub.f32 %v1379_v36, %v775_v12  ;;  %v961_v20 = vld [vmem:[%s1423_s3] ss:$0 sm:$0xff] }
 0x120   :  { %v778_v17 = vsub.f32 %v776_v15, %v777_v16  ;;  %v786_v28 = vsub.f32 %v735_v49, %v775_v12  ;;  %v787_v30 = vsub.f32 %v738_v58, %v775_v12 }
 0x122   :  { %v779_v18 = vmax.f32 %v778_v17, 0.0 }
 0x124   :  { %v788_v19 = vadd.f32 1e-05, %v779_v18 }
 0x126   :  { %1138 = vrsqrt.f32 %v788_v19 }
 0x133   :  { %v1139_v25 = vpop.eup %1138 }
 0x134   :  { %v790_v32 = vmul.f32 %v1139_v25, %v780_v21  ;;  %v791_v33 = vmul.f32 %v1139_v25, %v781_v22  ;;  %v792_v13 = vmul.f32 %v1139_v25, %v782_v23  ;;  %v793_v34 = vmul.f32 %v1139_v25, %v783_v24 }
 0x135   :  { %v794_v8 = vmul.f32 %v1139_v25, %v784_v26  ;;  %v795_v35 = vmul.f32 %v1139_v25, %v785_v27  ;;  %v796_v14 = vmul.f32 %v1139_v25, %v786_v28  ;;  %v797_v37 = vmul.f32 %v1139_v25, %v787_v30 }
 0x136   :  { %v805_v29 = vmul.f32 %v960_v31, %v790_v32  ;;  %v806_v36 = vmul.f32 %v960_v31, %v791_v33  ;;  %v807_v38 = vmul.f32 %v960_v31, %v792_v13  ;;  %v808_v39 = vmul.f32 %v960_v31, %v793_v34 }
 0x137   :  { %v809_v40 = vmul.f32 %v960_v31, %v794_v8  ;;  %v810_v41 = vmul.f32 %v960_v31, %v795_v35  ;;  %v811_v42 = vmul.f32 %v960_v31, %v796_v14  ;;  %v812_v43 = vmul.f32 %v960_v31, %v797_v37 }
 0x138   :  { %v820_v44 = vadd.f32 %v961_v20, %v805_v29  ;;  %v821_v45 = vadd.f32 %v961_v20, %v806_v36  ;;  %v822_v46 = vadd.f32 %v961_v20, %v807_v38  ;;  %v823_v47 = vadd.f32 %v961_v20, %v808_v39 }
 0x139   :  { %v824_v48 = vadd.f32 %v961_v20, %v809_v40  ;;  %v825_v49 = vadd.f32 %v961_v20, %v810_v41  ;;  %v826_v50 = vadd.f32 %v961_v20, %v811_v42  ;;  %v827_v51 = vadd.f32 %v961_v20, %v812_v43 }
 0x13a   :  { %vm828_vm0 = vcmp.gt.f32.partialorder %v820_v44, 0.0  ;;  %vm829_vm1 = vcmp.gt.f32.partialorder %v821_v45, 0.0  ;;  %vm830_vm2 = vcmp.gt.f32.partialorder %v822_v46, 0.0  ;;  %vm831_vm3 = vcmp.gt.f32.partialorder %v823_v47, 0.0 }
 0x13b   :  { %vm832_vm4 = vcmp.gt.f32.partialorder %v824_v48, 0.0  ;;  %vm833_vm5 = vcmp.gt.f32.partialorder %v825_v49, 0.0  ;;  %vm834_vm6 = vcmp.gt.f32.partialorder %v826_v50, 0.0  ;;  %vm835_vm7 = vcmp.gt.f32.partialorder %v827_v51, 0.0 }
 0x13c   :  { %v836_v52 = vmul.f32 0.2, %v820_v44  ;;  %v837_v53 = vmul.f32 0.2, %v821_v45  ;;  %v838_v54 = vmul.f32 0.2, %v822_v46 }
 0x13d   :  { %v839_v55 = vmul.f32 0.2, %v823_v47  ;;  %v840_v56 = vmul.f32 0.2, %v824_v48  ;;  %v841_v57 = vmul.f32 0.2, %v825_v49 }
 0x13e   :  { %v842_v58 = vmul.f32 0.2, %v826_v50  ;;  %v843_v59 = vmul.f32 0.2, %v827_v51  ;;  %v844_v60 = vsel %vm828_vm0, %v820_v44, %v836_v52  ;;  %v845_v61 = vsel %vm829_vm1, %v821_v45, %v837_v53 }
 0x13f   :  { %v846_v62 = vsel %vm830_vm2, %v822_v46, %v838_v54  ;;  %v847_v63 = vsel %vm831_vm3, %v823_v47, %v839_v55  ;;  %v848_v0 = vsel %vm832_vm4, %v824_v48, %v840_v56  ;;  %v849_v1 = vsel %vm833_vm5, %v825_v49, %v841_v57 }
 0x140   :  { %v850_v2 = vsel %vm834_vm6, %v826_v50, %v842_v58  ;;  %v851_v3 = vsel %vm835_vm7, %v827_v51, %v843_v59  ;;  %v981_v4 = vpack.c.bf16 %v845_v61, %v844_v60  ;;  %v986_v5 = vpack.c.bf16 %v847_v63, %v846_v62 }
 0x141   :  { %v991_v6 = vpack.c.bf16 %v849_v1, %v848_v0  ;;  %v996_v7 = vpack.c.bf16 %v851_v3, %v850_v2 }
 0x142   :  { %982 = vst [vmem:[%s1424_s4] sm:$0xff] %v981_v4   ;;  %998 = vst [vmem:[%s1424_s4 + $0x8] sm:$0xff] %v986_v5  }
 0x143   :  { %999 = vst [vmem:[%s1424_s4 + $0x10] sm:$0xff] %v991_v6   ;;  %1000 = vst [vmem:[%s1424_s4 + $0x18] sm:$0xff] %v996_v7  }

// kernel: full_conv_encoder.6
= control target key start
LH: loop header
LB: loop body
LE: loop exit
PB: predicated region body
PF: predicated region fallthrough
CT: control target
= control target key end

     0   :  { %v808_v1 = vmov 0   ;;  %s990_s1 = inlined_call_operand.vmem [shape: bf16[512,128], index: 1, kind: input, shape index: {}]   ;;  %s991_s0 = inlined_call_operand.vmem [shape: bf16[2,3,8,128], index: 0, kind: input, shape index: {}]   ;;  %s992_s2 = inlined_call_operand.vmem [shape: f32[1,128], index: 2, kind: input, shape index: {}]   ;;  %s993_s3 = inlined_call_operand.vmem [shape: f32[1,128], index: 3, kind: input, shape index: {}]   ;;  %s994_s4 = inlined_call_operand.vmem [shape: bf16[32,128], index: 4, kind: output, shape index: {}]  }
   0x1   :  { %v762_v0 = vld [vmem:[%s990_s1 + $0x78] sm:$0xff]   ;;  %18 = vst [vmem:[#allocation2] sm:$0xee] %v808_v1  ;;  %20 = vst [vmem:[#allocation2 + $0x10] sm:$0xee] %v808_v1  ;;  %v766_v5 = vld [vmem:[%s990_s1 + $0x70] sm:$0xff]  }
   0x2   :  { %19 = vst [vmem:[#allocation2 + $0x8] sm:$0xee] %v808_v1  ;;  %21 = vst [vmem:[#allocation2 + $0x18] sm:$0xee] %v808_v1  ;;  %v763_v2 = vld [vmem:[%s990_s1 + $0xf8] sm:$0xff]   ;;  %705 = vmatprep.subr.bf16.mxu0 %v762_v0  ;;  %v767_v6 = vld [vmem:[%s990_s1 + $0xf0] sm:$0xff]  }
   0x3   :  { %22 = vst [vmem:[#allocation2 + $0x20] sm:$0xee] %v808_v1  ;;  %23 = vst [vmem:[#allocation2 + $0x28] sm:$0xee] %v808_v1  ;;  %v764_v3 = vld [vmem:[%s990_s1 + $0x38] sm:$0xff]   ;;  %733 = vmatprep.subr.bf16.mxu1 %v763_v2  ;;  %v768_v7 = vld [vmem:[%s990_s1 + $0x30] sm:$0xff]  }
   0x4   :  { %24 = vst [vmem:[#allocation2 + $0x30] sm:$0xee] %v808_v1  ;;  %25 = vst [vmem:[#allocation2 + $0x38] sm:$0xee] %v808_v1  ;;  %v765_v4 = vld [vmem:[%s990_s1 + $0xb8] sm:$0xff]   ;;  %706 = vmatpush3.bf16.msra.mxu0 %v764_v3  ;;  %v769_v8 = vld [vmem:[%s990_s1 + $0xb0] sm:$0xff]  }
   0x5   :  { %734 = vmatpush3.bf16.msra.mxu1 %v765_v4  ;;  %707 = vmatprep.subr.bf16.mxu0 %v766_v5  ;;  %v770_v9 = vld [vmem:[%s990_s1 + $0x68] sm:$0xff]   ;;  %v774_v13 = vld [vmem:[%s990_s1 + $0x60] sm:$0xff]   ;;  %v778_v17 = vld [vmem:[%s990_s1 + $0x58] sm:$0xff]  }
   0x6   :  { %735 = vmatprep.subr.bf16.mxu1 %v767_v6  ;;  %v771_v10 = vld [vmem:[%s990_s1 + $0xe8] sm:$0xff]   ;;  %v775_v14 = vld [vmem:[%s990_s1 + $0xe0] sm:$0xff]   ;;  %v779_v18 = vld [vmem:[%s990_s1 + $0xd8] sm:$0xff]  }
   0x7   :  { %v772_v11 = vld [vmem:[%s990_s1 + $0x28] sm:$0xff]   ;;  %v776_v15 = vld [vmem:[%s990_s1 + $0x20] sm:$0xff]   ;;  %v780_v19 = vld [vmem:[%s990_s1 + $0x18] sm:$0xff]  }
   0x8   :  { %708 = vmatpush3.bf16.msra.mxu0 %v768_v7  ;;  %v773_v12 = vld [vmem:[%s990_s1 + $0xa8] sm:$0xff]   ;;  %v777_v16 = vld [vmem:[%s990_s1 + $0xa0] sm:$0xff]   ;;  %v781_v20 = vld [vmem:[%s990_s1 + $0x98] sm:$0xff]  }
   0x9   :  { %736 = vmatpush3.bf16.msra.mxu1 %v769_v8  ;;  %709 = vmatprep.subr.bf16.mxu0 %v770_v9  ;;  %v782_v21 = vld [vmem:[%s990_s1 + $0x50] sm:$0xff]   ;;  %v786_v25 = vld [vmem:[%s990_s1 + $0x48] sm:$0xff]   ;;  %v790_v29 = vld [vmem:[%s990_s1 + $0x40] sm:$0xff]  }
   0xa   :  { %737 = vmatprep.subr.bf16.mxu1 %v771_v10  ;;  %v783_v22 = vld [vmem:[%s990_s1 + $0xd0] sm:$0xff]   ;;  %v787_v26 = vld [vmem:[%s990_s1 + $0xc8] sm:$0xff]   ;;  %v791_v30 = vld [vmem:[%s990_s1 + $0xc0] sm:$0xff]  }
   0xb   :  { %v784_v23 = vld [vmem:[%s990_s1 + $0x10] sm:$0xff]   ;;  %v788_v27 = vld [vmem:[%s990_s1 + $0x8] sm:$0xff]   ;;  %v792_v31 = vld [vmem:[%s990_s1] sm:$0xff]  }
   0xc   :  { %710 = vmatpush3.bf16.msra.mxu0 %v772_v11  ;;  %v785_v24 = vld [vmem:[%s990_s1 + $0x90] sm:$0xff]   ;;  %v789_v28 = vld [vmem:[%s990_s1 + $0x88] sm:$0xff]   ;;  %v793_v32 = vld [vmem:[%s990_s1 + $0x80] sm:$0xff]  }
   0xd   :  { %738 = vmatpush3.bf16.msra.mxu1 %v773_v12  ;;  %711 = vmatprep.subr.bf16.mxu0 %v774_v13  ;;  %v26_v33 = vld [vmem:[%s991_s0] sm:$0x1]  ;;  %v27_v34 = vld [vmem:[%s991_s0 + $0x4] sm:$0x1]  ;;  %v637_v42 = vld [vmem:[%s991_s0 + $0x8] sm:$0x1] }
   0xe   :  { %739 = vmatprep.subr.bf16.mxu1 %v775_v14  ;;  %v34_v35 = vld [vmem:[%s991_s0] sm:$0x3]  ;;  %30 = vst [vmem:[#allocation2] sm:$0x1] %v26_v33  ;;  %31 = vst [vmem:[#allocation2 + $0x10] sm:$0x1] %v27_v34 }
   0xf   :  { %v35_v36 = vld [vmem:[%s991_s0 + $0x4] sm:$0x3]  ;;  %v39_v37 = vshrl.u32 %v34_v35, 16  ;;  %v42_v38 = vshll.u32 %v34_v35, 16  ;;  %88 = vst [vmem:[#allocation2 + $0x18] sm:$0x1] %v637_v42 }
  0x10   :  { %712 = vmatpush3.bf16.msra.mxu0 %v776_v15  ;;  %v636_v39 = vld [vmem:[%s991_s0 + $0x4] sm:$0x1]  ;;  %v48_v40 = vshrl.u32 %v35_v36, 16  ;;  %v51_v41 = vshll.u32 %v35_v36, 16  ;;  %v641_v46 = vld [vmem:[%s991_s0 + $0x8] sm:$0x3] }
  0x11   :  { %740 = vmatpush3.bf16.msra.mxu1 %v777_v16  ;;  %713 = vmatprep.subr.bf16.mxu0 %v778_v17  ;;  %87 = vst [vmem:[#allocation2 + $0x8] sm:$0x1] %v636_v39  ;;  %v640_v43 = vld [vmem:[%s991_s0 + $0x4] sm:$0x3]  ;;  %v41_v44 = vrot.slane %v39_v37, 4  ;;  %v44_v45 = vrot.slane %v42_v38, 5 }
  0x12   :  { %741 = vmatprep.subr.bf16.mxu1 %v779_v18  ;;  %v96_v47 = vshrl.u32 %v640_v43, 16  ;;  %v99_v48 = vshll.u32 %v640_v43, 16  ;;  %v50_v49 = vrot.slane %v48_v40, 4  ;;  %v53_v50 = vrot.slane %v51_v41, 5  ;;  %v28_v53 = vld [vmem:[%s991_s0 + $0xc] sm:$0x1] }
  0x13   :  { %v105_v51 = vshrl.u32 %v641_v46, 16  ;;  %v108_v52 = vshll.u32 %v641_v46, 16  ;;  %v45_v54 = vor.u32 %v44_v45, %v41_v44  ;;  %v29_v57 = vld [vmem:[%s991_s0 + $0x10] sm:$0x1]  ;;  %32 = vst [vmem:[#allocation2 + $0x20] sm:$0x1] %v28_v53 }
  0x14   :  { %714 = vmatpush3.bf16.msra.mxu0 %v780_v19  ;;  %v98_v55 = vrot.slane %v96_v47, 4  ;;  %v101_v56 = vrot.slane %v99_v48, 5  ;;  %v36_v58 = vld [vmem:[%s991_s0 + $0xc] sm:$0x3]  ;;  %v54_v59 = vor.u32 %v53_v50, %v50_v49  ;;  %33 = vst [vmem:[#allocation2 + $0x30] sm:$0x1] %v29_v57 }
  0x15   :  { %742 = vmatpush3.bf16.msra.mxu1 %v781_v20  ;;  %715 = vmatprep.subr.bf16.mxu0 %v782_v21  ;;  %v107_v60 = vrot.slane %v105_v51, 4  ;;  %v110_v61 = vrot.slane %v108_v52, 5  ;;  %v37_v62 = vld [vmem:[%s991_s0 + $0x10] sm:$0x3]  ;;  %v57_v63 = vshrl.u32 %v36_v58, 16  ;;  %v46_v0 = vrot.slane %v45_v54, 4 }
  0x16   :  { %743 = vmatprep.subr.bf16.mxu1 %v783_v22  ;;  %v102_v1 = vor.u32 %v101_v56, %v98_v55  ;;  %v60_v2 = vshll.u32 %v36_v58, 16  ;;  %v66_v3 = vshrl.u32 %v37_v62, 16  ;;  %v638_v4 = vld [vmem:[%s991_s0 + $0x10] sm:$0x1]  ;;  %v55_v5 = vrot.slane %v54_v59, 4 }
  0x17   :  { %v111_v6 = vor.u32 %v110_v61, %v107_v60  ;;  %v59_v7 = vrot.slane %v57_v63, 4  ;;  %v69_v8 = vshll.u32 %v37_v62, 16  ;;  %v639_v9 = vld [vmem:[%s991_s0 + $0x14] sm:$0x1]  ;;  %89 = vst [vmem:[#allocation2 + $0x28] sm:$0x1] %v638_v4 }
  0x18   :  { %716 = vmatpush3.bf16.msra.mxu0 %v784_v23  ;;  %78 = vst [vmem:[#allocation2 + $0x4] sm:$0x1] %v46_v0  ;;  %v103_v10 = vrot.slane %v102_v1, 4  ;;  %v62_v11 = vrot.slane %v60_v2, 5  ;;  %v68_v12 = vrot.slane %v66_v3, 4 }
  0x19   :  { %744 = vmatpush3.bf16.msra.mxu1 %v785_v24  ;;  %717 = vmatprep.subr.bf16.mxu0 %v786_v25  ;;  %90 = vst [vmem:[#allocation2 + $0x38] sm:$0x1] %v639_v9  ;;  %v642_v13 = vld [vmem:[%s991_s0 + $0x10] sm:$0x3]  ;;  %79 = vst [vmem:[#allocation2 + $0x14] sm:$0x1] %v55_v5 }
  0x1a   :  { %745 = vmatprep.subr.bf16.mxu1 %v787_v26  ;;  %v112_v14 = vrot.slane %v111_v6, 4  ;;  %v71_v15 = vrot.slane %v69_v8, 5  ;;  %v643_v16 = vld [vmem:[%s991_s0 + $0x14] sm:$0x3]  ;;  %v114_v17 = vshrl.u32 %v642_v13, 16  ;;  %v117_v18 = vshll.u32 %v642_v13, 16 }
  0x1b   :  { %135 = vst [vmem:[#allocation2 + $0xc] sm:$0x1] %v103_v10  ;;  %v63_v19 = vor.u32 %v62_v11, %v59_v7  ;;  %v123_v20 = vshrl.u32 %v643_v16, 16  ;;  %v126_v21 = vshll.u32 %v643_v16, 16  ;;  %v797_v35 = vld [vmem:[#allocation2 + $0x8] ss:$16 sps:$4 sm:$0xff]  }
  0x1c   :  { %718 = vmatpush3.bf16.msra.mxu0 %v788_v27  ;;  %136 = vst [vmem:[#allocation2 + $0x1c] sm:$0x1] %v112_v14  ;;  %v72_v22 = vor.u32 %v71_v15, %v68_v12  ;;  %v116_v23 = vrot.slane %v114_v17, 4  ;;  %v119_v24 = vrot.slane %v117_v18, 5  ;;  %v804_v38 = vld [vmem:[#allocation2 + $0x20] ss:$16 sps:$4 sm:$0xff]  }
  0x1d   :  { %746 = vmatpush3.bf16.msra.mxu1 %v789_v28  ;;  %719 = vmatprep.subr.bf16.mxu0 %v790_v29  ;;  %v64_v25 = vrot.slane %v63_v19, 4  ;;  %v125_v26 = vrot.slane %v123_v20, 4  ;;  %v128_v27 = vrot.slane %v126_v21, 5 }
  0x1e   :  { %747 = vmatprep.subr.bf16.mxu1 %v791_v30  ;;  %v73_v28 = vrot.slane %v72_v22, 4  ;;  %v120_v29 = vor.u32 %v119_v24, %v116_v23 }
  0x1f   :  { %80 = vst [vmem:[#allocation2 + $0x24] sm:$0x1] %v64_v25  ;;  %v129_v30 = vor.u32 %v128_v27, %v125_v26 }
  0x20   :  { %720 = vmatpush3.bf16.msra.mxu0 %v792_v31  ;;  %81 = vst [vmem:[#allocation2 + $0x34] sm:$0x1] %v73_v28  ;;  %v121_v31 = vrot.slane %v120_v29, 4  ;;  %v796_v33 = vld [vmem:[#allocation2 + $0x4] ss:$16 sps:$4 sm:$0xff]  }
  0x21   :  { %748 = vmatpush3.bf16.msra.mxu1 %v793_v32  ;;  %v794_v32 = vld [vmem:[#allocation2] ss:$16 sps:$4 sm:$0xff]   ;;  %v130_v34 = vrot.slane %v129_v30, 4  ;;  %475 = vmatprep.mubr.bf16.mxu0 %v796_v33  ;;  %v805_v40 = vld [vmem:[#allocation2 + $0x28] ss:$16 sps:$4 sm:$0xff]  }
  0x22   :  { %137 = vst [vmem:[#allocation2 + $0x2c] sm:$0x1] %v121_v31 }
  0x23   :  { %v799_v36 = vld [vmem:[#allocation2 + $0xc] ss:$16 sps:$4 sm:$0xff]   ;;  %138 = vst [vmem:[#allocation2 + $0x3c] sm:$0x1] %v130_v34  ;;  %476 = vmatmul.mubr.bf16.vlgmr.msra.gmra.mxu0 %v794_v32 }
  0x24   :  { %524 = vmatprep.mubr.bf16.mxu1 %v799_v36 }
  0x25   :  { %525 = vmatmul.mubr.bf16.vlgmr.msra.gmra.mxu1 %v797_v35 }
  0x27   :  { %v800_v37 = vld [vmem:[#allocation2 + $0x24] ss:$16 sps:$4 sm:$0xff]  }
  0x28   :  { %483 = vmatprep.mubr.bf16.mxu0 %v800_v37 }
  0x2a   :  { %v802_v39 = vld [vmem:[#allocation2 + $0x2c] ss:$16 sps:$4 sm:$0xff]  }
  0x2b   :  { %532 = vmatprep.mubr.bf16.mxu1 %v802_v39  ;;  %484 = vmatmul.mubr.bf16.gmra.mxu0 %v804_v38  ;;  %v684_v38 = vld [vmem:[%s992_s2] ss:$0 sm:$0xff] }
  0x2d   :  { %533 = vmatmul.mubr.bf16.gmra.mxu1 %v805_v40 }
  0xe3   :  { %v721_v41 = vpop.f32.mrf.mxu0 }
  0xe5   :  { %v749_v42 = vpop.f32.mrf.mxu1  ;;  %v722_v43 = vpop.f32.mrf.mxu0 }
  0xe6   :  { %v723_v51 = vadd.f32 %v722_v43, %v721_v41  ;;  %v685_v43 = vld [vmem:[%s993_s3] ss:$0 sm:$0xff] }
  0xe7   :  { %v750_v44 = vpop.f32.mrf.mxu1  ;;  %v724_v45 = vpop.f32.mrf.mxu0 }
  0xe8   :  { %v751_v52 = vadd.f32 %v750_v44, %v749_v42 }
  0xe9   :  { %v752_v46 = vpop.f32.mrf.mxu1  ;;  %v725_v47 = vpop.f32.mrf.mxu0 }
  0xea   :  { %v726_v48 = vadd.f32 %v725_v47, %v724_v45  ;;  %v527_v60 = vadd.f32 %v751_v52, %v723_v51 }
  0xeb   :  { %v753_v49 = vpop.f32.mrf.mxu1  ;;  %v727_v50 = vpop.f32.mrf.mxu0 }
  0xec   :  { %v754_v53 = vadd.f32 %v753_v49, %v752_v46  ;;  %v550_v4 = vmul.f32 %v527_v60, %v527_v60 }
  0xed   :  { %v755_v54 = vpop.f32.mrf.mxu1  ;;  %v728_v55 = vpop.f32.mrf.mxu0 }
  0xee   :  { %v530_v56 = vadd.f32 %v754_v53, %v726_v48  ;;  %v729_v57 = vadd.f32 %v728_v55, %v727_v50 }
  0xef   :  { %v756_v58 = vpop.f32.mrf.mxu1  ;;  %v730_v59 = vpop.f32.mrf.mxu0 }
  0xf0   :  { %v757_v61 = vadd.f32 %v756_v58, %v755_v54  ;;  %v551_v0 = vmul.f32 %v530_v56, %v530_v56  ;;  %v541_v5 = vadd.f32 %v530_v56, %v527_v60 }
  0xf1   :  { %v758_v62 = vpop.f32.mrf.mxu1  ;;  %v731_v63 = vpop.f32.mrf.mxu0 }
  0xf2   :  { %v535_v1 = vadd.f32 %v757_v61, %v729_v57  ;;  %v732_v2 = vadd.f32 %v731_v63, %v730_v59  ;;  %v554_v8 = vadd.f32 %v551_v0, %v550_v4 }
  0xf3   :  { %v759_v3 = vpop.f32.mrf.mxu1 }
  0xf4   :  { %v552_v6 = vmul.f32 %v535_v1, %v535_v1  ;;  %v760_v7 = vadd.f32 %v759_v3, %v758_v62  ;;  %v542_v9 = vadd.f32 %v541_v5, %v535_v1 }
  0xf6   :  { %v538_v10 = vadd.f32 %v760_v7, %v732_v2  ;;  %v555_v11 = vadd.f32 %v554_v8, %v552_v6 }
  0xf8   :  { %v543_v12 = vadd.f32 %v542_v9, %v538_v10  ;;  %v553_v13 = vmul.f32 %v538_v10, %v538_v10 }
  0xfa   :  { %v544_v14 = vrot.slane %v543_v12, 4  ;;  %v556_v15 = vadd.f32 %v555_v11, %v553_v13 }
  0xfc   :  { %v545_v16 = vadd.f32 %v544_v14, %v543_v12  ;;  %v557_v17 = vrot.slane %v556_v15, 4 }
  0xfe   :  { %v546_v18 = vrot.slane %v545_v16, 2  ;;  %v558_v19 = vadd.f32 %v557_v17, %v556_v15 }
 0x100   :  { %v547_v20 = vadd.f32 %v546_v18, %v545_v16  ;;  %v559_v21 = vrot.slane %v558_v19, 2 }
 0x102   :  { %v548_v22 = vrot.slane %v547_v20, 1  ;;  %v560_v23 = vadd.f32 %v559_v21, %v558_v19 }
 0x104   :  { %v549_v24 = vadd.f32 %v548_v22, %v547_v20  ;;  %v561_v25 = vrot.slane %v560_v23, 1 }
 0x106   :  { %v562_v26 = vadd.f32 %v561_v25, %v560_v23  ;;  %v563_v27 = vmul.f32 0.125, %v549_v24 }
 0x108   :  { %v564_v28 = vmul.f32 0.125, %v562_v26  ;;  %v565_v29 = vmul.f32 %v563_v27, %v563_v27  ;;  %v568_v33 = vsub.f32 %v527_v60, %v563_v27  ;;  %v569_v34 = vsub.f32 %v530_v56, %v563_v27 }
 0x109   :  { %v570_v35 = vsub.f32 %v535_v1, %v563_v27  ;;  %v571_v36 = vsub.f32 %v538_v10, %v563_v27 }
 0x10a   :  { %v566_v30 = vsub.f32 %v564_v28, %v565_v29 }
 0x10c   :  { %v567_v31 = vmax.f32 %v566_v30, 0.0 }
 0x10e   :  { %v572_v32 = vadd.f32 1e-05, %v567_v31 }
 0x110   :  { %806 = vrsqrt.f32 %v572_v32 }
 0x11d   :  { %v807_v37 = vpop.eup %806 }
 0x11e   :  { %v574_v39 = vmul.f32 %v807_v37, %v568_v33  ;;  %v575_v40 = vmul.f32 %v807_v37, %v569_v34  ;;  %v576_v41 = vmul.f32 %v807_v37, %v570_v35  ;;  %v577_v42 = vmul.f32 %v807_v37, %v571_v36 }
 0x120   :  { %v585_v44 = vmul.f32 %v684_v38, %v574_v39  ;;  %v586_v45 = vmul.f32 %v684_v38, %v575_v40  ;;  %v587_v46 = vmul.f32 %v684_v38, %v576_v41  ;;  %v588_v47 = vmul.f32 %v684_v38, %v577_v42 }
 0x122   :  { %v596_v48 = vadd.f32 %v685_v43, %v585_v44  ;;  %v597_v49 = vadd.f32 %v685_v43, %v586_v45  ;;  %v598_v50 = vadd.f32 %v685_v43, %v587_v46  ;;  %v599_v51 = vadd.f32 %v685_v43, %v588_v47 }
 0x124   :  { %vm600_vm0 = vcmp.gt.f32.partialorder %v596_v48, 0.0  ;;  %vm601_vm1 = vcmp.gt.f32.partialorder %v597_v49, 0.0  ;;  %vm602_vm2 = vcmp.gt.f32.partialorder %v598_v50, 0.0  ;;  %vm603_vm3 = vcmp.gt.f32.partialorder %v599_v51, 0.0 }
 0x125   :  { %v604_v52 = vmul.f32 0.2, %v596_v48  ;;  %v605_v53 = vmul.f32 0.2, %v597_v49  ;;  %v606_v54 = vmul.f32 0.2, %v598_v50 }
 0x126   :  { %v607_v55 = vmul.f32 0.2, %v599_v51 }
 0x127   :  { %v608_v56 = vsel %vm600_vm0, %v596_v48, %v604_v52  ;;  %v609_v57 = vsel %vm601_vm1, %v597_v49, %v605_v53  ;;  %v610_v58 = vsel %vm602_vm2, %v598_v50, %v606_v54 }
 0x128   :  { %v611_v59 = vsel %vm603_vm3, %v599_v51, %v607_v55  ;;  %v697_v60 = vpack.c.bf16 %v609_v57, %v608_v56 }
 0x129   :  { %v702_v61 = vpack.c.bf16 %v611_v59, %v610_v58 }
 0x12a   :  { %698 = vst [vmem:[%s994_s4] sm:$0xff] %v697_v60  }
 0x12b   :  { %704 = vst [vmem:[%s994_s4 + $0x8] sm:$0xff] %v702_v61  }

// kernel: full_conv_encoder.7
= control target key start
LH: loop header
LB: loop body
LE: loop exit
PB: predicated region body
PF: predicated region fallthrough
CT: control target
= control target key end

     0   :  { %vm19_vm0 = vsmask.f32 7938  ;;  %vm22_vm1 = vsmask.f32 7954  ;;  %vm18_vm2 = vcmask 1043456   ;;  %vm21_vm3 = vcmask 1047556   ;;  %s825_s1 = inlined_call_operand.vmem [shape: bf16[512,128], index: 1, kind: input, shape index: {}]   ;;  %s826_s0 = inlined_call_operand.vmem [shape: bf16[2,2,8,128], index: 0, kind: input, shape index: {}]   ;;  %s827_s2 = inlined_call_operand.vmem [shape: f32[1,128], index: 2, kind: input, shape index: {}]   ;;  %s828_s3 = inlined_call_operand.vmem [shape: f32[1,128], index: 3, kind: input, shape index: {}]   ;;  %s829_s4 = inlined_call_operand.vmem [shape: f32[16,128], index: 4, kind: output, shape index: {}]  }
   0x1   :  { %v606_v0 = vld [vmem:[%s825_s1 + $0x78] sm:$0xff]   ;;  %v610_v4 = vld [vmem:[%s825_s1 + $0x70] sm:$0xff]   ;;  %v614_v8 = vld [vmem:[%s825_s1 + $0x68] sm:$0xff]   ;;  %vm39_vm7 = vcmask 1040384   ;;  %vm40_vm8 = vsmask.f32 256 }
   0x2   :  { %v607_v1 = vld [vmem:[%s825_s1 + $0xf8] sm:$0xff]   ;;  %562 = vmatprep.subr.bf16.mxu0 %v606_v0  ;;  %v611_v5 = vld [vmem:[%s825_s1 + $0xf0] sm:$0xff]   ;;  %v615_v9 = vld [vmem:[%s825_s1 + $0xe8] sm:$0xff]  }
   0x3   :  { %v608_v2 = vld [vmem:[%s825_s1 + $0x38] sm:$0xff]   ;;  %584 = vmatprep.subr.bf16.mxu1 %v607_v1  ;;  %v612_v6 = vld [vmem:[%s825_s1 + $0x30] sm:$0xff]   ;;  %v616_v10 = vld [vmem:[%s825_s1 + $0x28] sm:$0xff]  }
   0x4   :  { %v609_v3 = vld [vmem:[%s825_s1 + $0xb8] sm:$0xff]   ;;  %563 = vmatpush3.bf16.msra.mxu0 %v608_v2  ;;  %v613_v7 = vld [vmem:[%s825_s1 + $0xb0] sm:$0xff]   ;;  %v617_v11 = vld [vmem:[%s825_s1 + $0xa8] sm:$0xff]  }
   0x5   :  { %585 = vmatpush3.bf16.msra.mxu1 %v609_v3  ;;  %564 = vmatprep.subr.bf16.mxu0 %v610_v4  ;;  %v618_v12 = vld [vmem:[%s825_s1 + $0x60] sm:$0xff]   ;;  %v622_v16 = vld [vmem:[%s825_s1 + $0x58] sm:$0xff]   ;;  %v626_v20 = vld [vmem:[%s825_s1 + $0x50] sm:$0xff]  }
   0x6   :  { %586 = vmatprep.subr.bf16.mxu1 %v611_v5  ;;  %v619_v13 = vld [vmem:[%s825_s1 + $0xe0] sm:$0xff]   ;;  %v623_v17 = vld [vmem:[%s825_s1 + $0xd8] sm:$0xff]   ;;  %v627_v21 = vld [vmem:[%s825_s1 + $0xd0] sm:$0xff]  }
   0x7   :  { %v620_v14 = vld [vmem:[%s825_s1 + $0x20] sm:$0xff]   ;;  %v624_v18 = vld [vmem:[%s825_s1 + $0x18] sm:$0xff]   ;;  %v628_v22 = vld [vmem:[%s825_s1 + $0x10] sm:$0xff]  }
   0x8   :  { %565 = vmatpush3.bf16.msra.mxu0 %v612_v6  ;;  %v621_v15 = vld [vmem:[%s825_s1 + $0xa0] sm:$0xff]   ;;  %v625_v19 = vld [vmem:[%s825_s1 + $0x98] sm:$0xff]   ;;  %v629_v23 = vld [vmem:[%s825_s1 + $0x90] sm:$0xff]  }
   0x9   :  { %587 = vmatpush3.bf16.msra.mxu1 %v613_v7  ;;  %566 = vmatprep.subr.bf16.mxu0 %v614_v8  ;;  %v630_v24 = vld [vmem:[%s825_s1 + $0x48] sm:$0xff]   ;;  %v634_v28 = vld [vmem:[%s825_s1 + $0x40] sm:$0xff]   ;;  %vm20_vm4 = vmand %vm18_vm2, %vm19_vm0 }
   0xa   :  { %588 = vmatprep.subr.bf16.mxu1 %v615_v9  ;;  %v631_v25 = vld [vmem:[%s825_s1 + $0xc8] sm:$0xff]   ;;  %v635_v29 = vld [vmem:[%s825_s1 + $0xc0] sm:$0xff]   ;;  %v31_v33 = vld [vmem:[#allocation2 + $0x10] sm:$0xff] }
   0xb   :  { %v632_v26 = vld [vmem:[%s825_s1 + $0x8] sm:$0xff]   ;;  %v636_v30 = vld [vmem:[%s825_s1] sm:$0xff]   ;;  %vm23_vm5 = vmand %vm21_vm3, %vm22_vm1 }
   0xc   :  { %567 = vmatpush3.bf16.msra.mxu0 %v616_v10  ;;  %v633_v27 = vld [vmem:[%s825_s1 + $0x88] sm:$0xff]   ;;  %v637_v31 = vld [vmem:[%s825_s1 + $0x80] sm:$0xff]   ;;  %vm24_vm6 = vmor %vm23_vm5, %vm20_vm4 }
   0xd   :  { %589 = vmatpush3.bf16.msra.mxu1 %v617_v11  ;;  %568 = vmatprep.subr.bf16.mxu0 %v618_v12  ;;  %v25_v32 = vld [vmem:[#allocation2] sm:$0xff]  ;;  %v32_v35 = vsel %vm24_vm6, 0, %v31_v33  ;;  %v28_v36 = vld [vmem:[#allocation2 + $0x8] sm:$0xff]  ;;  %v34_v37 = vld [vmem:[#allocation2 + $0x18] sm:$0xff] }
   0xe   :  { %590 = vmatprep.subr.bf16.mxu1 %v619_v13  ;;  %v26_v34 = vsel %vm24_vm6, 0, %v25_v32  ;;  %33 = vst [vmem:[#allocation2 + $0x10] sm:$0xff] %v32_v35  ;;  %v29_v38 = vsel %vm24_vm6, 0, %v28_v36  ;;  %v35_v39 = vsel %vm24_vm6, 0, %v34_v37  ;;  %v48_v40 = vld [vmem:[%s826_s0] sm:$0x1]  ;;  %vm787_vm9 = vmand %vm39_vm7, %vm40_vm8 }
   0xf   :  { %27 = vst [vmem:[#allocation2] sm:$0xff] %v26_v34  ;;  %30 = vst [vmem:[#allocation2 + $0x8] sm:$0xff] %v29_v38  ;;  %v49_v41 = vld [vmem:[%s826_s0 + $0x8] sm:$0x1]  ;;  %v520_v42 = vld [vmem:[%s826_s0 + $0x4] sm:$0x1] }
  0x10   :  { %569 = vmatpush3.bf16.msra.mxu0 %v620_v14  ;;  %36 = vst [vmem:[#allocation2 + $0x18] sm:$0xff] %v35_v39  ;;  %v521_v43 = vld [vmem:[%s826_s0 + $0xc] sm:$0x1]  ;;  %v51_v44 = vshrl.u32 %v48_v40, 16  ;;  %v37_v45 = vld [vmem:[%s826_s0] sm:$0x1] }
  0x11   :  { %591 = vmatpush3.bf16.msra.mxu1 %v621_v15  ;;  %570 = vmatprep.subr.bf16.mxu0 %v622_v16  ;;  %v38_v46 = vld [vmem:[%s826_s0 + $0x8] sm:$0x1]  ;;  %v56_v48 = vshrl.u32 %v49_v41, 16  ;;  %v518_v49 = vld [vmem:[%s826_s0 + $0x4] sm:$0x1]  ;;  %v80_v51 = vshrl.u32 %v520_v42, 16 }
  0x12   :  { %592 = vmatprep.subr.bf16.mxu1 %v623_v17  ;;  %v519_v50 = vld [vmem:[%s826_s0 + $0xc] sm:$0x1]  ;;  %v85_v52 = vshrl.u32 %v521_v43, 16 }
  0x14   :  { %571 = vmatpush3.bf16.msra.mxu0 %v624_v18 }
  0x15   :  { %593 = vmatpush3.bf16.msra.mxu1 %v625_v19  ;;  %572 = vmatprep.subr.bf16.mxu0 %v626_v20  ;;  %v45_v54 = vld [vmem:[#allocation2 + $0x10] sm:$0x1]  ;;  %v65_v59 = vld [vmem:[#allocation2 + $0x14] sm:$0x1] }
  0x16   :  { %594 = vmatprep.subr.bf16.mxu1 %v627_v21  ;;  %v42_v53 = vld [vmem:[#allocation2] sm:$0x1]  ;;  %v62_v55 = vld [vmem:[#allocation2 + $0x4] sm:$0x1]  ;;  %v46_v57 = vsel %vm787_vm9, %v38_v46, %v45_v54  ;;  %v71_v60 = vld [vmem:[#allocation2 + $0x8] sm:$0x1]  ;;  %v66_v62 = vsel %vm787_vm9, %v56_v48, %v65_v59 }
  0x17   :  { %v43_v56 = vsel %vm787_vm9, %v37_v45, %v42_v53  ;;  %v63_v58 = vsel %vm787_vm9, %v51_v44, %v62_v55  ;;  %v74_v61 = vld [vmem:[#allocation2 + $0x18] sm:$0x1]  ;;  %47 = vst [vmem:[#allocation2 + $0x10] sm:$0x1] %v46_v57  ;;  %v72_v63 = vsel %vm787_vm9, %v518_v49, %v71_v60  ;;  %v91_v1 = vld [vmem:[#allocation2 + $0xc] sm:$0x1] }
  0x18   :  { %573 = vmatpush3.bf16.msra.mxu0 %v628_v22  ;;  %44 = vst [vmem:[#allocation2] sm:$0x1] %v43_v56  ;;  %64 = vst [vmem:[#allocation2 + $0x4] sm:$0x1] %v63_v58  ;;  %v75_v0 = vsel %vm787_vm9, %v519_v50, %v74_v61  ;;  %v94_v2 = vld [vmem:[#allocation2 + $0x1c] sm:$0x1]  ;;  %v92_v3 = vsel %vm787_vm9, %v80_v51, %v91_v1 }
  0x19   :  { %595 = vmatpush3.bf16.msra.mxu1 %v629_v23  ;;  %574 = vmatprep.subr.bf16.mxu0 %v630_v24  ;;  %67 = vst [vmem:[#allocation2 + $0x14] sm:$0x1] %v66_v62  ;;  %73 = vst [vmem:[#allocation2 + $0x8] sm:$0x1] %v72_v63  ;;  %v95_v4 = vsel %vm787_vm9, %v85_v52, %v94_v2  ;;  %v560_v48 = vld [vmem:[%s827_s2] ss:$0 sm:$0xff] }
  0x1a   :  { %596 = vmatprep.subr.bf16.mxu1 %v631_v25  ;;  %76 = vst [vmem:[#allocation2 + $0x18] sm:$0x1] %v75_v0  ;;  %93 = vst [vmem:[#allocation2 + $0xc] sm:$0x1] %v92_v3  ;;  %v561_v51 = vld [vmem:[%s828_s3] ss:$0 sm:$0xff] }
  0x1b   :  { %96 = vst [vmem:[#allocation2 + $0x1c] sm:$0x1] %v95_v4 }
  0x1c   :  { %575 = vmatpush3.bf16.msra.mxu0 %v632_v26 }
  0x1d   :  { %597 = vmatpush3.bf16.msra.mxu1 %v633_v27  ;;  %576 = vmatprep.subr.bf16.mxu0 %v634_v28 }
  0x1e   :  { %598 = vmatprep.subr.bf16.mxu1 %v635_v29 }
  0x1f   :  { %v638_v5 = vld [vmem:[#allocation2] ss:$16 sps:$4 sm:$0xff]  }
  0x20   :  { %577 = vmatpush3.bf16.msra.mxu0 %v636_v30  ;;  %v640_v6 = vld [vmem:[#allocation2 + $0x4] ss:$16 sps:$4 sm:$0xff]  }
  0x21   :  { %599 = vmatpush3.bf16.msra.mxu1 %v637_v31  ;;  %v641_v7 = vld [vmem:[#allocation2 + $0x8] ss:$16 sps:$4 sm:$0xff]   ;;  %409 = vmatprep.mubr.bf16.mxu0 %v640_v6 }
  0x22   :  { %v643_v8 = vld [vmem:[#allocation2 + $0xc] ss:$16 sps:$4 sm:$0xff]  }
  0x23   :  { %410 = vmatmul.mubr.bf16.vlgmr.msra.gmra.mxu0 %v638_v5  ;;  %450 = vmatprep.mubr.bf16.mxu1 %v643_v8 }
  0x24   :  { %451 = vmatmul.mubr.bf16.vlgmr.msra.gmra.mxu1 %v641_v7 }
  0xe3   :  { %v578_v9 = vpop.f32.mrf.mxu0 }
  0xe4   :  { %v600_v10 = vpop.f32.mrf.mxu1 }
  0xe5   :  { %v579_v11 = vpop.f32.mrf.mxu0 }
  0xe6   :  { %v601_v12 = vpop.f32.mrf.mxu1  ;;  %v580_v14 = vadd.f32 %v579_v11, %v578_v9 }
  0xe7   :  { %v581_v13 = vpop.f32.mrf.mxu0  ;;  %v602_v15 = vadd.f32 %v601_v12, %v600_v10 }
  0xe8   :  { %v603_v16 = vpop.f32.mrf.mxu1 }
  0xe9   :  { %v582_v17 = vpop.f32.mrf.mxu0  ;;  %v453_v20 = vadd.f32 %v602_v15, %v580_v14 }
  0xea   :  { %v583_v18 = vadd.f32 %v582_v17, %v581_v13  ;;  %v604_v19 = vpop.f32.mrf.mxu1 }
  0xeb   :  { %v605_v21 = vadd.f32 %v604_v19, %v603_v16  ;;  %v466_v23 = vmul.f32 %v453_v20, %v453_v20 }
  0xed   :  { %v456_v22 = vadd.f32 %v605_v21, %v583_v18 }
  0xef   :  { %v459_v24 = vadd.f32 %v456_v22, %v453_v20  ;;  %v467_v25 = vmul.f32 %v456_v22, %v456_v22 }
  0xf1   :  { %v460_v26 = vrot.slane %v459_v24, 4  ;;  %v468_v27 = vadd.f32 %v467_v25, %v466_v23 }
  0xf3   :  { %v461_v28 = vadd.f32 %v460_v26, %v459_v24  ;;  %v469_v29 = vrot.slane %v468_v27, 4 }
  0xf5   :  { %v462_v30 = vrot.slane %v461_v28, 2  ;;  %v470_v31 = vadd.f32 %v469_v29, %v468_v27 }
  0xf7   :  { %v463_v32 = vadd.f32 %v462_v30, %v461_v28  ;;  %v471_v33 = vrot.slane %v470_v31, 2 }
  0xf9   :  { %v464_v34 = vrot.slane %v463_v32, 1  ;;  %v472_v35 = vadd.f32 %v471_v33, %v470_v31 }
  0xfb   :  { %v465_v36 = vadd.f32 %v464_v34, %v463_v32  ;;  %v473_v37 = vrot.slane %v472_v35, 1 }
  0xfd   :  { %v474_v38 = vadd.f32 %v473_v37, %v472_v35  ;;  %v475_v39 = vmul.f32 0.5, %v465_v36 }
  0xff   :  { %v476_v40 = vmul.f32 0.5, %v474_v38  ;;  %v477_v41 = vmul.f32 %v475_v39, %v475_v39  ;;  %v480_v45 = vsub.f32 %v453_v20, %v475_v39  ;;  %v481_v46 = vsub.f32 %v456_v22, %v475_v39 }
 0x101   :  { %v478_v42 = vsub.f32 %v476_v40, %v477_v41 }
 0x103   :  { %v479_v43 = vmax.f32 %v478_v42, 0.0 }
 0x105   :  { %v482_v44 = vadd.f32 1e-05, %v479_v43 }
 0x107   :  { %644 = vrsqrt.f32 %v482_v44 }
 0x114   :  { %v645_v47 = vpop.eup %644 }
 0x115   :  { %v484_v49 = vmul.f32 %v645_v47, %v480_v45  ;;  %v485_v50 = vmul.f32 %v645_v47, %v481_v46 }
 0x117   :  { %v493_v52 = vmul.f32 %v560_v48, %v484_v49  ;;  %v494_v53 = vmul.f32 %v560_v48, %v485_v50 }
 0x119   :  { %v502_v54 = vadd.f32 %v561_v51, %v493_v52  ;;  %v503_v55 = vadd.f32 %v561_v51, %v494_v53 }
 0x11b   :  { %vm504_vm10 = vcmp.gt.f32.partialorder %v502_v54, 0.0  ;;  %vm505_vm11 = vcmp.gt.f32.partialorder %v503_v55, 0.0  ;;  %v506_v56 = vmul.f32 0.2, %v502_v54  ;;  %v507_v57 = vmul.f32 0.2, %v503_v55 }
 0x11d   :  { %v508_v58 = vsel %vm504_vm10, %v502_v54, %v506_v56  ;;  %v509_v59 = vsel %vm505_vm11, %v503_v55, %v507_v57 }
 0x11e   :  { %510 = vst [vmem:[%s829_s4] sm:$0xff] %v508_v58  ;;  %511 = vst [vmem:[%s829_s4 + $0x8] sm:$0xff] %v509_v59 }

</bundles_post_ra>
